<compile_context>
chip_gen: v5e
topology: v5e:2x2
jax: 0.10.0
libtpu: 0.0.40
codegen_flags: <defaults>
</compile_context>

<pallas_src>
import jax
import jax.numpy as jnp
from jax.experimental import pallas as pl
from jax.experimental.pallas import tpu as pltpu

PAD_SRC = 0          # src padding token id
NEG_INF = -1e30      # finite "minus infinity" (avoids NaN for all-masked rows)


# ------------------------------ helpers -----------------------------------

def _round_up(x, m):
    return ((x + m - 1) // m) * m


def _pad_gate_weight(w, in_pad, h_pad):
    """w: (in_dim, 4*Hd) laid out [i|f|g|o] -> (in_pad, 4*h_pad) with each gate
    block zero-padded to h_pad columns and rows zero-padded to in_pad."""
    in_dim, four_h = w.shape
    hd = four_h // 4
    w = w.reshape(in_dim, 4, hd)
    w = jnp.pad(w, ((0, in_pad - in_dim), (0, 0), (0, h_pad - hd)))
    return w.reshape(in_pad, 4 * h_pad)


def _pad_gate_bias(b, h_pad):
    """b: (1, 4*Hd) -> (1, 4*h_pad) with per-gate zero padding."""
    four_h = b.shape[-1]
    hd = four_h // 4
    b = b.reshape(1, 4, hd)
    b = jnp.pad(b, ((0, 0), (0, 0), (0, h_pad - hd)))
    return b.reshape(1, 4 * h_pad)


# ----------------------- fused encoder LSTM kernel -------------------------

def _enc_lstm_kernel(gx_ref, whh_ref, valid_ref, out_ref, hT_ref, cT_ref,
                     h_scr, c_scr):
    t = pl.program_id(0)

    @pl.when(t == 0)
    def _():
        h_scr[...] = jnp.zeros_like(h_scr)
        c_scr[...] = jnp.zeros_like(c_scr)

    hp = h_scr.shape[-1]
    h = h_scr[...]
    c = c_scr[...]
    # x @ W_ih + b was hoisted out of the recurrence; only the recurrent
    # h @ W_hh matmul (resident weights, MXU) runs inside the time loop.
    gates = gx_ref[0] + jnp.dot(h, whh_ref[...],
                                preferred_element_type=jnp.float32)
    i = jax.nn.sigmoid(gates[:, 0 * hp:1 * hp])      # 128-aligned gate tiles
    f = jax.nn.sigmoid(gates[:, 1 * hp:2 * hp])
    g = jnp.tanh(gates[:, 2 * hp:3 * hp])
    o = jax.nn.sigmoid(gates[:, 3 * hp:4 * hp])
    c_new = f * c + i * g
    h_new = o * jnp.tanh(c_new)

    valid = valid_ref[0]                    # (Bp, Hp): 1.0 where t < length
    h_upd = jnp.where(valid > 0, h_new, h)  # packed-seq: freeze state on pad
    c_upd = jnp.where(valid > 0, c_new, c)
    h_scr[...] = h_upd
    c_scr[...] = c_upd
    out_ref[0] = jnp.where(valid > 0, h_new, 0.0)   # zero outputs at padding
    hT_ref[...] = h_upd                     # resident output; last write wins
    cT_ref[...] = c_upd


def lstm_direction(x_seq, lengths, wih_t, whh_t, b, reverse):
    """One direction of one bi-LSTM layer, fused over time in a single
    pallas_call (grid=(T,)), with packed-sequence semantics."""
    T, B, in_dim = x_seq.shape
    Hd = whh_t.shape[0]
    Bp = _round_up(max(B, 8), 8)
    Hdp = _round_up(Hd, 128)
    in_p = _round_up(in_dim, 128)

    wih_p = _pad_gate_weight(wih_t, in_p, Hdp)
    whh_p = _pad_gate_weight(whh_t, Hdp, Hdp)
    b_p = _pad_gate_bias(b, Hdp)

    x_p = jnp.pad(x_seq, ((0, 0), (0, Bp - B), (0, in_p - in_dim)))
    # hoisted input projection: one MXU-shaped matmul over all timesteps
    gates_x = jnp.einsum('tbi,ig->tbg', x_p, wih_p,
                         preferred_element_type=jnp.float32) + b_p[None]

    lengths_p = jnp.pad(lengths, (0, Bp - B))        # padded rows -> length 0
    valid = (jnp.arange(T)[:, None] < lengths_p[None, :]).astype(jnp.float32)
    valid = jnp.broadcast_to(valid[:, :, None], (T, Bp, Hdp))

    if reverse:
        idx3 = lambda t: (T - 1 - t, 0, 0)
    else:
        idx3 = lambda t: (t, 0, 0)

    outs, h_fin, c_fin = pl.pallas_call(
        _enc_lstm_kernel,
        out_shape=(jax.ShapeDtypeStruct((T, Bp, Hdp), jnp.float32),
                   jax.ShapeDtypeStruct((Bp, Hdp), jnp.float32),
                   jax.ShapeDtypeStruct((Bp, Hdp), jnp.float32)),
        grid_spec=pltpu.PrefetchScalarGridSpec(
            num_scalar_prefetch=0,
            grid=(T,),
            in_specs=[
                pl.BlockSpec((1, Bp, 4 * Hdp), idx3),            # gates_x[t]
                pl.BlockSpec((Hdp, 4 * Hdp), lambda t: (0, 0)),  # W_hh resident
                pl.BlockSpec((1, Bp, Hdp), idx3),                # valid mask[t]
            ],
            out_specs=(
                pl.BlockSpec((1, Bp, Hdp), idx3),                # per-step h
                pl.BlockSpec((Bp, Hdp), lambda t: (0, 0)),       # final h
                pl.BlockSpec((Bp, Hdp), lambda t: (0, 0)),       # final c
            ),
            scratch_shapes=[pltpu.VMEM((Bp, Hdp), jnp.float32),
                            pltpu.VMEM((Bp, Hdp), jnp.float32)]),
        compiler_params=pltpu.CompilerParams(
            dimension_semantics=("arbitrary",),
            vmem_limit_bytes=32 * 1024 * 1024),
    )(gates_x, whh_p, valid)

    return outs[:, :B, :Hd], h_fin[:B, :Hd], c_fin[:B, :Hd]


# ------------------------ fused decoder kernel -----------------------------

def _decoder_kernel(emb_ref, h0_ref, c0_ref, mem_ref, mask_ref,
                    wih_ref, whh_ref, b_ref, w1_ref, w2_ref, bo_ref,
                    logits_ref, h_scr, c_scr, ctx_scr):
    t = pl.program_id(0)

    @pl.when(t == 0)
    def _():
        h_scr[...] = h0_ref[...]       # decoder init = reshaped encoder final
        c_scr[...] = c0_ref[...]
        ctx_scr[...] = jnp.zeros_like(ctx_scr)   # no context at first step

    hp = ctx_scr.shape[-1]
    n_layers = h_scr.shape[0]

    # input feeding: embedding + previous attention context
    inp = emb_ref[0] + ctx_scr[...]

    for l in range(n_layers):          # static unroll (small #layers)
        h = h_scr[l]
        c = c_scr[l]
        gates = (jnp.dot(inp, wih_ref[l], preferred_element_type=jnp.float32)
                 + jnp.dot(h, whh_ref[l], preferred_element_type=jnp.float32)
                 + b_ref[l])
        i = jax.nn.sigmoid(gates[:, 0 * hp:1 * hp])
        f = jax.nn.sigmoid(gates[:, 1 * hp:2 * hp])
        g = jnp.tanh(gates[:, 2 * hp:3 * hp])
        o = jax.nn.sigmoid(gates[:, 3 * hp:4 * hp])
        c_new = f * c + i * g
        h_new = o * jnp.tanh(c_new)
        h_scr[l] = h_new
        c_scr[l] = c_new
        inp = h_new

    dec = inp                          # (Bp, Hp)  top-layer decoder output
    mem = mem_ref[...]                 # (Bp, Sp, Hp) memory bank (resident)
    mask = mask_ref[...]               # (Bp, 1, Sp)  1.0 = attend allowed

    # attention on the MXU (batched matmuls, q_len == 1), unscaled as in ref
    q = dec[:, None, :]                                        # (Bp, 1, Hp)
    scores = jnp.einsum('bqh,bsh->bqs', q, mem,
                        preferred_element_type=jnp.float32)    # (Bp, 1, Sp)
    scores = jnp.where(mask > 0, scores, NEG_INF)
    m = jnp.max(scores, axis=-1, keepdims=True)
    e = jnp.exp(scores - m)
    attn = e * pl.reciprocal(jnp.sum(e, axis=-1, keepdims=True), approx=True)
    ctx = jnp.einsum('bqs,bsh->bqh', attn, mem,
                     preferred_element_type=jnp.float32)[:, 0, :]  # (Bp, Hp)
    ctx_scr[...] = ctx

    # hidden2output on concat([dec, ctx]) == dec @ W1 + ctx @ W2 + b
    logits = (jnp.dot(dec, w1_ref[...], preferred_element_type=jnp.float32)
              + jnp.dot(ctx, w2_ref[...], preferred_element_type=jnp.float32)
              + bo_ref[...])
    logits_ref[0] = logits


def decoder(params, tgt_emb, h0, c0, mem_b, src_mask):
    """Whole decoder (all target steps) in one pallas_call."""
    Tt, B, E = tgt_emb.shape
    L, _, H = h0.shape
    S = mem_b.shape[1]
    V = params['w_out1'].shape[1]
    Bp = _round_up(max(B, 8), 8)
    Hp = _round_up(H, 128)
    Ep = _round_up(E, 128)
    Sp = _round_up(S, 128)
    Vp = _round_up(V, 128)
    assert Ep == Hp  # embedding_size == hidden_size in this module

    emb_p = jnp.pad(tgt_emb, ((0, 0), (0, Bp - B), (0, Ep - E)))
    h0_p = jnp.pad(h0, ((0, 0), (0, Bp - B), (0, Hp - H)))
    c0_p = jnp.pad(c0, ((0, 0), (0, Bp - B), (0, Hp - H)))
    mem_p = jnp.pad(mem_b, ((0, Bp - B), (0, Sp - S), (0, Hp - H)))
    mask_p = jnp.pad(src_mask, ((0, Bp - B), (0, Sp - S)))[:, None, :]

    wih_p = jnp.stack([_pad_gate_weight(p['wih_t'], Hp, Hp)
                       for p in params['dec']])
    whh_p = jnp.stack([_pad_gate_weight(p['whh_t'], Hp, Hp)
                       for p in params['dec']])
    b_p = jnp.stack([_pad_gate_bias(p['b'], Hp) for p in params['dec']])
    w1_p = jnp.pad(params['w_out1'], ((0, Hp - H), (0, Vp - V)))
    w2_p = jnp.pad(params['w_out2'], ((0, Hp - H), (0, Vp - V)))
    bo_p = jnp.pad(params['b_out'], ((0, 0), (0, Vp - V)))

    const2 = lambda t: (0, 0)
    const3 = lambda t: (0, 0, 0)
    step3 = lambda t: (t, 0, 0)

    logits = pl.pallas_call(
        _decoder_kernel,
        out_shape=jax.ShapeDtypeStruct((Tt, Bp, Vp), jnp.float32),
        grid_spec=pltpu.PrefetchScalarGridSpec(
            num_scalar_prefetch=0,
            grid=(Tt,),
            in_specs=[
                pl.BlockSpec((1, Bp, Ep), step3),        # tgt embedding[t]
                pl.BlockSpec((L, Bp, Hp), const3),       # encoder final h
                pl.BlockSpec((L, Bp, Hp), const3),       # encoder final c
                pl.BlockSpec((Bp, Sp, Hp), const3),      # memory bank resident
                pl.BlockSpec((Bp, 1, Sp), const3),       # src attention mask
                pl.BlockSpec((L, Hp, 4 * Hp), const3),   # decoder W_ih resident
                pl.BlockSpec((L, Hp, 4 * Hp), const3),   # decoder W_hh resident
                pl.BlockSpec((L, 1, 4 * Hp), const3),    # decoder biases
                pl.BlockSpec((Hp, Vp), const2),          # out proj (dec half)
                pl.BlockSpec((Hp, Vp), const2),          # out proj (ctx half)
                pl.BlockSpec((1, Vp), const2),           # out bias
            ],
            out_specs=pl.BlockSpec((1, Bp, Vp), step3),  # lane-dense logits
            scratch_shapes=[pltpu.VMEM((L, Bp, Hp), jnp.float32),
                            pltpu.VMEM((L, Bp, Hp), jnp.float32),
                            pltpu.VMEM((Bp, Hp), jnp.float32)]),
        compiler_params=pltpu.CompilerParams(
            dimension_semantics=("arbitrary",),
            vmem_limit_bytes=32 * 1024 * 1024),
    )(emb_p, h0_p, c0_p, mem_p, mask_p, wih_p, whh_p, b_p, w1_p, w2_p, bo_p)

    return logits[:, :B, :V]


# ------------------------------ model glue ---------------------------------

def init_params(key, V_src, V_tgt, E, H, layers):
    Hd = H // 2
    keys = iter(jax.random.split(key, 8 + 9 * layers))

    def nrm(shape, scale=0.1):
        return (scale * jax.random.normal(next(keys), shape)).astype(jnp.float32)

    params = {'emb_src': nrm((V_src, E)), 'emb_tgt': nrm((V_tgt, E)),
              'enc': [], 'dec': []}
    for l in range(layers):
        in_dim = E if l == 0 else 2 * Hd
        params['enc'].append({
            'f': dict(wih_t=nrm((in_dim, 4 * Hd)), whh_t=nrm((Hd, 4 * Hd)),
                      b=nrm((1, 4 * Hd))),
            'b': dict(wih_t=nrm((in_dim, 4 * Hd)), whh_t=nrm((Hd, 4 * Hd)),
                      b=nrm((1, 4 * Hd))),
        })
        params['dec'].append(dict(wih_t=nrm((H, 4 * H)),   # E == H here
                                  whh_t=nrm((H, 4 * H)),
                                  b=nrm((1, 4 * H))))
    params['w_out1'] = nrm((H, V_tgt))   # acts on decoder_out half of concat
    params['w_out2'] = nrm((H, V_tgt))   # acts on context half of concat
    params['b_out'] = nrm((1, V_tgt))
    return params


def forward(params, src, src_lengths, tgt_in):
    """Mirrors AttnEncoderDecoder.forward. Returns logits shaped
    (tgt_len, 1, bsz, V_tgt) — exactly what torch.stack produces in the
    reference forward_decoder (each step keeps its q_len=1 axis)."""
    layers = len(params['enc'])

    # ---- encoder (bidirectional, multi-layer, packed-seq semantics) ----
    x = jnp.take(params['emb_src'], src, axis=0)          # (S, B, E)
    layer_in = x
    hs, cs = [], []
    for l in range(layers):
        pf, pb = params['enc'][l]['f'], params['enc'][l]['b']
        out_f, hf, cf = lstm_direction(layer_in, src_lengths,
                                       pf['wih_t'], pf['whh_t'], pf['b'],
                                       reverse=False)
        # TODO(synk): on v7x run fwd/bwd directions on the two TensorCores
        # (size-2 "parallel" leading grid axis) instead of back-to-back.
        out_b, hb, cb = lstm_direction(layer_in, src_lengths,
                                       pb['wih_t'], pb['whh_t'], pb['b'],
                                       reverse=True)
        layer_in = jnp.concatenate([out_f, out_b], axis=-1)
        hs.append(jnp.concatenate([hf, hb], axis=-1))      # matrix_reshape
        cs.append(jnp.concatenate([cf, cb], axis=-1))
    memory_bank = layer_in                                 # (S, B, H)
    mem_b = jnp.transpose(memory_bank, (1, 0, 2))          # (B, S, H)
    src_mask = (src != PAD_SRC).astype(jnp.float32).T      # (B, S)

    # ---- decoder: single fused kernel over all target steps ----
    h0 = jnp.stack(hs, 0)                                  # (L, B, H)
    c0 = jnp.stack(cs, 0)
    tgt_emb = jnp.take(params['emb_tgt'], tgt_in, axis=0)  # (Tt, B, E)
    logits = decoder(params, tgt_emb, h0, c0, mem_b, src_mask)  # (Tt, B, V)
    return logits[:, None, :, :]                           # (Tt, 1, B, V)


if __name__ == "__main__":
    V_src, V_tgt = 20, 24
    hidden, layers = 32, 2
    bsz, max_src_len, tgt_len = 2, 8, 5

    params = init_params(jax.random.PRNGKey(0), V_src, V_tgt, hidden, hidden,
                         layers)

    k1, k2 = jax.random.split(jax.random.PRNGKey(0))
    src_lengths = jnp.array([max_src_len, 6], dtype=jnp.int32)  # sorted desc
    src = jax.random.randint(k1, (max_src_len, bsz), 1, V_src)
    pos = jnp.arange(max_src_len)[:, None]
    src = jnp.where(pos < src_lengths[None, :], src, PAD_SRC).astype(jnp.int32)
    tgt_in = jax.random.randint(k2, (tgt_len, bsz), 1, V_tgt).astype(jnp.int32)

    fwd = jax.jit(forward)
    logits = fwd(params, src, src_lengths, tgt_in)
    logits = jax.block_until_ready(logits)

    assert logits.shape == (tgt_len, 1, bsz, V_tgt), logits.shape
    assert bool(jnp.all(jnp.isfinite(logits)))
    print("KERNEL_OK")
</pallas_src>

<mosaic_0001>
module attributes {stable_mosaic.version = 11 : i64} {
  func.func @_enc_lstm_kernel(%arg0: i32, %arg1: memref<1x8x512xf32, #tpu.memory_space<vmem>>, %arg2: memref<128x512xf32, #tpu.memory_space<vmem>>, %arg3: memref<1x8x128xf32, #tpu.memory_space<vmem>>, %arg4: memref<1x8x128xf32, #tpu.memory_space<vmem>>, %arg5: memref<8x128xf32, #tpu.memory_space<vmem>>, %arg6: memref<8x128xf32, #tpu.memory_space<vmem>>, %arg7: memref<8x128xf32, #tpu.memory_space<vmem>>, %arg8: memref<8x128xf32, #tpu.memory_space<vmem>>) attributes {dimension_semantics = [#tpu.dimension_semantics<arbitrary>], iteration_bounds = array<i64: 8>, scalar_prefetch = 0 : i64, scratch_operands = 2 : i64, tpu.core_type = #tpu.core_type<tc>, window_params = [{transform_indices = @transform_0, window_bounds = array<i64: 1, 8, 512>}, {pipeline_mode = #tpu.pipeline_mode<synchronous>, transform_indices = @transform_1, window_bounds = array<i64: 128, 512>}, {transform_indices = @transform_2, window_bounds = array<i64: 1, 8, 128>}, {transform_indices = @transform_3, window_bounds = array<i64: 1, 8, 128>}, {pipeline_mode = #tpu.pipeline_mode<synchronous>, transform_indices = @transform_4, window_bounds = array<i64: 8, 128>}, {pipeline_mode = #tpu.pipeline_mode<synchronous>, transform_indices = @transform_5, window_bounds = array<i64: 8, 128>}]} {
    %c0_i32 = arith.constant 0 : i32
    %0 = arith.cmpi eq, %arg0, %c0_i32 : i32
    %1 = arith.extui %0 : i1 to i32
    %c0_i32_0 = arith.constant 0 : i32
    %2 = arith.cmpi ne, %1, %c0_i32_0 : i32
    scf.if %2 {
      %cst_30 = arith.constant 0.000000e+00 : f32
      %54 = vector.broadcast %cst_30 : f32 to vector<8x128xf32>
      %c0_31 = arith.constant 0 : index
      %c0_32 = arith.constant 0 : index
      %55 = vector.load %arg7[%c0_31, %c0_32] : memref<8x128xf32, #tpu.memory_space<vmem>>, vector<8x128xf32>
      tpu.vector_store %arg7[%c0_31, %c0_32], %54 {strides = array<i32>} : memref<8x128xf32, #tpu.memory_space<vmem>>, vector<8x128xf32>,
      %cst_33 = arith.constant 0.000000e+00 : f32
      %56 = vector.broadcast %cst_33 : f32 to vector<8x128xf32>
      %c0_34 = arith.constant 0 : index
      %c0_35 = arith.constant 0 : index
      %57 = vector.load %arg8[%c0_34, %c0_35] : memref<8x128xf32, #tpu.memory_space<vmem>>, vector<8x128xf32>
      tpu.vector_store %arg8[%c0_34, %c0_35], %56 {strides = array<i32>} : memref<8x128xf32, #tpu.memory_space<vmem>>, vector<8x128xf32>,
    } else {
    }
    %c0 = arith.constant 0 : index
    %c0_1 = arith.constant 0 : index
    %3 = vector.load %arg7[%c0, %c0_1] : memref<8x128xf32, #tpu.memory_space<vmem>>, vector<8x128xf32>
    %c0_2 = arith.constant 0 : index
    %c0_3 = arith.constant 0 : index
    %4 = vector.load %arg8[%c0_2, %c0_3] : memref<8x128xf32, #tpu.memory_space<vmem>>, vector<8x128xf32>
    %c0_4 = arith.constant 0 : index
    %c0_5 = arith.constant 0 : index
    %c0_6 = arith.constant 0 : index
    %5 = vector.load %arg1[%c0_4, %c0_5, %c0_6] : memref<1x8x512xf32, #tpu.memory_space<vmem>>, vector<1x8x512xf32>
    %6 = vector.shape_cast %5 : vector<1x8x512xf32> to vector<8x512xf32>
    %c0_7 = arith.constant 0 : index
    %c0_8 = arith.constant 0 : index
    %7 = vector.load %arg2[%c0_7, %c0_8] : memref<128x512xf32, #tpu.memory_space<vmem>>, vector<128x512xf32>
    %cst = arith.constant dense<0.000000e+00> : vector<8x512xf32>
    %8 = tpu.matmul %3, %7, %cst {dimension_numbers = #tpu.dot_dimension_numbers<[1], [0], [0], [1], [0, 0, 1, 1], [], []>} : vector<8x128xf32>, vector<128x512xf32>, vector<8x512xf32> -> vector<8x512xf32>
    %9 = arith.addf %6, %8 : vector<8x512xf32>
    %10 = vector.extract_strided_slice %9 {offsets = [0, 0], sizes = [8, 128], strides = [1, 1]} : vector<8x512xf32> to vector<8x128xf32>
    %11 = arith.negf %10 : vector<8x128xf32>
    %12 = math.exp %11 : vector<8x128xf32>
    %cst_9 = arith.constant 1.000000e+00 : f32
    %13 = vector.broadcast %cst_9 : f32 to vector<8x128xf32>
    %14 = arith.addf %13, %12 : vector<8x128xf32>
    %15 = arith.divf %13, %14 : vector<8x128xf32>
    %16 = vector.extract_strided_slice %9 {offsets = [0, 128], sizes = [8, 128], strides = [1, 1]} : vector<8x512xf32> to vector<8x128xf32>
    %17 = arith.negf %16 : vector<8x128xf32>
    %18 = math.exp %17 : vector<8x128xf32>
    %cst_10 = arith.constant 1.000000e+00 : f32
    %19 = vector.broadcast %cst_10 : f32 to vector<8x128xf32>
    %20 = arith.addf %19, %18 : vector<8x128xf32>
    %21 = arith.divf %19, %20 : vector<8x128xf32>
    %22 = vector.extract_strided_slice %9 {offsets = [0, 256], sizes = [8, 128], strides = [1, 1]} : vector<8x512xf32> to vector<8x128xf32>
    %23 = math.tanh %22 : vector<8x128xf32>
    %24 = vector.extract_strided_slice %9 {offsets = [0, 384], sizes = [8, 128], strides = [1, 1]} : vector<8x512xf32> to vector<8x128xf32>
    %25 = arith.negf %24 : vector<8x128xf32>
    %26 = math.exp %25 : vector<8x128xf32>
    %cst_11 = arith.constant 1.000000e+00 : f32
    %27 = vector.broadcast %cst_11 : f32 to vector<8x128xf32>
    %28 = arith.addf %27, %26 : vector<8x128xf32>
    %29 = arith.divf %27, %28 : vector<8x128xf32>
    %30 = arith.mulf %21, %4 : vector<8x128xf32>
    %31 = arith.mulf %15, %23 : vector<8x128xf32>
    %32 = arith.addf %30, %31 : vector<8x128xf32>
    %33 = math.tanh %32 : vector<8x128xf32>
    %34 = arith.mulf %29, %33 : vector<8x128xf32>
    %c0_12 = arith.constant 0 : index
    %c0_13 = arith.constant 0 : index
    %c0_14 = arith.constant 0 : index
    %35 = vector.load %arg3[%c0_12, %c0_13, %c0_14] : memref<1x8x128xf32, #tpu.memory_space<vmem>>, vector<1x8x128xf32>
    %36 = vector.shape_cast %35 : vector<1x8x128xf32> to vector<8x128xf32>
    %cst_15 = arith.constant 0.000000e+00 : f32
    %37 = vector.broadcast %cst_15 : f32 to vector<8x128xf32>
    %38 = arith.cmpf ogt, %36, %37 : vector<8x128xf32>
    %39 = arith.select %38, %34, %3 : vector<8x128xi1>, vector<8x128xf32>
    %cst_16 = arith.constant 0.000000e+00 : f32
    %40 = vector.broadcast %cst_16 : f32 to vector<8x128xf32>
    %41 = arith.cmpf ogt, %36, %40 : vector<8x128xf32>
    %42 = arith.select %41, %32, %4 : vector<8x128xi1>, vector<8x128xf32>
    %c0_17 = arith.constant 0 : index
    %c0_18 = arith.constant 0 : index
    %43 = vector.load %arg7[%c0_17, %c0_18] : memref<8x128xf32, #tpu.memory_space<vmem>>, vector<8x128xf32>
    tpu.vector_store %arg7[%c0_17, %c0_18], %39 {strides = array<i32>} : memref<8x128xf32, #tpu.memory_space<vmem>>, vector<8x128xf32>,
    %c0_19 = arith.constant 0 : index
    %c0_20 = arith.constant 0 : index
    %44 = vector.load %arg8[%c0_19, %c0_20] : memref<8x128xf32, #tpu.memory_space<vmem>>, vector<8x128xf32>
    tpu.vector_store %arg8[%c0_19, %c0_20], %42 {strides = array<i32>} : memref<8x128xf32, #tpu.memory_space<vmem>>, vector<8x128xf32>,
    %cst_21 = arith.constant 0.000000e+00 : f32
    %45 = vector.broadcast %cst_21 : f32 to vector<8x128xf32>
    %46 = arith.cmpf ogt, %36, %45 : vector<8x128xf32>
    %cst_22 = arith.constant 0.000000e+00 : f32
    %47 = vector.broadcast %cst_22 : f32 to vector<8x128xf32>
    %48 = arith.select %46, %34, %47 : vector<8x128xi1>, vector<8x128xf32>
    %c0_23 = arith.constant 0 : index
    %c0_24 = arith.constant 0 : index
    %c0_25 = arith.constant 0 : index
    %49 = vector.load %arg4[%c0_23, %c0_24, %c0_25] : memref<1x8x128xf32, #tpu.memory_space<vmem>>, vector<1x8x128xf32>
    %50 = vector.shape_cast %49 : vector<1x8x128xf32> to vector<8x128xf32>
    %51 = vector.shape_cast %48 : vector<8x128xf32> to vector<1x8x128xf32>
    tpu.vector_store %arg4[%c0_23, %c0_24, %c0_25], %51 {strides = array<i32>} : memref<1x8x128xf32, #tpu.memory_space<vmem>>, vector<1x8x128xf32>,
    %c0_26 = arith.constant 0 : index
    %c0_27 = arith.constant 0 : index
    %52 = vector.load %arg5[%c0_26, %c0_27] : memref<8x128xf32, #tpu.memory_space<vmem>>, vector<8x128xf32>
    tpu.vector_store %arg5[%c0_26, %c0_27], %39 {strides = array<i32>} : memref<8x128xf32, #tpu.memory_space<vmem>>, vector<8x128xf32>,
    %c0_28 = arith.constant 0 : index
    %c0_29 = arith.constant 0 : index
    %53 = vector.load %arg6[%c0_28, %c0_29] : memref<8x128xf32, #tpu.memory_space<vmem>>, vector<8x128xf32>
    tpu.vector_store %arg6[%c0_28, %c0_29], %42 {strides = array<i32>} : memref<8x128xf32, #tpu.memory_space<vmem>>, vector<8x128xf32>,
    return
  }
  func.func @transform_0(%arg0: i32) -> (i32, i32, i32) {
    %c0_i32 = arith.constant 0 : i32
    %c0_i32_0 = arith.constant 0 : i32
    %c0_i32_1 = arith.constant 0 : i32
    return %arg0, %c0_i32, %c0_i32_0 : i32, i32, i32
  }
  func.func @transform_1(%arg0: i32) -> (i32, i32) {
    %c0_i32 = arith.constant 0 : i32
    %c0_i32_0 = arith.constant 0 : i32
    %c0_i32_1 = arith.constant 0 : i32
    return %c0_i32, %c0_i32_0 : i32, i32
  }
  func.func @transform_2(%arg0: i32) -> (i32, i32, i32) {
    %c0_i32 = arith.constant 0 : i32
    %c0_i32_0 = arith.constant 0 : i32
    %c0_i32_1 = arith.constant 0 : i32
    return %arg0, %c0_i32, %c0_i32_0 : i32, i32, i32
  }
  func.func @transform_3(%arg0: i32) -> (i32, i32, i32) {
    %c0_i32 = arith.constant 0 : i32
    %c0_i32_0 = arith.constant 0 : i32
    %c0_i32_1 = arith.constant 0 : i32
    return %arg0, %c0_i32, %c0_i32_0 : i32, i32, i32
  }
  func.func @transform_4(%arg0: i32) -> (i32, i32) {
    %c0_i32 = arith.constant 0 : i32
    %c0_i32_0 = arith.constant 0 : i32
    %c0_i32_1 = arith.constant 0 : i32
    return %c0_i32, %c0_i32_0 : i32, i32
  }
  func.func @transform_5(%arg0: i32) -> (i32, i32) {
    %c0_i32 = arith.constant 0 : i32
    %c0_i32_0 = arith.constant 0 : i32
    %c0_i32_1 = arith.constant 0 : i32
    return %c0_i32, %c0_i32_0 : i32, i32
  }
}

module attributes {stable_mosaic.version = 11 : i64} {
  func.func @_enc_lstm_kernel(%arg0: i32, %arg1: memref<1x8x512xf32, #tpu.memory_space<vmem>>, %arg2: memref<128x512xf32, #tpu.memory_space<vmem>>, %arg3: memref<1x8x128xf32, #tpu.memory_space<vmem>>, %arg4: memref<1x8x128xf32, #tpu.memory_space<vmem>>, %arg5: memref<8x128xf32, #tpu.memory_space<vmem>>, %arg6: memref<8x128xf32, #tpu.memory_space<vmem>>, %arg7: memref<8x128xf32, #tpu.memory_space<vmem>>, %arg8: memref<8x128xf32, #tpu.memory_space<vmem>>) attributes {dimension_semantics = [#tpu.dimension_semantics<arbitrary>], iteration_bounds = array<i64: 8>, scalar_prefetch = 0 : i64, scratch_operands = 2 : i64, tpu.core_type = #tpu.core_type<tc>, window_params = [{transform_indices = @transform_0, window_bounds = array<i64: 1, 8, 512>}, {pipeline_mode = #tpu.pipeline_mode<synchronous>, transform_indices = @transform_1, window_bounds = array<i64: 128, 512>}, {transform_indices = @transform_2, window_bounds = array<i64: 1, 8, 128>}, {transform_indices = @transform_3, window_bounds = array<i64: 1, 8, 128>}, {pipeline_mode = #tpu.pipeline_mode<synchronous>, transform_indices = @transform_4, window_bounds = array<i64: 8, 128>}, {pipeline_mode = #tpu.pipeline_mode<synchronous>, transform_indices = @transform_5, window_bounds = array<i64: 8, 128>}]} {
    %c0_i32 = arith.constant 0 : i32
    %0 = arith.cmpi eq, %arg0, %c0_i32 : i32
    %1 = arith.extui %0 : i1 to i32
    %c0_i32_0 = arith.constant 0 : i32
    %2 = arith.cmpi ne, %1, %c0_i32_0 : i32
    scf.if %2 {
      %cst_30 = arith.constant 0.000000e+00 : f32
      %54 = vector.broadcast %cst_30 : f32 to vector<8x128xf32>
      %c0_31 = arith.constant 0 : index
      %c0_32 = arith.constant 0 : index
      %55 = vector.load %arg7[%c0_31, %c0_32] : memref<8x128xf32, #tpu.memory_space<vmem>>, vector<8x128xf32>
      tpu.vector_store %arg7[%c0_31, %c0_32], %54 {strides = array<i32>} : memref<8x128xf32, #tpu.memory_space<vmem>>, vector<8x128xf32>,
      %cst_33 = arith.constant 0.000000e+00 : f32
      %56 = vector.broadcast %cst_33 : f32 to vector<8x128xf32>
      %c0_34 = arith.constant 0 : index
      %c0_35 = arith.constant 0 : index
      %57 = vector.load %arg8[%c0_34, %c0_35] : memref<8x128xf32, #tpu.memory_space<vmem>>, vector<8x128xf32>
      tpu.vector_store %arg8[%c0_34, %c0_35], %56 {strides = array<i32>} : memref<8x128xf32, #tpu.memory_space<vmem>>, vector<8x128xf32>,
    } else {
    }
    %c0 = arith.constant 0 : index
    %c0_1 = arith.constant 0 : index
    %3 = vector.load %arg7[%c0, %c0_1] : memref<8x128xf32, #tpu.memory_space<vmem>>, vector<8x128xf32>
    %c0_2 = arith.constant 0 : index
    %c0_3 = arith.constant 0 : index
    %4 = vector.load %arg8[%c0_2, %c0_3] : memref<8x128xf32, #tpu.memory_space<vmem>>, vector<8x128xf32>
    %c0_4 = arith.constant 0 : index
    %c0_5 = arith.constant 0 : index
    %c0_6 = arith.constant 0 : index
    %5 = vector.load %arg1[%c0_4, %c0_5, %c0_6] : memref<1x8x512xf32, #tpu.memory_space<vmem>>, vector<1x8x512xf32>
    %6 = vector.shape_cast %5 : vector<1x8x512xf32> to vector<8x512xf32>
    %c0_7 = arith.constant 0 : index
    %c0_8 = arith.constant 0 : index
    %7 = vector.load %arg2[%c0_7, %c0_8] : memref<128x512xf32, #tpu.memory_space<vmem>>, vector<128x512xf32>
    %cst = arith.constant dense<0.000000e+00> : vector<8x512xf32>
    %8 = tpu.matmul %3, %7, %cst {dimension_numbers = #tpu.dot_dimension_numbers<[1], [0], [0], [1], [0, 0, 1, 1], [], []>} : vector<8x128xf32>, vector<128x512xf32>, vector<8x512xf32> -> vector<8x512xf32>
    %9 = arith.addf %6, %8 : vector<8x512xf32>
    %10 = vector.extract_strided_slice %9 {offsets = [0, 0], sizes = [8, 128], strides = [1, 1]} : vector<8x512xf32> to vector<8x128xf32>
    %11 = arith.negf %10 : vector<8x128xf32>
    %12 = math.exp %11 : vector<8x128xf32>
    %cst_9 = arith.constant 1.000000e+00 : f32
    %13 = vector.broadcast %cst_9 : f32 to vector<8x128xf32>
    %14 = arith.addf %13, %12 : vector<8x128xf32>
    %15 = arith.divf %13, %14 : vector<8x128xf32>
    %16 = vector.extract_strided_slice %9 {offsets = [0, 128], sizes = [8, 128], strides = [1, 1]} : vector<8x512xf32> to vector<8x128xf32>
    %17 = arith.negf %16 : vector<8x128xf32>
    %18 = math.exp %17 : vector<8x128xf32>
    %cst_10 = arith.constant 1.000000e+00 : f32
    %19 = vector.broadcast %cst_10 : f32 to vector<8x128xf32>
    %20 = arith.addf %19, %18 : vector<8x128xf32>
    %21 = arith.divf %19, %20 : vector<8x128xf32>
    %22 = vector.extract_strided_slice %9 {offsets = [0, 256], sizes = [8, 128], strides = [1, 1]} : vector<8x512xf32> to vector<8x128xf32>
    %23 = math.tanh %22 : vector<8x128xf32>
    %24 = vector.extract_strided_slice %9 {offsets = [0, 384], sizes = [8, 128], strides = [1, 1]} : vector<8x512xf32> to vector<8x128xf32>
    %25 = arith.negf %24 : vector<8x128xf32>
    %26 = math.exp %25 : vector<8x128xf32>
    %cst_11 = arith.constant 1.000000e+00 : f32
    %27 = vector.broadcast %cst_11 : f32 to vector<8x128xf32>
    %28 = arith.addf %27, %26 : vector<8x128xf32>
    %29 = arith.divf %27, %28 : vector<8x128xf32>
    %30 = arith.mulf %21, %4 : vector<8x128xf32>
    %31 = arith.mulf %15, %23 : vector<8x128xf32>
    %32 = arith.addf %30, %31 : vector<8x128xf32>
    %33 = math.tanh %32 : vector<8x128xf32>
    %34 = arith.mulf %29, %33 : vector<8x128xf32>
    %c0_12 = arith.constant 0 : index
    %c0_13 = arith.constant 0 : index
    %c0_14 = arith.constant 0 : index
    %35 = vector.load %arg3[%c0_12, %c0_13, %c0_14] : memref<1x8x128xf32, #tpu.memory_space<vmem>>, vector<1x8x128xf32>
    %36 = vector.shape_cast %35 : vector<1x8x128xf32> to vector<8x128xf32>
    %cst_15 = arith.constant 0.000000e+00 : f32
    %37 = vector.broadcast %cst_15 : f32 to vector<8x128xf32>
    %38 = arith.cmpf ogt, %36, %37 : vector<8x128xf32>
    %39 = arith.select %38, %34, %3 : vector<8x128xi1>, vector<8x128xf32>
    %cst_16 = arith.constant 0.000000e+00 : f32
    %40 = vector.broadcast %cst_16 : f32 to vector<8x128xf32>
    %41 = arith.cmpf ogt, %36, %40 : vector<8x128xf32>
    %42 = arith.select %41, %32, %4 : vector<8x128xi1>, vector<8x128xf32>
    %c0_17 = arith.constant 0 : index
    %c0_18 = arith.constant 0 : index
    %43 = vector.load %arg7[%c0_17, %c0_18] : memref<8x128xf32, #tpu.memory_space<vmem>>, vector<8x128xf32>
    tpu.vector_store %arg7[%c0_17, %c0_18], %39 {strides = array<i32>} : memref<8x128xf32, #tpu.memory_space<vmem>>, vector<8x128xf32>,
    %c0_19 = arith.constant 0 : index
    %c0_20 = arith.constant 0 : index
    %44 = vector.load %arg8[%c0_19, %c0_20] : memref<8x128xf32, #tpu.memory_space<vmem>>, vector<8x128xf32>
    tpu.vector_store %arg8[%c0_19, %c0_20], %42 {strides = array<i32>} : memref<8x128xf32, #tpu.memory_space<vmem>>, vector<8x128xf32>,
    %cst_21 = arith.constant 0.000000e+00 : f32
    %45 = vector.broadcast %cst_21 : f32 to vector<8x128xf32>
    %46 = arith.cmpf ogt, %36, %45 : vector<8x128xf32>
    %cst_22 = arith.constant 0.000000e+00 : f32
    %47 = vector.broadcast %cst_22 : f32 to vector<8x128xf32>
    %48 = arith.select %46, %34, %47 : vector<8x128xi1>, vector<8x128xf32>
    %c0_23 = arith.constant 0 : index
    %c0_24 = arith.constant 0 : index
    %c0_25 = arith.constant 0 : index
    %49 = vector.load %arg4[%c0_23, %c0_24, %c0_25] : memref<1x8x128xf32, #tpu.memory_space<vmem>>, vector<1x8x128xf32>
    %50 = vector.shape_cast %49 : vector<1x8x128xf32> to vector<8x128xf32>
    %51 = vector.shape_cast %48 : vector<8x128xf32> to vector<1x8x128xf32>
    tpu.vector_store %arg4[%c0_23, %c0_24, %c0_25], %51 {strides = array<i32>} : memref<1x8x128xf32, #tpu.memory_space<vmem>>, vector<1x8x128xf32>,
    %c0_26 = arith.constant 0 : index
    %c0_27 = arith.constant 0 : index
    %52 = vector.load %arg5[%c0_26, %c0_27] : memref<8x128xf32, #tpu.memory_space<vmem>>, vector<8x128xf32>
    tpu.vector_store %arg5[%c0_26, %c0_27], %39 {strides = array<i32>} : memref<8x128xf32, #tpu.memory_space<vmem>>, vector<8x128xf32>,
    %c0_28 = arith.constant 0 : index
    %c0_29 = arith.constant 0 : index
    %53 = vector.load %arg6[%c0_28, %c0_29] : memref<8x128xf32, #tpu.memory_space<vmem>>, vector<8x128xf32>
    tpu.vector_store %arg6[%c0_28, %c0_29], %42 {strides = array<i32>} : memref<8x128xf32, #tpu.memory_space<vmem>>, vector<8x128xf32>,
    return
  }
  func.func @transform_0(%arg0: i32) -> (i32, i32, i32) {
    %c7_i32 = arith.constant 7 : i32
    %0 = arith.subi %c7_i32, %arg0 : i32
    %c0_i32 = arith.constant 0 : i32
    %c0_i32_0 = arith.constant 0 : i32
    %c0_i32_1 = arith.constant 0 : i32
    return %0, %c0_i32, %c0_i32_0 : i32, i32, i32
  }
  func.func @transform_1(%arg0: i32) -> (i32, i32) {
    %c0_i32 = arith.constant 0 : i32
    %c0_i32_0 = arith.constant 0 : i32
    %c0_i32_1 = arith.constant 0 : i32
    return %c0_i32, %c0_i32_0 : i32, i32
  }
  func.func @transform_2(%arg0: i32) -> (i32, i32, i32) {
    %c7_i32 = arith.constant 7 : i32
    %0 = arith.subi %c7_i32, %arg0 : i32
    %c0_i32 = arith.constant 0 : i32
    %c0_i32_0 = arith.constant 0 : i32
    %c0_i32_1 = arith.constant 0 : i32
    return %0, %c0_i32, %c0_i32_0 : i32, i32, i32
  }
  func.func @transform_3(%arg0: i32) -> (i32, i32, i32) {
    %c7_i32 = arith.constant 7 : i32
    %0 = arith.subi %c7_i32, %arg0 : i32
    %c0_i32 = arith.constant 0 : i32
    %c0_i32_0 = arith.constant 0 : i32
    %c0_i32_1 = arith.constant 0 : i32
    return %0, %c0_i32, %c0_i32_0 : i32, i32, i32
  }
  func.func @transform_4(%arg0: i32) -> (i32, i32) {
    %c0_i32 = arith.constant 0 : i32
    %c0_i32_0 = arith.constant 0 : i32
    %c0_i32_1 = arith.constant 0 : i32
    return %c0_i32, %c0_i32_0 : i32, i32
  }
  func.func @transform_5(%arg0: i32) -> (i32, i32) {
    %c0_i32 = arith.constant 0 : i32
    %c0_i32_0 = arith.constant 0 : i32
    %c0_i32_1 = arith.constant 0 : i32
    return %c0_i32, %c0_i32_0 : i32, i32
  }
}

module attributes {stable_mosaic.version = 11 : i64} {
  func.func @_decoder_kernel(%arg0: i32, %arg1: memref<1x8x128xf32, #tpu.memory_space<vmem>>, %arg2: memref<2x8x128xf32, #tpu.memory_space<vmem>>, %arg3: memref<2x8x128xf32, #tpu.memory_space<vmem>>, %arg4: memref<8x128x128xf32, #tpu.memory_space<vmem>>, %arg5: memref<8x1x128xf32, #tpu.memory_space<vmem>>, %arg6: memref<2x128x512xf32, #tpu.memory_space<vmem>>, %arg7: memref<2x128x512xf32, #tpu.memory_space<vmem>>, %arg8: memref<2x1x512xf32, #tpu.memory_space<vmem>>, %arg9: memref<128x128xf32, #tpu.memory_space<vmem>>, %arg10: memref<128x128xf32, #tpu.memory_space<vmem>>, %arg11: memref<1x128xf32, #tpu.memory_space<vmem>>, %arg12: memref<1x8x128xf32, #tpu.memory_space<vmem>>, %arg13: memref<2x8x128xf32, #tpu.memory_space<vmem>>, %arg14: memref<2x8x128xf32, #tpu.memory_space<vmem>>, %arg15: memref<8x128xf32, #tpu.memory_space<vmem>>) attributes {dimension_semantics = [#tpu.dimension_semantics<arbitrary>], iteration_bounds = array<i64: 5>, scalar_prefetch = 0 : i64, scratch_operands = 3 : i64, tpu.core_type = #tpu.core_type<tc>, window_params = [{transform_indices = @transform_0, window_bounds = array<i64: 1, 8, 128>}, {pipeline_mode = #tpu.pipeline_mode<synchronous>, transform_indices = @transform_1, window_bounds = array<i64: 2, 8, 128>}, {pipeline_mode = #tpu.pipeline_mode<synchronous>, transform_indices = @transform_2, window_bounds = array<i64: 2, 8, 128>}, {pipeline_mode = #tpu.pipeline_mode<synchronous>, transform_indices = @transform_3, window_bounds = array<i64: 8, 128, 128>}, {pipeline_mode = #tpu.pipeline_mode<synchronous>, transform_indices = @transform_4, window_bounds = array<i64: 8, 1, 128>}, {pipeline_mode = #tpu.pipeline_mode<synchronous>, transform_indices = @transform_5, window_bounds = array<i64: 2, 128, 512>}, {pipeline_mode = #tpu.pipeline_mode<synchronous>, transform_indices = @transform_6, window_bounds = array<i64: 2, 128, 512>}, {pipeline_mode = #tpu.pipeline_mode<synchronous>, transform_indices = @transform_7, window_bounds = array<i64: 2, 1, 512>}, {pipeline_mode = #tpu.pipeline_mode<synchronous>, transform_indices = @transform_8, window_bounds = array<i64: 128, 128>}, {pipeline_mode = #tpu.pipeline_mode<synchronous>, transform_indices = @transform_9, window_bounds = array<i64: 128, 128>}, {pipeline_mode = #tpu.pipeline_mode<synchronous>, transform_indices = @transform_10, window_bounds = array<i64: 1, 128>}, {transform_indices = @transform_11, window_bounds = array<i64: 1, 8, 128>}]} {
    %c0_i32 = arith.constant 0 : i32
    %0 = arith.cmpi eq, %arg0, %c0_i32 : i32
    %1 = arith.extui %0 : i1 to i32
    %c0_i32_0 = arith.constant 0 : i32
    %2 = arith.cmpi ne, %1, %c0_i32_0 : i32
    scf.if %2 {
      %c0_80 = arith.constant 0 : index
      %c0_81 = arith.constant 0 : index
      %c0_82 = arith.constant 0 : index
      %131 = vector.load %arg2[%c0_80, %c0_81, %c0_82] : memref<2x8x128xf32, #tpu.memory_space<vmem>>, vector<2x8x128xf32>
      %c0_83 = arith.constant 0 : index
      %c0_84 = arith.constant 0 : index
      %c0_85 = arith.constant 0 : index
      %132 = vector.load %arg13[%c0_83, %c0_84, %c0_85] : memref<2x8x128xf32, #tpu.memory_space<vmem>>, vector<2x8x128xf32>
      tpu.vector_store %arg13[%c0_83, %c0_84, %c0_85], %131 {strides = array<i32>} : memref<2x8x128xf32, #tpu.memory_space<vmem>>, vector<2x8x128xf32>,
      %c0_86 = arith.constant 0 : index
      %c0_87 = arith.constant 0 : index
      %c0_88 = arith.constant 0 : index
      %133 = vector.load %arg3[%c0_86, %c0_87, %c0_88] : memref<2x8x128xf32, #tpu.memory_space<vmem>>, vector<2x8x128xf32>
      %c0_89 = arith.constant 0 : index
      %c0_90 = arith.constant 0 : index
      %c0_91 = arith.constant 0 : index
      %134 = vector.load %arg14[%c0_89, %c0_90, %c0_91] : memref<2x8x128xf32, #tpu.memory_space<vmem>>, vector<2x8x128xf32>
      tpu.vector_store %arg14[%c0_89, %c0_90, %c0_91], %133 {strides = array<i32>} : memref<2x8x128xf32, #tpu.memory_space<vmem>>, vector<2x8x128xf32>,
      %cst_92 = arith.constant 0.000000e+00 : f32
      %135 = vector.broadcast %cst_92 : f32 to vector<8x128xf32>
      %c0_93 = arith.constant 0 : index
      %c0_94 = arith.constant 0 : index
      %136 = vector.load %arg15[%c0_93, %c0_94] : memref<8x128xf32, #tpu.memory_space<vmem>>, vector<8x128xf32>
      tpu.vector_store %arg15[%c0_93, %c0_94], %135 {strides = array<i32>} : memref<8x128xf32, #tpu.memory_space<vmem>>, vector<8x128xf32>,
    } else {
    }
    %c0 = arith.constant 0 : index
    %c0_1 = arith.constant 0 : index
    %c0_2 = arith.constant 0 : index
    %3 = vector.load %arg1[%c0, %c0_1, %c0_2] : memref<1x8x128xf32, #tpu.memory_space<vmem>>, vector<1x8x128xf32>
    %4 = vector.shape_cast %3 : vector<1x8x128xf32> to vector<8x128xf32>
    %c0_3 = arith.constant 0 : index
    %c0_4 = arith.constant 0 : index
    %5 = vector.load %arg15[%c0_3, %c0_4] : memref<8x128xf32, #tpu.memory_space<vmem>>, vector<8x128xf32>
    %6 = arith.addf %4, %5 : vector<8x128xf32>
    %c0_5 = arith.constant 0 : index
    %c0_6 = arith.constant 0 : index
    %c0_7 = arith.constant 0 : index
    %7 = vector.load %arg13[%c0_5, %c0_6, %c0_7] : memref<2x8x128xf32, #tpu.memory_space<vmem>>, vector<1x8x128xf32>
    %8 = vector.shape_cast %7 : vector<1x8x128xf32> to vector<8x128xf32>
    %c0_8 = arith.constant 0 : index
    %c0_9 = arith.constant 0 : index
    %c0_10 = arith.constant 0 : index
    %9 = vector.load %arg14[%c0_8, %c0_9, %c0_10] : memref<2x8x128xf32, #tpu.memory_space<vmem>>, vector<1x8x128xf32>
    %10 = vector.shape_cast %9 : vector<1x8x128xf32> to vector<8x128xf32>
    %c0_11 = arith.constant 0 : index
    %c0_12 = arith.constant 0 : index
    %c0_13 = arith.constant 0 : index
    %11 = vector.load %arg6[%c0_11, %c0_12, %c0_13] : memref<2x128x512xf32, #tpu.memory_space<vmem>>, vector<1x128x512xf32>
    %12 = vector.shape_cast %11 : vector<1x128x512xf32> to vector<128x512xf32>
    %cst = arith.constant dense<0.000000e+00> : vector<8x512xf32>
    %13 = tpu.matmul %6, %12, %cst {dimension_numbers = #tpu.dot_dimension_numbers<[1], [0], [0], [1], [0, 0, 1, 1], [], []>} : vector<8x128xf32>, vector<128x512xf32>, vector<8x512xf32> -> vector<8x512xf32>
    %c0_14 = arith.constant 0 : index
    %c0_15 = arith.constant 0 : index
    %c0_16 = arith.constant 0 : index
    %14 = vector.load %arg7[%c0_14, %c0_15, %c0_16] : memref<2x128x512xf32, #tpu.memory_space<vmem>>, vector<1x128x512xf32>
    %15 = vector.shape_cast %14 : vector<1x128x512xf32> to vector<128x512xf32>
    %cst_17 = arith.constant dense<0.000000e+00> : vector<8x512xf32>
    %16 = tpu.matmul %8, %15, %cst_17 {dimension_numbers = #tpu.dot_dimension_numbers<[1], [0], [0], [1], [0, 0, 1, 1], [], []>} : vector<8x128xf32>, vector<128x512xf32>, vector<8x512xf32> -> vector<8x512xf32>
    %17 = arith.addf %13, %16 : vector<8x512xf32>
    %c0_18 = arith.constant 0 : index
    %c0_19 = arith.constant 0 : index
    %c0_20 = arith.constant 0 : index
    %18 = vector.load %arg8[%c0_18, %c0_19, %c0_20] : memref<2x1x512xf32, #tpu.memory_space<vmem>>, vector<1x1x512xf32>
    %19 = vector.shape_cast %18 : vector<1x1x512xf32> to vector<1x512xf32>
    %20 = vector.broadcast %19 : vector<1x512xf32> to vector<8x512xf32>
    %21 = arith.addf %17, %20 : vector<8x512xf32>
    %22 = vector.extract_strided_slice %21 {offsets = [0, 0], sizes = [8, 128], strides = [1, 1]} : vector<8x512xf32> to vector<8x128xf32>
    %23 = arith.negf %22 : vector<8x128xf32>
    %24 = math.exp %23 : vector<8x128xf32>
    %cst_21 = arith.constant 1.000000e+00 : f32
    %25 = vector.broadcast %cst_21 : f32 to vector<8x128xf32>
    %26 = arith.addf %25, %24 : vector<8x128xf32>
    %27 = arith.divf %25, %26 : vector<8x128xf32>
    %28 = vector.extract_strided_slice %21 {offsets = [0, 128], sizes = [8, 128], strides = [1, 1]} : vector<8x512xf32> to vector<8x128xf32>
    %29 = arith.negf %28 : vector<8x128xf32>
    %30 = math.exp %29 : vector<8x128xf32>
    %cst_22 = arith.constant 1.000000e+00 : f32
    %31 = vector.broadcast %cst_22 : f32 to vector<8x128xf32>
    %32 = arith.addf %31, %30 : vector<8x128xf32>
    %33 = arith.divf %31, %32 : vector<8x128xf32>
    %34 = vector.extract_strided_slice %21 {offsets = [0, 256], sizes = [8, 128], strides = [1, 1]} : vector<8x512xf32> to vector<8x128xf32>
    %35 = math.tanh %34 : vector<8x128xf32>
    %36 = vector.extract_strided_slice %21 {offsets = [0, 384], sizes = [8, 128], strides = [1, 1]} : vector<8x512xf32> to vector<8x128xf32>
    %37 = arith.negf %36 : vector<8x128xf32>
    %38 = math.exp %37 : vector<8x128xf32>
    %cst_23 = arith.constant 1.000000e+00 : f32
    %39 = vector.broadcast %cst_23 : f32 to vector<8x128xf32>
    %40 = arith.addf %39, %38 : vector<8x128xf32>
    %41 = arith.divf %39, %40 : vector<8x128xf32>
    %42 = arith.mulf %33, %10 : vector<8x128xf32>
    %43 = arith.mulf %27, %35 : vector<8x128xf32>
    %44 = arith.addf %42, %43 : vector<8x128xf32>
    %45 = math.tanh %44 : vector<8x128xf32>
    %46 = arith.mulf %41, %45 : vector<8x128xf32>
    %c0_24 = arith.constant 0 : index
    %c0_25 = arith.constant 0 : index
    %c0_26 = arith.constant 0 : index
    %47 = vector.load %arg13[%c0_24, %c0_25, %c0_26] : memref<2x8x128xf32, #tpu.memory_space<vmem>>, vector<1x8x128xf32>
    %48 = vector.shape_cast %47 : vector<1x8x128xf32> to vector<8x128xf32>
    %49 = vector.shape_cast %46 : vector<8x128xf32> to vector<1x8x128xf32>
    tpu.vector_store %arg13[%c0_24, %c0_25, %c0_26], %49 {strides = array<i32>} : memref<2x8x128xf32, #tpu.memory_space<vmem>>, vector<1x8x128xf32>,
    %c0_27 = arith.constant 0 : index
    %c0_28 = arith.constant 0 : index
    %c0_29 = arith.constant 0 : index
    %50 = vector.load %arg14[%c0_27, %c0_28, %c0_29] : memref<2x8x128xf32, #tpu.memory_space<vmem>>, vector<1x8x128xf32>
    %51 = vector.shape_cast %50 : vector<1x8x128xf32> to vector<8x128xf32>
    %52 = vector.shape_cast %44 : vector<8x128xf32> to vector<1x8x128xf32>
    tpu.vector_store %arg14[%c0_27, %c0_28, %c0_29], %52 {strides = array<i32>} : memref<2x8x128xf32, #tpu.memory_space<vmem>>, vector<1x8x128xf32>,
    %c1 = arith.constant 1 : index
    %c0_30 = arith.constant 0 : index
    %c0_31 = arith.constant 0 : index
    %53 = vector.load %arg13[%c1, %c0_30, %c0_31] : memref<2x8x128xf32, #tpu.memory_space<vmem>>, vector<1x8x128xf32>
    %54 = vector.shape_cast %53 : vector<1x8x128xf32> to vector<8x128xf32>
    %c1_32 = arith.constant 1 : index
    %c0_33 = arith.constant 0 : index
    %c0_34 = arith.constant 0 : index
    %55 = vector.load %arg14[%c1_32, %c0_33, %c0_34] : memref<2x8x128xf32, #tpu.memory_space<vmem>>, vector<1x8x128xf32>
    %56 = vector.shape_cast %55 : vector<1x8x128xf32> to vector<8x128xf32>
    %c1_35 = arith.constant 1 : index
    %c0_36 = arith.constant 0 : index
    %c0_37 = arith.constant 0 : index
    %57 = vector.load %arg6[%c1_35, %c0_36, %c0_37] : memref<2x128x512xf32, #tpu.memory_space<vmem>>, vector<1x128x512xf32>
    %58 = vector.shape_cast %57 : vector<1x128x512xf32> to vector<128x512xf32>
    %cst_38 = arith.constant dense<0.000000e+00> : vector<8x512xf32>
    %59 = tpu.matmul %46, %58, %cst_38 {dimension_numbers = #tpu.dot_dimension_numbers<[1], [0], [0], [1], [0, 0, 1, 1], [], []>} : vector<8x128xf32>, vector<128x512xf32>, vector<8x512xf32> -> vector<8x512xf32>
    %c1_39 = arith.constant 1 : index
    %c0_40 = arith.constant 0 : index
    %c0_41 = arith.constant 0 : index
    %60 = vector.load %arg7[%c1_39, %c0_40, %c0_41] : memref<2x128x512xf32, #tpu.memory_space<vmem>>, vector<1x128x512xf32>
    %61 = vector.shape_cast %60 : vector<1x128x512xf32> to vector<128x512xf32>
    %cst_42 = arith.constant dense<0.000000e+00> : vector<8x512xf32>
    %62 = tpu.matmul %54, %61, %cst_42 {dimension_numbers = #tpu.dot_dimension_numbers<[1], [0], [0], [1], [0, 0, 1, 1], [], []>} : vector<8x128xf32>, vector<128x512xf32>, vector<8x512xf32> -> vector<8x512xf32>
    %63 = arith.addf %59, %62 : vector<8x512xf32>
    %c1_43 = arith.constant 1 : index
    %c0_44 = arith.constant 0 : index
    %c0_45 = arith.constant 0 : index
    %64 = vector.load %arg8[%c1_43, %c0_44, %c0_45] : memref<2x1x512xf32, #tpu.memory_space<vmem>>, vector<1x1x512xf32>
    %65 = vector.shape_cast %64 : vector<1x1x512xf32> to vector<1x512xf32>
    %66 = vector.broadcast %65 : vector<1x512xf32> to vector<8x512xf32>
    %67 = arith.addf %63, %66 : vector<8x512xf32>
    %68 = vector.extract_strided_slice %67 {offsets = [0, 0], sizes = [8, 128], strides = [1, 1]} : vector<8x512xf32> to vector<8x128xf32>
    %69 = arith.negf %68 : vector<8x128xf32>
    %70 = math.exp %69 : vector<8x128xf32>
    %cst_46 = arith.constant 1.000000e+00 : f32
    %71 = vector.broadcast %cst_46 : f32 to vector<8x128xf32>
    %72 = arith.addf %71, %70 : vector<8x128xf32>
    %73 = arith.divf %71, %72 : vector<8x128xf32>
    %74 = vector.extract_strided_slice %67 {offsets = [0, 128], sizes = [8, 128], strides = [1, 1]} : vector<8x512xf32> to vector<8x128xf32>
    %75 = arith.negf %74 : vector<8x128xf32>
    %76 = math.exp %75 : vector<8x128xf32>
    %cst_47 = arith.constant 1.000000e+00 : f32
    %77 = vector.broadcast %cst_47 : f32 to vector<8x128xf32>
    %78 = arith.addf %77, %76 : vector<8x128xf32>
    %79 = arith.divf %77, %78 : vector<8x128xf32>
    %80 = vector.extract_strided_slice %67 {offsets = [0, 256], sizes = [8, 128], strides = [1, 1]} : vector<8x512xf32> to vector<8x128xf32>
    %81 = math.tanh %80 : vector<8x128xf32>
    %82 = vector.extract_strided_slice %67 {offsets = [0, 384], sizes = [8, 128], strides = [1, 1]} : vector<8x512xf32> to vector<8x128xf32>
    %83 = arith.negf %82 : vector<8x128xf32>
    %84 = math.exp %83 : vector<8x128xf32>
    %cst_48 = arith.constant 1.000000e+00 : f32
    %85 = vector.broadcast %cst_48 : f32 to vector<8x128xf32>
    %86 = arith.addf %85, %84 : vector<8x128xf32>
    %87 = arith.divf %85, %86 : vector<8x128xf32>
    %88 = arith.mulf %79, %56 : vector<8x128xf32>
    %89 = arith.mulf %73, %81 : vector<8x128xf32>
    %90 = arith.addf %88, %89 : vector<8x128xf32>
    %91 = math.tanh %90 : vector<8x128xf32>
    %92 = arith.mulf %87, %91 : vector<8x128xf32>
    %c1_49 = arith.constant 1 : index
    %c0_50 = arith.constant 0 : index
    %c0_51 = arith.constant 0 : index
    %93 = vector.load %arg13[%c1_49, %c0_50, %c0_51] : memref<2x8x128xf32, #tpu.memory_space<vmem>>, vector<1x8x128xf32>
    %94 = vector.shape_cast %93 : vector<1x8x128xf32> to vector<8x128xf32>
    %95 = vector.shape_cast %92 : vector<8x128xf32> to vector<1x8x128xf32>
    tpu.vector_store %arg13[%c1_49, %c0_50, %c0_51], %95 {strides = array<i32>} : memref<2x8x128xf32, #tpu.memory_space<vmem>>, vector<1x8x128xf32>,
    %c1_52 = arith.constant 1 : index
    %c0_53 = arith.constant 0 : index
    %c0_54 = arith.constant 0 : index
    %96 = vector.load %arg14[%c1_52, %c0_53, %c0_54] : memref<2x8x128xf32, #tpu.memory_space<vmem>>, vector<1x8x128xf32>
    %97 = vector.shape_cast %96 : vector<1x8x128xf32> to vector<8x128xf32>
    %98 = vector.shape_cast %90 : vector<8x128xf32> to vector<1x8x128xf32>
    tpu.vector_store %arg14[%c1_52, %c0_53, %c0_54], %98 {strides = array<i32>} : memref<2x8x128xf32, #tpu.memory_space<vmem>>, vector<1x8x128xf32>,
    %c0_55 = arith.constant 0 : index
    %c0_56 = arith.constant 0 : index
    %c0_57 = arith.constant 0 : index
    %99 = vector.load %arg4[%c0_55, %c0_56, %c0_57] : memref<8x128x128xf32, #tpu.memory_space<vmem>>, vector<8x128x128xf32>
    %c0_58 = arith.constant 0 : index
    %c0_59 = arith.constant 0 : index
    %c0_60 = arith.constant 0 : index
    %100 = vector.load %arg5[%c0_58, %c0_59, %c0_60] : memref<8x1x128xf32, #tpu.memory_space<vmem>>, vector<8x1x128xf32>
    %101 = vector.shape_cast %92 : vector<8x128xf32> to vector<8x1x128xf32>
    "tpu.trace_start"() <{level = 10 : i32, message = "bqh,bsh->bqs"}> : () -> ()
    %cst_61 = arith.constant dense<0.000000e+00> : vector<8x1x128xf32>
    %102 = tpu.matmul %101, %99, %cst_61 {dimension_numbers = #tpu.dot_dimension_numbers<[2], [2], [1], [1], [0, 0, 0, 1, 1, 1], [0], [0]>} : vector<8x1x128xf32>, vector<8x128x128xf32>, vector<8x1x128xf32> -> vector<8x1x128xf32>
    %cst_62 = arith.constant 0.000000e+00 : f32
    "tpu.trace_stop"() : () -> ()
    %103 = vector.broadcast %cst_62 : f32 to vector<8x1x128xf32>
    %104 = arith.cmpf ogt, %100, %103 : vector<8x1x128xf32>
    %cst_63 = arith.constant -1.000000e+30 : f32
    %105 = vector.broadcast %cst_63 : f32 to vector<8x1x128xf32>
    %106 = arith.select %104, %102, %105 : vector<8x1x128xi1>, vector<8x1x128xf32>
    %cst_64 = arith.constant dense<0xFF800000> : vector<8x1xf32>
    %107 = vector.multi_reduction <maximumf>, %106, %cst_64 [2] : vector<8x1x128xf32> to vector<8x1xf32>
    %108 = vector.shape_cast %107 : vector<8x1xf32> to vector<8x1x1xf32>
    %109 = vector.broadcast %108 : vector<8x1x1xf32> to vector<8x1x128xf32>
    %110 = arith.subf %106, %109 : vector<8x1x128xf32>
    %111 = math.exp %110 : vector<8x1x128xf32>
    %cst_65 = arith.constant dense<0.000000e+00> : vector<8x1xf32>
    %112 = vector.multi_reduction <add>, %111, %cst_65 [2] : vector<8x1x128xf32> to vector<8x1xf32>
    %113 = vector.shape_cast %112 : vector<8x1xf32> to vector<8x1x1xf32>
    %114 = tpu.reciprocal %113 {approx = true} : vector<8x1x1xf32> -> vector<8x1x1xf32>
    %115 = vector.broadcast %114 : vector<8x1x1xf32> to vector<8x1x128xf32>
    %116 = arith.mulf %111, %115 : vector<8x1x128xf32>
    "tpu.trace_start"() <{level = 10 : i32, message = "bqs,bsh->bqh"}> : () -> ()
    %cst_66 = arith.constant dense<0.000000e+00> : vector<8x1x128xf32>
    %117 = tpu.matmul %116, %99, %cst_66 {dimension_numbers = #tpu.dot_dimension_numbers<[2], [1], [1], [2], [0, 0, 0, 1, 1, 2], [0], [0]>} : vector<8x1x128xf32>, vector<8x128x128xf32>, vector<8x1x128xf32> -> vector<8x1x128xf32>
    "tpu.trace_stop"() : () -> ()
    %118 = vector.shape_cast %117 : vector<8x1x128xf32> to vector<8x128xf32>
    %c0_67 = arith.constant 0 : index
    %c0_68 = arith.constant 0 : index
    %119 = vector.load %arg15[%c0_67, %c0_68] : memref<8x128xf32, #tpu.memory_space<vmem>>, vector<8x128xf32>
    tpu.vector_store %arg15[%c0_67, %c0_68], %118 {strides = array<i32>} : memref<8x128xf32, #tpu.memory_space<vmem>>, vector<8x128xf32>,
    %c0_69 = arith.constant 0 : index
    %c0_70 = arith.constant 0 : index
    %120 = vector.load %arg9[%c0_69, %c0_70] : memref<128x128xf32, #tpu.memory_space<vmem>>, vector<128x128xf32>
    %cst_71 = arith.constant dense<0.000000e+00> : vector<8x128xf32>
    %121 = tpu.matmul %92, %120, %cst_71 {dimension_numbers = #tpu.dot_dimension_numbers<[1], [0], [0], [1], [0, 0, 1, 1], [], []>} : vector<8x128xf32>, vector<128x128xf32>, vector<8x128xf32> -> vector<8x128xf32>
    %c0_72 = arith.constant 0 : index
    %c0_73 = arith.constant 0 : index
    %122 = vector.load %arg10[%c0_72, %c0_73] : memref<128x128xf32, #tpu.memory_space<vmem>>, vector<128x128xf32>
    %cst_74 = arith.constant dense<0.000000e+00> : vector<8x128xf32>
    %123 = tpu.matmul %118, %122, %cst_74 {dimension_numbers = #tpu.dot_dimension_numbers<[1], [0], [0], [1], [0, 0, 1, 1], [], []>} : vector<8x128xf32>, vector<128x128xf32>, vector<8x128xf32> -> vector<8x128xf32>
    %124 = arith.addf %121, %123 : vector<8x128xf32>
    %c0_75 = arith.constant 0 : index
    %c0_76 = arith.constant 0 : index
    %125 = vector.load %arg11[%c0_75, %c0_76] : memref<1x128xf32, #tpu.memory_space<vmem>>, vector<1x128xf32>
    %126 = vector.broadcast %125 : vector<1x128xf32> to vector<8x128xf32>
    %127 = arith.addf %124, %126 : vector<8x128xf32>
    %c0_77 = arith.constant 0 : index
    %c0_78 = arith.constant 0 : index
    %c0_79 = arith.constant 0 : index
    %128 = vector.load %arg12[%c0_77, %c0_78, %c0_79] : memref<1x8x128xf32, #tpu.memory_space<vmem>>, vector<1x8x128xf32>
    %129 = vector.shape_cast %128 : vector<1x8x128xf32> to vector<8x128xf32>
    %130 = vector.shape_cast %127 : vector<8x128xf32> to vector<1x8x128xf32>
    tpu.vector_store %arg12[%c0_77, %c0_78, %c0_79], %130 {strides = array<i32>} : memref<1x8x128xf32, #tpu.memory_space<vmem>>, vector<1x8x128xf32>,
    return
  }
  func.func @transform_0(%arg0: i32) -> (i32, i32, i32) {
    %c0_i32 = arith.constant 0 : i32
    %c0_i32_0 = arith.constant 0 : i32
    %c0_i32_1 = arith.constant 0 : i32
    return %arg0, %c0_i32, %c0_i32_0 : i32, i32, i32
  }
  func.func @transform_1(%arg0: i32) -> (i32, i32, i32) {
    %c0_i32 = arith.constant 0 : i32
    %c0_i32_0 = arith.constant 0 : i32
    %c0_i32_1 = arith.constant 0 : i32
    %c0_i32_2 = arith.constant 0 : i32
    return %c0_i32, %c0_i32_0, %c0_i32_1 : i32, i32, i32
  }
  func.func @transform_2(%arg0: i32) -> (i32, i32, i32) {
    %c0_i32 = arith.constant 0 : i32
    %c0_i32_0 = arith.constant 0 : i32
    %c0_i32_1 = arith.constant 0 : i32
    %c0_i32_2 = arith.constant 0 : i32
    return %c0_i32, %c0_i32_0, %c0_i32_1 : i32, i32, i32
  }
  func.func @transform_3(%arg0: i32) -> (i32, i32, i32) {
    %c0_i32 = arith.constant 0 : i32
    %c0_i32_0 = arith.constant 0 : i32
    %c0_i32_1 = arith.constant 0 : i32
    %c0_i32_2 = arith.constant 0 : i32
    return %c0_i32, %c0_i32_0, %c0_i32_1 : i32, i32, i32
  }
  func.func @transform_4(%arg0: i32) -> (i32, i32, i32) {
    %c0_i32 = arith.constant 0 : i32
    %c0_i32_0 = arith.constant 0 : i32
    %c0_i32_1 = arith.constant 0 : i32
    %c0_i32_2 = arith.constant 0 : i32
    return %c0_i32, %c0_i32_0, %c0_i32_1 : i32, i32, i32
  }
  func.func @transform_5(%arg0: i32) -> (i32, i32, i32) {
    %c0_i32 = arith.constant 0 : i32
    %c0_i32_0 = arith.constant 0 : i32
    %c0_i32_1 = arith.constant 0 : i32
    %c0_i32_2 = arith.constant 0 : i32
    return %c0_i32, %c0_i32_0, %c0_i32_1 : i32, i32, i32
  }
  func.func @transform_6(%arg0: i32) -> (i32, i32, i32) {
    %c0_i32 = arith.constant 0 : i32
    %c0_i32_0 = arith.constant 0 : i32
    %c0_i32_1 = arith.constant 0 : i32
    %c0_i32_2 = arith.constant 0 : i32
    return %c0_i32, %c0_i32_0, %c0_i32_1 : i32, i32, i32
  }
  func.func @transform_7(%arg0: i32) -> (i32, i32, i32) {
    %c0_i32 = arith.constant 0 : i32
    %c0_i32_0 = arith.constant 0 : i32
    %c0_i32_1 = arith.constant 0 : i32
    %c0_i32_2 = arith.constant 0 : i32
    return %c0_i32, %c0_i32_0, %c0_i32_1 : i32, i32, i32
  }
  func.func @transform_8(%arg0: i32) -> (i32, i32) {
    %c0_i32 = arith.constant 0 : i32
    %c0_i32_0 = arith.constant 0 : i32
    %c0_i32_1 = arith.constant 0 : i32
    return %c0_i32, %c0_i32_0 : i32, i32
  }
  func.func @transform_9(%arg0: i32) -> (i32, i32) {
    %c0_i32 = arith.constant 0 : i32
    %c0_i32_0 = arith.constant 0 : i32
    %c0_i32_1 = arith.constant 0 : i32
    return %c0_i32, %c0_i32_0 : i32, i32
  }
  func.func @transform_10(%arg0: i32) -> (i32, i32) {
    %c0_i32 = arith.constant 0 : i32
    %c0_i32_0 = arith.constant 0 : i32
    %c0_i32_1 = arith.constant 0 : i32
    return %c0_i32, %c0_i32_0 : i32, i32
  }
  func.func @transform_11(%arg0: i32) -> (i32, i32, i32) {
    %c0_i32 = arith.constant 0 : i32
    %c0_i32_0 = arith.constant 0 : i32
    %c0_i32_1 = arith.constant 0 : i32
    return %arg0, %c0_i32, %c0_i32_0 : i32, i32, i32
  }
}

</mosaic_0001>

<bundles_post_ra>
// kernel: forward.5
= control target key start
LH: loop header
LB: loop body
LE: loop exit
PB: predicated region body
PF: predicated region fallthrough
CT: control target
= control target key end

     0   :  { %s625_s18 = smov 0   ;;  %s865_s0 = inlined_call_operand.vmem [shape: f32[8,8,512], index: 0, kind: input, shape index: {}]   ;;  %s866_s1 = inlined_call_operand.vmem [shape: f32[128,512], index: 1, kind: input, shape index: {}]   ;;  %s867_s2 = inlined_call_operand.vmem [shape: f32[8,8,128], index: 2, kind: input, shape index: {}]   ;;  %s868_s3 = inlined_call_operand.vmem [shape: f32[8,8,128], index: 3, kind: output, shape index: {0}]   ;;  %s869_s4 = inlined_call_operand.vmem [shape: f32[8,128], index: 4, kind: output, shape index: {1}]   ;;  %s870_s5 = inlined_call_operand.vmem [shape: f32[8,128], index: 5, kind: output, shape index: {2}]  }
   0x1 LB: > { %s545_s19 = sadd.s32 4294967295, %s592_s18   ;;  %p549_p0 = scmp.ge.s32.totalorder %s592_s18, 1  ;;  %s592_s18 = sphi %s625_s18, %s16_s18  }
   0x2   : > { %p191_p1 = scmp.lt.s32.totalorder %s592_s18, 9 }
   0x4   : > { %p192_p2 = pnand %p549_p0, %p191_p1 }
   0x5   : > { %p222_p3 = scmp.lt.s32.totalorder (!%p192_p2), %s545_s19, 7  ;;  %p554_p4 = scmp.ne.s32.totalorder (!%p192_p2), %s545_s19, 0 }
   0x6   : > { %195 = sbr.rel (%p192_p2) target bundleno = 226 (0xe2), region = 32 }
   0xb   : > { %s223_s20 = scalar_select %p222_p3, %s545_s19, 7 }
   0xc   : > { %238 = sbr.rel (%p554_p4) target bundleno = 20 (0x14), region = 36 }
   0xd   : > { %s560_s21 = sshll.u32 %s223_s20, 5  ;;  %s552_s22 = sshll.u32 %s223_s20, 3 }
   0xe   : > { %s636_s25 = scalar_lea.vmem %s865_s0, %s560_s21  ;;  %s641_s28 = scalar_lea.vmem %s867_s2, %s552_s22 }
   0xf   : > { %s646_s6 = scalar_lea.vmem %s868_s3, %s552_s22 }
  0x11   : > { %v594_v0 = vmov 0.0  }
  0x12   : > { %239 = vst [vmem:[#allocation2] sm:$0xff] %v594_v0 }
  0x13   : > { %240 = vst [vmem:[#allocation3] sm:$0xff] %v594_v0 }
  0x14 PF: > { %v307_v1 = vld [vmem:[%s866_s1 + $0x1e0] sm:$0xff]  ;;  %v308_v2 = vld [vmem:[%s866_s1 + $0x1e8] sm:$0xff]  ;;  %v310_v3 = vld [vmem:[%s866_s1 + $0x1f8] sm:$0xff] }
  0x15   : > { %311 = vmatpush.msra.mxu0 %v307_v1  ;;  %331 = vmatpush.msra.mxu1 %v308_v2  ;;  %v303_v4 = vld [vmem:[%s866_s1 + $0x1c0] sm:$0xff]  ;;  %v304_v5 = vld [vmem:[%s866_s1 + $0x1c8] sm:$0xff]  ;;  %v306_v6 = vld [vmem:[%s866_s1 + $0x1d8] sm:$0xff] }
  0x16   : > { %371 = vmatpush.msra.mxu3 %v310_v3  ;;  %v299_v7 = vld [vmem:[%s866_s1 + $0x1a0] sm:$0xff]  ;;  %v300_v8 = vld [vmem:[%s866_s1 + $0x1a8] sm:$0xff]  ;;  %v302_v9 = vld [vmem:[%s866_s1 + $0x1b8] sm:$0xff] }
  0x17   : > { %312 = vmatpush.msra.mxu0 %v303_v4  ;;  %332 = vmatpush.msra.mxu1 %v304_v5  ;;  %v295_v10 = vld [vmem:[%s866_s1 + $0x180] sm:$0xff]  ;;  %v296_v11 = vld [vmem:[%s866_s1 + $0x188] sm:$0xff]  ;;  %v298_v12 = vld [vmem:[%s866_s1 + $0x198] sm:$0xff] }
  0x18   : > { %372 = vmatpush.msra.mxu3 %v306_v6  ;;  %v291_v13 = vld [vmem:[%s866_s1 + $0x160] sm:$0xff]  ;;  %v292_v14 = vld [vmem:[%s866_s1 + $0x168] sm:$0xff]  ;;  %v294_v15 = vld [vmem:[%s866_s1 + $0x178] sm:$0xff] }
  0x19   : > { %313 = vmatpush.msra.mxu0 %v299_v7  ;;  %333 = vmatpush.msra.mxu1 %v300_v8  ;;  %v287_v16 = vld [vmem:[%s866_s1 + $0x140] sm:$0xff]  ;;  %v288_v17 = vld [vmem:[%s866_s1 + $0x148] sm:$0xff]  ;;  %v309_v18 = vld [vmem:[%s866_s1 + $0x1f0] sm:$0xff] }
  0x1a   : > { %373 = vmatpush.msra.mxu3 %v302_v9  ;;  %v290_v19 = vld [vmem:[%s866_s1 + $0x158] sm:$0xff]  ;;  %v305_v20 = vld [vmem:[%s866_s1 + $0x1d0] sm:$0xff]  ;;  %v283_v21 = vld [vmem:[%s866_s1 + $0x120] sm:$0xff]  ;;  %351 = vmatpush.msra.mxu2 %v309_v18 }
  0x1b   : > { %314 = vmatpush.msra.mxu0 %v295_v10  ;;  %334 = vmatpush.msra.mxu1 %v296_v11  ;;  %v284_v22 = vld [vmem:[%s866_s1 + $0x128] sm:$0xff]  ;;  %v286_v23 = vld [vmem:[%s866_s1 + $0x138] sm:$0xff]  ;;  %v301_v24 = vld [vmem:[%s866_s1 + $0x1b0] sm:$0xff] }
  0x1c   : > { %374 = vmatpush.msra.mxu3 %v298_v12  ;;  %v279_v25 = vld [vmem:[%s866_s1 + $0x100] sm:$0xff]  ;;  %v280_v26 = vld [vmem:[%s866_s1 + $0x108] sm:$0xff]  ;;  %352 = vmatpush.msra.mxu2 %v305_v20  ;;  %v282_v27 = vld [vmem:[%s866_s1 + $0x118] sm:$0xff] }
  0x1d   : > { %315 = vmatpush.msra.mxu0 %v291_v13  ;;  %335 = vmatpush.msra.mxu1 %v292_v14  ;;  %v297_v28 = vld [vmem:[%s866_s1 + $0x190] sm:$0xff]  ;;  %v275_v29 = vld [vmem:[%s866_s1 + $0xe0] sm:$0xff]  ;;  %v276_v30 = vld [vmem:[%s866_s1 + $0xe8] sm:$0xff] }
  0x1e   : > { %375 = vmatpush.msra.mxu3 %v294_v15  ;;  %353 = vmatpush.msra.mxu2 %v301_v24  ;;  %v278_v31 = vld [vmem:[%s866_s1 + $0xf8] sm:$0xff]  ;;  %v293_v32 = vld [vmem:[%s866_s1 + $0x170] sm:$0xff]  ;;  %v271_v33 = vld [vmem:[%s866_s1 + $0xc0] sm:$0xff] }
  0x1f   : > { %316 = vmatpush.msra.mxu0 %v287_v16  ;;  %336 = vmatpush.msra.mxu1 %v288_v17  ;;  %v272_v34 = vld [vmem:[%s866_s1 + $0xc8] sm:$0xff]  ;;  %v274_v35 = vld [vmem:[%s866_s1 + $0xd8] sm:$0xff]  ;;  %v289_v36 = vld [vmem:[%s866_s1 + $0x150] sm:$0xff] }
  0x20   : > { %376 = vmatpush.msra.mxu3 %v290_v19  ;;  %354 = vmatpush.msra.mxu2 %v297_v28  ;;  %v267_v37 = vld [vmem:[%s866_s1 + $0xa0] sm:$0xff]  ;;  %v268_v38 = vld [vmem:[%s866_s1 + $0xa8] sm:$0xff]  ;;  %v270_v39 = vld [vmem:[%s866_s1 + $0xb8] sm:$0xff] }
  0x21   : > { %317 = vmatpush.msra.mxu0 %v283_v21  ;;  %337 = vmatpush.msra.mxu1 %v284_v22  ;;  %v285_v40 = vld [vmem:[%s866_s1 + $0x130] sm:$0xff]  ;;  %v263_v41 = vld [vmem:[%s866_s1 + $0x80] sm:$0xff]  ;;  %v264_v42 = vld [vmem:[%s866_s1 + $0x88] sm:$0xff] }
  0x22   : > { %377 = vmatpush.msra.mxu3 %v286_v23  ;;  %355 = vmatpush.msra.mxu2 %v293_v32  ;;  %v266_v43 = vld [vmem:[%s866_s1 + $0x98] sm:$0xff]  ;;  %v281_v44 = vld [vmem:[%s866_s1 + $0x110] sm:$0xff]  ;;  %v259_v45 = vld [vmem:[%s866_s1 + $0x60] sm:$0xff] }
  0x23   : > { %318 = vmatpush.msra.mxu0 %v279_v25  ;;  %338 = vmatpush.msra.mxu1 %v280_v26  ;;  %v260_v46 = vld [vmem:[%s866_s1 + $0x68] sm:$0xff]  ;;  %v262_v47 = vld [vmem:[%s866_s1 + $0x78] sm:$0xff]  ;;  %v277_v48 = vld [vmem:[%s866_s1 + $0xf0] sm:$0xff] }
  0x24   : > { %378 = vmatpush.msra.mxu3 %v282_v27  ;;  %356 = vmatpush.msra.mxu2 %v289_v36  ;;  %v255_v49 = vld [vmem:[%s866_s1 + $0x40] sm:$0xff]  ;;  %v256_v50 = vld [vmem:[%s866_s1 + $0x48] sm:$0xff]  ;;  %v258_v51 = vld [vmem:[%s866_s1 + $0x58] sm:$0xff] }
  0x25   : > { %319 = vmatpush.msra.mxu0 %v275_v29  ;;  %339 = vmatpush.msra.mxu1 %v276_v30  ;;  %v273_v52 = vld [vmem:[%s866_s1 + $0xd0] sm:$0xff]  ;;  %v251_v53 = vld [vmem:[%s866_s1 + $0x20] sm:$0xff]  ;;  %v252_v54 = vld [vmem:[%s866_s1 + $0x28] sm:$0xff] }
  0x26   : > { %379 = vmatpush.msra.mxu3 %v278_v31  ;;  %357 = vmatpush.msra.mxu2 %v285_v40  ;;  %v254_v55 = vld [vmem:[%s866_s1 + $0x38] sm:$0xff]  ;;  %v269_v56 = vld [vmem:[%s866_s1 + $0xb0] sm:$0xff]  ;;  %v247_v57 = vld [vmem:[%s866_s1] sm:$0xff] }
  0x27   : > { %320 = vmatpush.msra.mxu0 %v271_v33  ;;  %340 = vmatpush.msra.mxu1 %v272_v34  ;;  %v248_v58 = vld [vmem:[%s866_s1 + $0x8] sm:$0xff]  ;;  %v250_v59 = vld [vmem:[%s866_s1 + $0x18] sm:$0xff]  ;;  %v825_v60 = vld [vmem:[#allocation2] sm:$0xff] }
  0x28   : > { %380 = vmatpush.msra.mxu3 %v274_v35  ;;  %358 = vmatpush.msra.mxu2 %v281_v44  ;;  %v265_v61 = vld [vmem:[%s866_s1 + $0x90] sm:$0xff]  ;;  %v243_v2 = vld [vmem:[%s636_s25] sm:$0xff]  ;;  %v244_v3 = vld [vmem:[%s636_s25 + $0x8] sm:$0xff] }
  0x29   : > { %321 = vmatpush.msra.mxu0 %v267_v37  ;;  %341 = vmatpush.msra.mxu1 %v268_v38  ;;  %v261_v62 = vld [vmem:[%s866_s1 + $0x70] sm:$0xff]  ;;  %v246_v10 = vld [vmem:[%s636_s25 + $0x18] sm:$0xff] }
  0x2a   : > { %381 = vmatpush.msra.mxu3 %v270_v39  ;;  %359 = vmatpush.msra.mxu2 %v277_v48  ;;  %v257_v63 = vld [vmem:[%s866_s1 + $0x50] sm:$0xff] }
  0x2b   : > { %322 = vmatpush.msra.mxu0 %v263_v41  ;;  %342 = vmatpush.msra.mxu1 %v264_v42  ;;  %v253_v0 = vld [vmem:[%s866_s1 + $0x30] sm:$0xff]  ;;  %v242_v42 = vld [vmem:[#allocation3] sm:$0xff] }
  0x2c   : > { %382 = vmatpush.msra.mxu3 %v266_v43  ;;  %360 = vmatpush.msra.mxu2 %v273_v52  ;;  %v249_v1 = vld [vmem:[%s866_s1 + $0x10] sm:$0xff] }
  0x2d   : > { %323 = vmatpush.msra.mxu0 %v259_v45  ;;  %343 = vmatpush.msra.mxu1 %v260_v46  ;;  %v245_v18 = vld [vmem:[%s636_s25 + $0x10] sm:$0xff] }
  0x2e   : > { %383 = vmatpush.msra.mxu3 %v262_v47  ;;  %361 = vmatpush.msra.mxu2 %v269_v56  ;;  %v458_v47 = vld [vmem:[%s641_s28] sm:$0xff] }
  0x2f   : > { %324 = vmatpush.msra.mxu0 %v255_v49  ;;  %344 = vmatpush.msra.mxu1 %v256_v50  ;;  %vm459_vm8 = vcmp.gt.f32.partialorder %v458_v47, 0.0 }
  0x30   : > { %384 = vmatpush.msra.mxu3 %v258_v51  ;;  %362 = vmatpush.msra.mxu2 %v265_v61 }
  0x31   : > { %325 = vmatpush.msra.mxu0 %v251_v53  ;;  %345 = vmatpush.msra.mxu1 %v252_v54 }
  0x32   : > { %385 = vmatpush.msra.mxu3 %v254_v55  ;;  %363 = vmatpush.msra.mxu2 %v261_v62 }
  0x33   : > { %326 = vmatpush.msra.mxu0 %v247_v57  ;;  %346 = vmatpush.msra.mxu1 %v248_v58 }
  0x34   : > { %386 = vmatpush.msra.mxu3 %v250_v59  ;;  %327 = vmatmul.f32.vlgmr.msra.gmra.mxu0 %v825_v60 }
  0x35   : > { %347 = vmatmul.f32.vlgmr.msra.gmra.mxu1 %v825_v60  ;;  %387 = vmatmul.f32.vlgmr.msra.gmra.mxu3 %v825_v60 }
  0x36   : > { %364 = vmatpush.msra.mxu2 %v257_v63 }
  0x38   : > { %365 = vmatpush.msra.mxu2 %v253_v0 }
  0x3a   : > { %366 = vmatpush.msra.mxu2 %v249_v1 }
  0x3b   : > { %367 = vmatmul.f32.vlgmr.msra.gmra.mxu2 %v825_v60 }
  0xb1   : > { %v328_v4 = vpop.f32.mrf.mxu0 }
  0xb2   : > { %v391_v5 = vadd.f32 %v328_v4, %v243_v2  ;;  %v348_v6 = vpop.f32.mrf.mxu1 }
  0xb3   : > { %v392_v7 = vadd.f32 %v348_v6, %v244_v3 }
  0xb4   : > { %v555_v8 = vmul.f32 -1.442695, %v391_v5 }
  0xb5   : > { %v556_v9 = vmul.f32 -1.442695, %v392_v7 }
  0xb6   : > { %570 = vpow2.f32 %v555_v8 }
  0xb7   : > { %572 = vpow2.f32 %v556_v9 }
  0xb8   : > { %v388_v11 = vpop.f32.mrf.mxu3 }
  0xb9   : > { %v394_v12 = vadd.f32 %v388_v11, %v246_v10 }
  0xbb   : > { %v557_v13 = vmul.f32 -1.442695, %v394_v12 }
  0xbc   : > { %v571_v14 = vpop.eup %570 }
  0xbd   : > { %v573_v15 = vpop.eup %572  ;;  %v398_v16 = vadd.f32 1.0, %v571_v14  ;;  %574 = vpow2.f32 %v557_v13 }
  0xbe   : > { %v417_v17 = vadd.f32 1.0, %v573_v15  ;;  %v368_v19 = vpop.f32.mrf.mxu2 }
  0xbf   : > { %576 = vrcp.f32 %v398_v16  ;;  %v393_v21 = vadd.f32 %v368_v19, %v245_v18  ;;  %v410_v29 = vand.u32 2147483648, %v398_v16  ;;  %v408_v32 = vand.u32 2147483647, %v398_v16 }
  0xc0   : > { %578 = vrcp.f32 %v417_v17  ;;  %v429_v30 = vand.u32 2147483648, %v417_v17  ;;  %v427_v34 = vand.u32 2147483647, %v417_v17  ;;  %vm404_vm2 = vweird.f32 %v398_v16 }
  0xc1   : > { %vm423_vm3 = vweird.f32 %v417_v17  ;;  %v411_v39 = vor.u32 1.1754944e-38, %v410_v29  ;;  %vm409_vm6 = vcmp.eq.f32.partialorder %v408_v32, 8.507059e+37 }
  0xc2   : > { %v430_v41 = vor.u32 1.1754944e-38, %v429_v30  ;;  %vm428_vm7 = vcmp.eq.f32.partialorder %v427_v34, 8.507059e+37 }
  0xc3   : > { %v575_v20 = vpop.eup %574 }
  0xc4   : > { %v437_v22 = vadd.f32 1.0, %v575_v20 }
  0xc5   : > { %v577_v23 = vpop.eup %576 }
  0xc6   : > { %v579_v24 = vpop.eup %578  ;;  %v400_v25 = vmul.f32 %v577_v23, %v398_v16  ;;  %580 = vrcp.f32 %v437_v22  ;;  %vm405_vm0 = vweird.f32 %v577_v23  ;;  %v449_v54 = vand.u32 2147483648, %v437_v22 }
  0xc7   : > { %v419_v26 = vmul.f32 %v579_v24, %v417_v17  ;;  %582 = vtanh.f32 %v393_v21  ;;  %vm424_vm1 = vweird.f32 %v579_v24  ;;  %vm406_vm4 = vmor %vm404_vm2, %vm405_vm0  ;;  %vm443_vm10 = vweird.f32 %v437_v22 }
  0xc8   : > { %v401_v27 = vsub.f32 1.0, %v400_v25  ;;  %vm425_vm5 = vmor %vm423_vm3, %vm424_vm1  ;;  %v447_v56 = vand.u32 2147483647, %v437_v22  ;;  %v450_v58 = vor.u32 1.1754944e-38, %v449_v54 }
  0xc9   : > { %v420_v28 = vsub.f32 1.0, %v419_v26 }
  0xca   : > { %v402_v31 = vmul.f32 %v577_v23, %v401_v27  ;;  %vm448_vm12 = vcmp.eq.f32.partialorder %v447_v56, 8.507059e+37 }
  0xcb   : > { %v421_v33 = vmul.f32 %v579_v24, %v420_v28 }
  0xcc   : > { %v581_v35 = vpop.eup %580  ;;  %v403_v36 = vadd.f32 %v577_v23, %v402_v31 }
  0xcd   : > { %v583_v37 = vpop.eup %582  ;;  %v439_v38 = vmul.f32 %v581_v35, %v437_v22  ;;  %v422_v40 = vadd.f32 %v579_v24, %v421_v33  ;;  %vm444_vm9 = vweird.f32 %v581_v35 }
  0xce   : > { %v407_v43 = vsel %vm406_vm4, %v577_v23, %v403_v36  ;;  %vm445_vm11 = vmor %vm443_vm10, %vm444_vm9 }
  0xcf   : > { %v440_v44 = vsub.f32 1.0, %v439_v38  ;;  %v412_v45 = vsel %vm409_vm6, %v411_v39, %v407_v43  ;;  %v426_v46 = vsel %vm425_vm5, %v579_v24, %v422_v40 }
  0xd0   : > { %v431_v48 = vsel %vm428_vm7, %v430_v41, %v426_v46  ;;  %v454_v49 = vmul.f32 %v583_v37, %v412_v45 }
  0xd1   : > { %v441_v50 = vmul.f32 %v581_v35, %v440_v44  ;;  %v453_v51 = vmul.f32 %v431_v48, %v242_v42 }
  0xd3   : > { %v455_v52 = vadd.f32 %v454_v49, %v453_v51  ;;  %v442_v53 = vadd.f32 %v581_v35, %v441_v50 }
  0xd5   : > { %584 = vtanh.f32 %v455_v52  ;;  %v461_v55 = vsel %vm459_vm8, %v455_v52, %v242_v42  ;;  %v446_v57 = vsel %vm445_vm11, %v581_v35, %v442_v53 }
  0xd6   : > { %463 = vst [vmem:[#allocation3] sm:$0xff] %v461_v55  ;;  %v451_v61 = vsel %vm448_vm12, %v450_v58, %v446_v57 }
  0xd7   : > { %467 = vst [vmem:[%s870_s5] sm:$0xff] %v461_v55 }
  0xdb   : > { %v585_v59 = vpop.eup %584 }
  0xdc   : > { %v457_v62 = vmul.f32 %v585_v59, %v451_v61 }
  0xde   : > { %v460_v63 = vsel %vm459_vm8, %v457_v62, %v825_v60  ;;  %v464_v0 = vsel %vm459_vm8, %v457_v62, 0.0 }
  0xdf   : > { %462 = vst [vmem:[#allocation2] sm:$0xff] %v460_v63 }
  0xe0   : > { %465 = vst [vmem:[%s646_s6] sm:$0xff] %v464_v0 }
  0xe1   : > { %466 = vst [vmem:[%s869_s4] sm:$0xff] %v460_v63 }
  0xe2 PF: > { %s16_s18 = sadd.s32 1, %s592_s18  }
  0xe3   : > { %p13_p5 = scmp.ge.s32.totalorder %s16_s18, 10  }
  0xe5   :  { %15 = sbr.rel (!%p13_p5) target bundleno = 1 (0x1), region = 85 }

// kernel: forward.6
= control target key start
LH: loop header
LB: loop body
LE: loop exit
PB: predicated region body
PF: predicated region fallthrough
CT: control target
= control target key end

     0   :  { %s647_s18 = smov 0   ;;  %s887_s0 = inlined_call_operand.vmem [shape: f32[8,8,512], index: 0, kind: input, shape index: {}]   ;;  %s888_s1 = inlined_call_operand.vmem [shape: f32[128,512], index: 1, kind: input, shape index: {}]   ;;  %s889_s2 = inlined_call_operand.vmem [shape: f32[8,8,128], index: 2, kind: input, shape index: {}]   ;;  %s890_s3 = inlined_call_operand.vmem [shape: f32[8,8,128], index: 3, kind: output, shape index: {0}]   ;;  %s891_s4 = inlined_call_operand.vmem [shape: f32[8,128], index: 4, kind: output, shape index: {1}]   ;;  %s892_s5 = inlined_call_operand.vmem [shape: f32[8,128], index: 5, kind: output, shape index: {2}]  }
   0x1 LB: > { %s567_s19 = sadd.s32 4294967295, %s614_s18   ;;  %p571_p0 = scmp.ge.s32.totalorder %s614_s18, 1  ;;  %s614_s18 = sphi %s647_s18, %s16_s18  }
   0x2   : > { %p201_p1 = scmp.lt.s32.totalorder %s614_s18, 9 }
   0x4   : > { %p202_p2 = pnand %p571_p0, %p201_p1 }
   0x5   : > { %s235_s20 = ssub.s32 (!%p202_p2), 7, %s567_s19  ;;  %p576_p4 = scmp.ne.s32.totalorder (!%p202_p2), %s567_s19, 0 }
   0x6   : > { %205 = sbr.rel (%p202_p2) target bundleno = 225 (0xe1), region = 32  ;;  %p236_p3 = scmp.lt.s32.totalorder (!%p202_p2), %s235_s20, 7 }
   0xb   : > { %s894_s20 = smov (!%p236_p3, %s235_s20), 7  ;;  %257 = sbr.rel (%p576_p4) target bundleno = 19 (0x13), region = 36 }
   0xc   : > { %s582_s21 = sshll.u32 %s894_s20, 5  ;;  %s574_s22 = sshll.u32 %s894_s20, 3 }
   0xd   : > { %s658_s25 = scalar_lea.vmem %s887_s0, %s582_s21  ;;  %s663_s28 = scalar_lea.vmem %s889_s2, %s574_s22 }
   0xe   : > { %s668_s6 = scalar_lea.vmem %s890_s3, %s574_s22 }
  0x10   : > { %v616_v0 = vmov 0.0  }
  0x11   : > { %258 = vst [vmem:[#allocation2] sm:$0xff] %v616_v0 }
  0x12   : > { %259 = vst [vmem:[#allocation3] sm:$0xff] %v616_v0 }
  0x13 PF: > { %v326_v1 = vld [vmem:[%s888_s1 + $0x1e0] sm:$0xff]  ;;  %v327_v2 = vld [vmem:[%s888_s1 + $0x1e8] sm:$0xff]  ;;  %v329_v3 = vld [vmem:[%s888_s1 + $0x1f8] sm:$0xff] }
  0x14   : > { %330 = vmatpush.msra.mxu0 %v326_v1  ;;  %350 = vmatpush.msra.mxu1 %v327_v2  ;;  %v322_v4 = vld [vmem:[%s888_s1 + $0x1c0] sm:$0xff]  ;;  %v323_v5 = vld [vmem:[%s888_s1 + $0x1c8] sm:$0xff]  ;;  %v325_v6 = vld [vmem:[%s888_s1 + $0x1d8] sm:$0xff] }
  0x15   : > { %390 = vmatpush.msra.mxu3 %v329_v3  ;;  %v318_v7 = vld [vmem:[%s888_s1 + $0x1a0] sm:$0xff]  ;;  %v319_v8 = vld [vmem:[%s888_s1 + $0x1a8] sm:$0xff]  ;;  %v321_v9 = vld [vmem:[%s888_s1 + $0x1b8] sm:$0xff] }
  0x16   : > { %331 = vmatpush.msra.mxu0 %v322_v4  ;;  %351 = vmatpush.msra.mxu1 %v323_v5  ;;  %v314_v10 = vld [vmem:[%s888_s1 + $0x180] sm:$0xff]  ;;  %v315_v11 = vld [vmem:[%s888_s1 + $0x188] sm:$0xff]  ;;  %v317_v12 = vld [vmem:[%s888_s1 + $0x198] sm:$0xff] }
  0x17   : > { %391 = vmatpush.msra.mxu3 %v325_v6  ;;  %v310_v13 = vld [vmem:[%s888_s1 + $0x160] sm:$0xff]  ;;  %v311_v14 = vld [vmem:[%s888_s1 + $0x168] sm:$0xff]  ;;  %v313_v15 = vld [vmem:[%s888_s1 + $0x178] sm:$0xff] }
  0x18   : > { %332 = vmatpush.msra.mxu0 %v318_v7  ;;  %352 = vmatpush.msra.mxu1 %v319_v8  ;;  %v306_v16 = vld [vmem:[%s888_s1 + $0x140] sm:$0xff]  ;;  %v307_v17 = vld [vmem:[%s888_s1 + $0x148] sm:$0xff]  ;;  %v328_v18 = vld [vmem:[%s888_s1 + $0x1f0] sm:$0xff] }
  0x19   : > { %392 = vmatpush.msra.mxu3 %v321_v9  ;;  %v309_v19 = vld [vmem:[%s888_s1 + $0x158] sm:$0xff]  ;;  %v324_v20 = vld [vmem:[%s888_s1 + $0x1d0] sm:$0xff]  ;;  %v302_v21 = vld [vmem:[%s888_s1 + $0x120] sm:$0xff]  ;;  %370 = vmatpush.msra.mxu2 %v328_v18 }
  0x1a   : > { %333 = vmatpush.msra.mxu0 %v314_v10  ;;  %353 = vmatpush.msra.mxu1 %v315_v11  ;;  %v303_v22 = vld [vmem:[%s888_s1 + $0x128] sm:$0xff]  ;;  %v305_v23 = vld [vmem:[%s888_s1 + $0x138] sm:$0xff]  ;;  %v320_v24 = vld [vmem:[%s888_s1 + $0x1b0] sm:$0xff] }
  0x1b   : > { %393 = vmatpush.msra.mxu3 %v317_v12  ;;  %v298_v25 = vld [vmem:[%s888_s1 + $0x100] sm:$0xff]  ;;  %v299_v26 = vld [vmem:[%s888_s1 + $0x108] sm:$0xff]  ;;  %371 = vmatpush.msra.mxu2 %v324_v20  ;;  %v301_v27 = vld [vmem:[%s888_s1 + $0x118] sm:$0xff] }
  0x1c   : > { %334 = vmatpush.msra.mxu0 %v310_v13  ;;  %354 = vmatpush.msra.mxu1 %v311_v14  ;;  %v316_v28 = vld [vmem:[%s888_s1 + $0x190] sm:$0xff]  ;;  %v294_v29 = vld [vmem:[%s888_s1 + $0xe0] sm:$0xff]  ;;  %v295_v30 = vld [vmem:[%s888_s1 + $0xe8] sm:$0xff] }
  0x1d   : > { %394 = vmatpush.msra.mxu3 %v313_v15  ;;  %372 = vmatpush.msra.mxu2 %v320_v24  ;;  %v297_v31 = vld [vmem:[%s888_s1 + $0xf8] sm:$0xff]  ;;  %v312_v32 = vld [vmem:[%s888_s1 + $0x170] sm:$0xff]  ;;  %v290_v33 = vld [vmem:[%s888_s1 + $0xc0] sm:$0xff] }
  0x1e   : > { %335 = vmatpush.msra.mxu0 %v306_v16  ;;  %355 = vmatpush.msra.mxu1 %v307_v17  ;;  %v291_v34 = vld [vmem:[%s888_s1 + $0xc8] sm:$0xff]  ;;  %v293_v35 = vld [vmem:[%s888_s1 + $0xd8] sm:$0xff]  ;;  %v308_v36 = vld [vmem:[%s888_s1 + $0x150] sm:$0xff] }
  0x1f   : > { %395 = vmatpush.msra.mxu3 %v309_v19  ;;  %373 = vmatpush.msra.mxu2 %v316_v28  ;;  %v286_v37 = vld [vmem:[%s888_s1 + $0xa0] sm:$0xff]  ;;  %v287_v38 = vld [vmem:[%s888_s1 + $0xa8] sm:$0xff]  ;;  %v289_v39 = vld [vmem:[%s888_s1 + $0xb8] sm:$0xff] }
  0x20   : > { %336 = vmatpush.msra.mxu0 %v302_v21  ;;  %356 = vmatpush.msra.mxu1 %v303_v22  ;;  %v304_v40 = vld [vmem:[%s888_s1 + $0x130] sm:$0xff]  ;;  %v282_v41 = vld [vmem:[%s888_s1 + $0x80] sm:$0xff]  ;;  %v283_v42 = vld [vmem:[%s888_s1 + $0x88] sm:$0xff] }
  0x21   : > { %396 = vmatpush.msra.mxu3 %v305_v23  ;;  %374 = vmatpush.msra.mxu2 %v312_v32  ;;  %v285_v43 = vld [vmem:[%s888_s1 + $0x98] sm:$0xff]  ;;  %v300_v44 = vld [vmem:[%s888_s1 + $0x110] sm:$0xff]  ;;  %v278_v45 = vld [vmem:[%s888_s1 + $0x60] sm:$0xff] }
  0x22   : > { %337 = vmatpush.msra.mxu0 %v298_v25  ;;  %357 = vmatpush.msra.mxu1 %v299_v26  ;;  %v279_v46 = vld [vmem:[%s888_s1 + $0x68] sm:$0xff]  ;;  %v281_v47 = vld [vmem:[%s888_s1 + $0x78] sm:$0xff]  ;;  %v296_v48 = vld [vmem:[%s888_s1 + $0xf0] sm:$0xff] }
  0x23   : > { %397 = vmatpush.msra.mxu3 %v301_v27  ;;  %375 = vmatpush.msra.mxu2 %v308_v36  ;;  %v274_v49 = vld [vmem:[%s888_s1 + $0x40] sm:$0xff]  ;;  %v275_v50 = vld [vmem:[%s888_s1 + $0x48] sm:$0xff]  ;;  %v277_v51 = vld [vmem:[%s888_s1 + $0x58] sm:$0xff] }
  0x24   : > { %338 = vmatpush.msra.mxu0 %v294_v29  ;;  %358 = vmatpush.msra.mxu1 %v295_v30  ;;  %v292_v52 = vld [vmem:[%s888_s1 + $0xd0] sm:$0xff]  ;;  %v270_v53 = vld [vmem:[%s888_s1 + $0x20] sm:$0xff]  ;;  %v271_v54 = vld [vmem:[%s888_s1 + $0x28] sm:$0xff] }
  0x25   : > { %398 = vmatpush.msra.mxu3 %v297_v31  ;;  %376 = vmatpush.msra.mxu2 %v304_v40  ;;  %v273_v55 = vld [vmem:[%s888_s1 + $0x38] sm:$0xff]  ;;  %v288_v56 = vld [vmem:[%s888_s1 + $0xb0] sm:$0xff]  ;;  %v266_v57 = vld [vmem:[%s888_s1] sm:$0xff] }
  0x26   : > { %339 = vmatpush.msra.mxu0 %v290_v33  ;;  %359 = vmatpush.msra.mxu1 %v291_v34  ;;  %v267_v58 = vld [vmem:[%s888_s1 + $0x8] sm:$0xff]  ;;  %v269_v59 = vld [vmem:[%s888_s1 + $0x18] sm:$0xff]  ;;  %v847_v60 = vld [vmem:[#allocation2] sm:$0xff] }
  0x27   : > { %399 = vmatpush.msra.mxu3 %v293_v35  ;;  %377 = vmatpush.msra.mxu2 %v300_v44  ;;  %v284_v61 = vld [vmem:[%s888_s1 + $0x90] sm:$0xff]  ;;  %v262_v2 = vld [vmem:[%s658_s25] sm:$0xff]  ;;  %v263_v3 = vld [vmem:[%s658_s25 + $0x8] sm:$0xff] }
  0x28   : > { %340 = vmatpush.msra.mxu0 %v286_v37  ;;  %360 = vmatpush.msra.mxu1 %v287_v38  ;;  %v280_v62 = vld [vmem:[%s888_s1 + $0x70] sm:$0xff]  ;;  %v265_v10 = vld [vmem:[%s658_s25 + $0x18] sm:$0xff] }
  0x29   : > { %400 = vmatpush.msra.mxu3 %v289_v39  ;;  %378 = vmatpush.msra.mxu2 %v296_v48  ;;  %v276_v63 = vld [vmem:[%s888_s1 + $0x50] sm:$0xff] }
  0x2a   : > { %341 = vmatpush.msra.mxu0 %v282_v41  ;;  %361 = vmatpush.msra.mxu1 %v283_v42  ;;  %v272_v0 = vld [vmem:[%s888_s1 + $0x30] sm:$0xff]  ;;  %v261_v42 = vld [vmem:[#allocation3] sm:$0xff] }
  0x2b   : > { %401 = vmatpush.msra.mxu3 %v285_v43  ;;  %379 = vmatpush.msra.mxu2 %v292_v52  ;;  %v268_v1 = vld [vmem:[%s888_s1 + $0x10] sm:$0xff] }
  0x2c   : > { %342 = vmatpush.msra.mxu0 %v278_v45  ;;  %362 = vmatpush.msra.mxu1 %v279_v46  ;;  %v264_v18 = vld [vmem:[%s658_s25 + $0x10] sm:$0xff] }
  0x2d   : > { %402 = vmatpush.msra.mxu3 %v281_v47  ;;  %380 = vmatpush.msra.mxu2 %v288_v56  ;;  %v477_v47 = vld [vmem:[%s663_s28] sm:$0xff] }
  0x2e   : > { %343 = vmatpush.msra.mxu0 %v274_v49  ;;  %363 = vmatpush.msra.mxu1 %v275_v50  ;;  %vm478_vm8 = vcmp.gt.f32.partialorder %v477_v47, 0.0 }
  0x2f   : > { %403 = vmatpush.msra.mxu3 %v277_v51  ;;  %381 = vmatpush.msra.mxu2 %v284_v61 }
  0x30   : > { %344 = vmatpush.msra.mxu0 %v270_v53  ;;  %364 = vmatpush.msra.mxu1 %v271_v54 }
  0x31   : > { %404 = vmatpush.msra.mxu3 %v273_v55  ;;  %382 = vmatpush.msra.mxu2 %v280_v62 }
  0x32   : > { %345 = vmatpush.msra.mxu0 %v266_v57  ;;  %365 = vmatpush.msra.mxu1 %v267_v58 }
  0x33   : > { %405 = vmatpush.msra.mxu3 %v269_v59  ;;  %346 = vmatmul.f32.vlgmr.msra.gmra.mxu0 %v847_v60 }
  0x34   : > { %366 = vmatmul.f32.vlgmr.msra.gmra.mxu1 %v847_v60  ;;  %406 = vmatmul.f32.vlgmr.msra.gmra.mxu3 %v847_v60 }
  0x35   : > { %383 = vmatpush.msra.mxu2 %v276_v63 }
  0x37   : > { %384 = vmatpush.msra.mxu2 %v272_v0 }
  0x39   : > { %385 = vmatpush.msra.mxu2 %v268_v1 }
  0x3a   : > { %386 = vmatmul.f32.vlgmr.msra.gmra.mxu2 %v847_v60 }
  0xb0   : > { %v347_v4 = vpop.f32.mrf.mxu0 }
  0xb1   : > { %v410_v5 = vadd.f32 %v347_v4, %v262_v2  ;;  %v367_v6 = vpop.f32.mrf.mxu1 }
  0xb2   : > { %v411_v7 = vadd.f32 %v367_v6, %v263_v3 }
  0xb3   : > { %v577_v8 = vmul.f32 -1.442695, %v410_v5 }
  0xb4   : > { %v578_v9 = vmul.f32 -1.442695, %v411_v7 }
  0xb5   : > { %592 = vpow2.f32 %v577_v8 }
  0xb6   : > { %594 = vpow2.f32 %v578_v9 }
  0xb7   : > { %v407_v11 = vpop.f32.mrf.mxu3 }
  0xb8   : > { %v413_v12 = vadd.f32 %v407_v11, %v265_v10 }
  0xba   : > { %v579_v13 = vmul.f32 -1.442695, %v413_v12 }
  0xbb   : > { %v593_v14 = vpop.eup %592 }
  0xbc   : > { %v595_v15 = vpop.eup %594  ;;  %v417_v16 = vadd.f32 1.0, %v593_v14  ;;  %596 = vpow2.f32 %v579_v13 }
  0xbd   : > { %v436_v17 = vadd.f32 1.0, %v595_v15  ;;  %v387_v19 = vpop.f32.mrf.mxu2 }
  0xbe   : > { %598 = vrcp.f32 %v417_v16  ;;  %v412_v21 = vadd.f32 %v387_v19, %v264_v18  ;;  %v429_v29 = vand.u32 2147483648, %v417_v16  ;;  %v427_v32 = vand.u32 2147483647, %v417_v16 }
  0xbf   : > { %600 = vrcp.f32 %v436_v17  ;;  %v448_v30 = vand.u32 2147483648, %v436_v17  ;;  %v446_v34 = vand.u32 2147483647, %v436_v17  ;;  %vm423_vm2 = vweird.f32 %v417_v16 }
  0xc0   : > { %vm442_vm3 = vweird.f32 %v436_v17  ;;  %v430_v39 = vor.u32 1.1754944e-38, %v429_v29  ;;  %vm428_vm6 = vcmp.eq.f32.partialorder %v427_v32, 8.507059e+37 }
  0xc1   : > { %v449_v41 = vor.u32 1.1754944e-38, %v448_v30  ;;  %vm447_vm7 = vcmp.eq.f32.partialorder %v446_v34, 8.507059e+37 }
  0xc2   : > { %v597_v20 = vpop.eup %596 }
  0xc3   : > { %v456_v22 = vadd.f32 1.0, %v597_v20 }
  0xc4   : > { %v599_v23 = vpop.eup %598 }
  0xc5   : > { %v601_v24 = vpop.eup %600  ;;  %v419_v25 = vmul.f32 %v599_v23, %v417_v16  ;;  %602 = vrcp.f32 %v456_v22  ;;  %vm424_vm0 = vweird.f32 %v599_v23  ;;  %v468_v54 = vand.u32 2147483648, %v456_v22 }
  0xc6   : > { %v438_v26 = vmul.f32 %v601_v24, %v436_v17  ;;  %604 = vtanh.f32 %v412_v21  ;;  %vm443_vm1 = vweird.f32 %v601_v24  ;;  %vm425_vm4 = vmor %vm423_vm2, %vm424_vm0  ;;  %vm462_vm10 = vweird.f32 %v456_v22 }
  0xc7   : > { %v420_v27 = vsub.f32 1.0, %v419_v25  ;;  %vm444_vm5 = vmor %vm442_vm3, %vm443_vm1  ;;  %v466_v56 = vand.u32 2147483647, %v456_v22  ;;  %v469_v58 = vor.u32 1.1754944e-38, %v468_v54 }
  0xc8   : > { %v439_v28 = vsub.f32 1.0, %v438_v26 }
  0xc9   : > { %v421_v31 = vmul.f32 %v599_v23, %v420_v27  ;;  %vm467_vm12 = vcmp.eq.f32.partialorder %v466_v56, 8.507059e+37 }
  0xca   : > { %v440_v33 = vmul.f32 %v601_v24, %v439_v28 }
  0xcb   : > { %v603_v35 = vpop.eup %602  ;;  %v422_v36 = vadd.f32 %v599_v23, %v421_v31 }
  0xcc   : > { %v605_v37 = vpop.eup %604  ;;  %v458_v38 = vmul.f32 %v603_v35, %v456_v22  ;;  %v441_v40 = vadd.f32 %v601_v24, %v440_v33  ;;  %vm463_vm9 = vweird.f32 %v603_v35 }
  0xcd   : > { %v426_v43 = vsel %vm425_vm4, %v599_v23, %v422_v36  ;;  %vm464_vm11 = vmor %vm462_vm10, %vm463_vm9 }
  0xce   : > { %v459_v44 = vsub.f32 1.0, %v458_v38  ;;  %v431_v45 = vsel %vm428_vm6, %v430_v39, %v426_v43  ;;  %v445_v46 = vsel %vm444_vm5, %v601_v24, %v441_v40 }
  0xcf   : > { %v450_v48 = vsel %vm447_vm7, %v449_v41, %v445_v46  ;;  %v473_v49 = vmul.f32 %v605_v37, %v431_v45 }
  0xd0   : > { %v460_v50 = vmul.f32 %v603_v35, %v459_v44  ;;  %v472_v51 = vmul.f32 %v450_v48, %v261_v42 }
  0xd2   : > { %v474_v52 = vadd.f32 %v473_v49, %v472_v51  ;;  %v461_v53 = vadd.f32 %v603_v35, %v460_v50 }
  0xd4   : > { %606 = vtanh.f32 %v474_v52  ;;  %v480_v55 = vsel %vm478_vm8, %v474_v52, %v261_v42  ;;  %v465_v57 = vsel %vm464_vm11, %v603_v35, %v461_v53 }
  0xd5   : > { %482 = vst [vmem:[#allocation3] sm:$0xff] %v480_v55  ;;  %v470_v61 = vsel %vm467_vm12, %v469_v58, %v465_v57 }
  0xd6   : > { %486 = vst [vmem:[%s892_s5] sm:$0xff] %v480_v55 }
  0xda   : > { %v607_v59 = vpop.eup %606 }
  0xdb   : > { %v476_v62 = vmul.f32 %v607_v59, %v470_v61 }
  0xdd   : > { %v479_v63 = vsel %vm478_vm8, %v476_v62, %v847_v60  ;;  %v483_v0 = vsel %vm478_vm8, %v476_v62, 0.0 }
  0xde   : > { %481 = vst [vmem:[#allocation2] sm:$0xff] %v479_v63 }
  0xdf   : > { %484 = vst [vmem:[%s668_s6] sm:$0xff] %v483_v0 }
  0xe0   : > { %485 = vst [vmem:[%s891_s4] sm:$0xff] %v479_v63 }
  0xe1 PF: > { %s16_s18 = sadd.s32 1, %s614_s18  }
  0xe2   : > { %p13_p5 = scmp.ge.s32.totalorder %s16_s18, 10  }
  0xe4   :  { %15 = sbr.rel (!%p13_p5) target bundleno = 1 (0x1), region = 85 }

// kernel: forward.9
= control target key start
LH: loop header
LB: loop body
LE: loop exit
PB: predicated region body
PF: predicated region fallthrough
CT: control target
= control target key end

     0   :  { %s2167_s17 = smov 0   ;;  %s4072_s0 = inlined_call_operand.vmem [shape: f32[5,8,128], index: 0, kind: input, shape index: {}]   ;;  %s4073_s1 = inlined_call_operand.vmem [shape: f32[2,8,128], index: 1, kind: input, shape index: {}]   ;;  %s4074_s2 = inlined_call_operand.vmem [shape: f32[2,8,128], index: 2, kind: input, shape index: {}]   ;;  %s4075_s3 = inlined_call_operand.vmem [shape: f32[8,128,128], index: 3, kind: input, shape index: {}]   ;;  %s4076_s4 = inlined_call_operand.vmem [shape: f32[8,1,128], index: 4, kind: input, shape index: {}]   ;;  %s4077_s5 = inlined_call_operand.vmem [shape: f32[2,128,512], index: 5, kind: input, shape index: {}]   ;;  %s4078_s6 = inlined_call_operand.vmem [shape: f32[2,128,512], index: 6, kind: input, shape index: {}]   ;;  %s4079_s7 = inlined_call_operand.vmem [shape: f32[2,1,512], index: 7, kind: input, shape index: {}]   ;;  %s4080_s8 = inlined_call_operand.vmem [shape: f32[128,128], index: 8, kind: input, shape index: {}]   ;;  %s4081_s9 = inlined_call_operand.vmem [shape: f32[128,128], index: 9, kind: input, shape index: {}]   ;;  %s4082_s10 = inlined_call_operand.vmem [shape: f32[1,128], index: 10, kind: input, shape index: {}]   ;;  %s4083_s11 = inlined_call_operand.vmem [shape: f32[5,8,128], index: 11, kind: output, shape index: {}]  }
   0x1 LB: > { %s1879_s18 = sadd.s32 4294967295, %s2104_s17   ;;  %p1883_p0 = scmp.ge.s32.totalorder %s2104_s17, 1  ;;  %s2104_s17 = sphi %s2167_s17, %s21_s17  }
   0x2   : > { %p336_p1 = scmp.lt.s32.totalorder %s2104_s17, 6 }
   0x4   : > { %p337_p2 = pnand %p1883_p0, %p336_p1 }
   0x6   : > { %340 = sbr.rel (%p337_p2) target bundleno = 1110 (0x456), region = 64 }
   0xb   : > { %p374_p3 = scmp.lt.s32.totalorder %s1879_s18, 4  ;;  %p1886_p4 = scmp.ne.s32.totalorder %s1879_s18, 0 }
   0xd   : > { %s375_s19 = scalar_select %p374_p3, %s1879_s18, 4 }
   0xe   : > { %385 = sbr.rel (%p1886_p4) target bundleno = 25 (0x19), region = 68 }
   0xf   : > { %s1884_s20 = sshll.u32 %s375_s19, 3 }
  0x10   : > { %s2178_s23 = scalar_lea.vmem %s4072_s0, %s1884_s20  ;;  %s2183_s26 = scalar_lea.vmem %s4083_s11, %s1884_s20 }
  0x13   : > { %v386_v0 = vld [vmem:[%s4073_s1] sm:$0xff]  ;;  %v387_v1 = vld [vmem:[%s4073_s1 + $0x8] sm:$0xff]  ;;  %v2106_v4 = vmov 0.0  }
  0x14   : > { %v390_v2 = vld [vmem:[%s4074_s2] sm:$0xff]  ;;  %388 = vst [vmem:[#allocation2] sm:$0xff] %v386_v0  ;;  %v391_v3 = vld [vmem:[%s4074_s2 + $0x8] sm:$0xff] }
  0x15   : > { %389 = vst [vmem:[#allocation2 + $0x8] sm:$0xff] %v387_v1 }
  0x16   : > { %392 = vst [vmem:[#allocation3 + $0x8] sm:$0xff] %v390_v2 }
  0x17   : > { %393 = vst [vmem:[#allocation3] sm:$0xff] %v391_v3 }
  0x18   : > { %394 = vst [vmem:[#allocation4] sm:$0xff] %v2106_v4 }
  0x19 PF: > { %v524_v5 = vld [vmem:[%s4078_s6 + $0x1e0] sm:$0xff]  ;;  %v525_v6 = vld [vmem:[%s4078_s6 + $0x1e8] sm:$0xff]  ;;  %v527_v7 = vld [vmem:[%s4078_s6 + $0x1f8] sm:$0xff] }
  0x1a   : > { %528 = vmatpush.msra.mxu0 %v524_v5  ;;  %548 = vmatpush.msra.mxu1 %v525_v6  ;;  %v520_v8 = vld [vmem:[%s4078_s6 + $0x1c0] sm:$0xff]  ;;  %v521_v9 = vld [vmem:[%s4078_s6 + $0x1c8] sm:$0xff]  ;;  %v523_v10 = vld [vmem:[%s4078_s6 + $0x1d8] sm:$0xff] }
  0x1b   : > { %588 = vmatpush.msra.mxu3 %v527_v7  ;;  %v516_v11 = vld [vmem:[%s4078_s6 + $0x1a0] sm:$0xff]  ;;  %v517_v12 = vld [vmem:[%s4078_s6 + $0x1a8] sm:$0xff]  ;;  %v519_v13 = vld [vmem:[%s4078_s6 + $0x1b8] sm:$0xff] }
  0x1c   : > { %529 = vmatpush.msra.mxu0 %v520_v8  ;;  %549 = vmatpush.msra.mxu1 %v521_v9  ;;  %v512_v14 = vld [vmem:[%s4078_s6 + $0x180] sm:$0xff]  ;;  %v513_v15 = vld [vmem:[%s4078_s6 + $0x188] sm:$0xff]  ;;  %v526_v16 = vld [vmem:[%s4078_s6 + $0x1f0] sm:$0xff] }
  0x1d   : > { %589 = vmatpush.msra.mxu3 %v523_v10  ;;  %v515_v17 = vld [vmem:[%s4078_s6 + $0x198] sm:$0xff]  ;;  %v522_v18 = vld [vmem:[%s4078_s6 + $0x1d0] sm:$0xff]  ;;  %568 = vmatpush.msra.mxu2 %v526_v16  ;;  %v508_v19 = vld [vmem:[%s4078_s6 + $0x160] sm:$0xff] }
  0x1e   : > { %530 = vmatpush.msra.mxu0 %v516_v11  ;;  %550 = vmatpush.msra.mxu1 %v517_v12  ;;  %v509_v20 = vld [vmem:[%s4078_s6 + $0x168] sm:$0xff]  ;;  %v511_v21 = vld [vmem:[%s4078_s6 + $0x178] sm:$0xff]  ;;  %v518_v22 = vld [vmem:[%s4078_s6 + $0x1b0] sm:$0xff] }
  0x1f   : > { %590 = vmatpush.msra.mxu3 %v519_v13  ;;  %569 = vmatpush.msra.mxu2 %v522_v18  ;;  %v504_v23 = vld [vmem:[%s4078_s6 + $0x140] sm:$0xff]  ;;  %v505_v24 = vld [vmem:[%s4078_s6 + $0x148] sm:$0xff]  ;;  %v507_v25 = vld [vmem:[%s4078_s6 + $0x158] sm:$0xff] }
  0x20   : > { %531 = vmatpush.msra.mxu0 %v512_v14  ;;  %551 = vmatpush.msra.mxu1 %v513_v15  ;;  %v514_v26 = vld [vmem:[%s4078_s6 + $0x190] sm:$0xff]  ;;  %v500_v27 = vld [vmem:[%s4078_s6 + $0x120] sm:$0xff]  ;;  %v501_v28 = vld [vmem:[%s4078_s6 + $0x128] sm:$0xff] }
  0x21   : > { %591 = vmatpush.msra.mxu3 %v515_v17  ;;  %570 = vmatpush.msra.mxu2 %v518_v22  ;;  %v503_v29 = vld [vmem:[%s4078_s6 + $0x138] sm:$0xff]  ;;  %v510_v30 = vld [vmem:[%s4078_s6 + $0x170] sm:$0xff]  ;;  %v496_v31 = vld [vmem:[%s4078_s6 + $0x100] sm:$0xff] }
  0x22   : > { %532 = vmatpush.msra.mxu0 %v508_v19  ;;  %552 = vmatpush.msra.mxu1 %v509_v20  ;;  %v497_v32 = vld [vmem:[%s4078_s6 + $0x108] sm:$0xff]  ;;  %v499_v33 = vld [vmem:[%s4078_s6 + $0x118] sm:$0xff]  ;;  %v506_v34 = vld [vmem:[%s4078_s6 + $0x150] sm:$0xff] }
  0x23   : > { %592 = vmatpush.msra.mxu3 %v511_v21  ;;  %571 = vmatpush.msra.mxu2 %v514_v26  ;;  %v492_v35 = vld [vmem:[%s4078_s6 + $0xe0] sm:$0xff]  ;;  %v493_v36 = vld [vmem:[%s4078_s6 + $0xe8] sm:$0xff]  ;;  %v495_v37 = vld [vmem:[%s4078_s6 + $0xf8] sm:$0xff] }
  0x24   : > { %533 = vmatpush.msra.mxu0 %v504_v23  ;;  %553 = vmatpush.msra.mxu1 %v505_v24  ;;  %v502_v38 = vld [vmem:[%s4078_s6 + $0x130] sm:$0xff]  ;;  %v488_v39 = vld [vmem:[%s4078_s6 + $0xc0] sm:$0xff]  ;;  %v489_v40 = vld [vmem:[%s4078_s6 + $0xc8] sm:$0xff] }
  0x25   : > { %593 = vmatpush.msra.mxu3 %v507_v25  ;;  %572 = vmatpush.msra.mxu2 %v510_v30  ;;  %v491_v41 = vld [vmem:[%s4078_s6 + $0xd8] sm:$0xff]  ;;  %v498_v42 = vld [vmem:[%s4078_s6 + $0x110] sm:$0xff]  ;;  %v484_v43 = vld [vmem:[%s4078_s6 + $0xa0] sm:$0xff] }
  0x26   : > { %534 = vmatpush.msra.mxu0 %v500_v27  ;;  %554 = vmatpush.msra.mxu1 %v501_v28  ;;  %v485_v44 = vld [vmem:[%s4078_s6 + $0xa8] sm:$0xff]  ;;  %v487_v45 = vld [vmem:[%s4078_s6 + $0xb8] sm:$0xff]  ;;  %v494_v46 = vld [vmem:[%s4078_s6 + $0xf0] sm:$0xff] }
  0x27   : > { %594 = vmatpush.msra.mxu3 %v503_v29  ;;  %573 = vmatpush.msra.mxu2 %v506_v34  ;;  %v480_v47 = vld [vmem:[%s4078_s6 + $0x80] sm:$0xff]  ;;  %v481_v48 = vld [vmem:[%s4078_s6 + $0x88] sm:$0xff]  ;;  %v483_v49 = vld [vmem:[%s4078_s6 + $0x98] sm:$0xff] }
  0x28   : > { %535 = vmatpush.msra.mxu0 %v496_v31  ;;  %555 = vmatpush.msra.mxu1 %v497_v32  ;;  %v490_v50 = vld [vmem:[%s4078_s6 + $0xd0] sm:$0xff]  ;;  %v476_v51 = vld [vmem:[%s4078_s6 + $0x60] sm:$0xff]  ;;  %v477_v52 = vld [vmem:[%s4078_s6 + $0x68] sm:$0xff] }
  0x29   : > { %595 = vmatpush.msra.mxu3 %v499_v33  ;;  %574 = vmatpush.msra.mxu2 %v502_v38  ;;  %v479_v53 = vld [vmem:[%s4078_s6 + $0x78] sm:$0xff]  ;;  %v486_v54 = vld [vmem:[%s4078_s6 + $0xb0] sm:$0xff]  ;;  %v472_v55 = vld [vmem:[%s4078_s6 + $0x40] sm:$0xff] }
  0x2a   : > { %536 = vmatpush.msra.mxu0 %v492_v35  ;;  %556 = vmatpush.msra.mxu1 %v493_v36  ;;  %v473_v56 = vld [vmem:[%s4078_s6 + $0x48] sm:$0xff]  ;;  %v475_v57 = vld [vmem:[%s4078_s6 + $0x58] sm:$0xff]  ;;  %v482_v58 = vld [vmem:[%s4078_s6 + $0x90] sm:$0xff] }
  0x2b   : > { %596 = vmatpush.msra.mxu3 %v495_v37  ;;  %575 = vmatpush.msra.mxu2 %v498_v42  ;;  %v468_v59 = vld [vmem:[%s4078_s6 + $0x20] sm:$0xff]  ;;  %v469_v60 = vld [vmem:[%s4078_s6 + $0x28] sm:$0xff]  ;;  %v471_v61 = vld [vmem:[%s4078_s6 + $0x38] sm:$0xff] }
  0x2c   : > { %537 = vmatpush.msra.mxu0 %v488_v39  ;;  %557 = vmatpush.msra.mxu1 %v489_v40  ;;  %v478_v62 = vld [vmem:[%s4078_s6 + $0x70] sm:$0xff]  ;;  %v464_v63 = vld [vmem:[%s4078_s6] sm:$0xff]  ;;  %v465_v0 = vld [vmem:[%s4078_s6 + $0x8] sm:$0xff] }
  0x2d   : > { %597 = vmatpush.msra.mxu3 %v491_v41  ;;  %576 = vmatpush.msra.mxu2 %v494_v46  ;;  %v467_v1 = vld [vmem:[%s4078_s6 + $0x18] sm:$0xff]  ;;  %v460_v2 = vld [vmem:[%s4077_s5 + $0x1e0] sm:$0xff]  ;;  %v461_v3 = vld [vmem:[%s4077_s5 + $0x1e8] sm:$0xff] }
  0x2e   : > { %538 = vmatpush.msra.mxu0 %v484_v43  ;;  %558 = vmatpush.msra.mxu1 %v485_v44  ;;  %v463_v4 = vld [vmem:[%s4077_s5 + $0x1f8] sm:$0xff]  ;;  %v474_v5 = vld [vmem:[%s4078_s6 + $0x50] sm:$0xff]  ;;  %v456_v6 = vld [vmem:[%s4077_s5 + $0x1c0] sm:$0xff] }
  0x2f   : > { %598 = vmatpush.msra.mxu3 %v487_v45  ;;  %577 = vmatpush.msra.mxu2 %v490_v50  ;;  %v457_v7 = vld [vmem:[%s4077_s5 + $0x1c8] sm:$0xff]  ;;  %v459_v8 = vld [vmem:[%s4077_s5 + $0x1d8] sm:$0xff]  ;;  %v470_v9 = vld [vmem:[%s4078_s6 + $0x30] sm:$0xff] }
  0x30   : > { %539 = vmatpush.msra.mxu0 %v480_v47  ;;  %559 = vmatpush.msra.mxu1 %v481_v48  ;;  %v452_v10 = vld [vmem:[%s4077_s5 + $0x1a0] sm:$0xff]  ;;  %v453_v11 = vld [vmem:[%s4077_s5 + $0x1a8] sm:$0xff]  ;;  %v455_v12 = vld [vmem:[%s4077_s5 + $0x1b8] sm:$0xff] }
  0x31   : > { %599 = vmatpush.msra.mxu3 %v483_v49  ;;  %578 = vmatpush.msra.mxu2 %v486_v54  ;;  %v466_v13 = vld [vmem:[%s4078_s6 + $0x10] sm:$0xff]  ;;  %v448_v14 = vld [vmem:[%s4077_s5 + $0x180] sm:$0xff]  ;;  %v449_v15 = vld [vmem:[%s4077_s5 + $0x188] sm:$0xff] }
  0x32   : > { %540 = vmatpush.msra.mxu0 %v476_v51  ;;  %560 = vmatpush.msra.mxu1 %v477_v52  ;;  %v451_v16 = vld [vmem:[%s4077_s5 + $0x198] sm:$0xff]  ;;  %v462_v17 = vld [vmem:[%s4077_s5 + $0x1f0] sm:$0xff]  ;;  %v444_v18 = vld [vmem:[%s4077_s5 + $0x160] sm:$0xff] }
  0x33   : > { %600 = vmatpush.msra.mxu3 %v479_v53  ;;  %579 = vmatpush.msra.mxu2 %v482_v58  ;;  %v445_v19 = vld [vmem:[%s4077_s5 + $0x168] sm:$0xff]  ;;  %v447_v20 = vld [vmem:[%s4077_s5 + $0x178] sm:$0xff]  ;;  %v458_v21 = vld [vmem:[%s4077_s5 + $0x1d0] sm:$0xff] }
  0x34   : > { %541 = vmatpush.msra.mxu0 %v472_v55  ;;  %561 = vmatpush.msra.mxu1 %v473_v56  ;;  %v440_v22 = vld [vmem:[%s4077_s5 + $0x140] sm:$0xff]  ;;  %v441_v23 = vld [vmem:[%s4077_s5 + $0x148] sm:$0xff]  ;;  %v443_v24 = vld [vmem:[%s4077_s5 + $0x158] sm:$0xff] }
  0x35   : > { %601 = vmatpush.msra.mxu3 %v475_v57  ;;  %580 = vmatpush.msra.mxu2 %v478_v62  ;;  %v454_v25 = vld [vmem:[%s4077_s5 + $0x1b0] sm:$0xff]  ;;  %v436_v26 = vld [vmem:[%s4077_s5 + $0x120] sm:$0xff]  ;;  %v437_v27 = vld [vmem:[%s4077_s5 + $0x128] sm:$0xff] }
  0x36   : > { %542 = vmatpush.msra.mxu0 %v468_v59  ;;  %562 = vmatpush.msra.mxu1 %v469_v60  ;;  %v439_v28 = vld [vmem:[%s4077_s5 + $0x138] sm:$0xff]  ;;  %v450_v29 = vld [vmem:[%s4077_s5 + $0x190] sm:$0xff]  ;;  %v432_v30 = vld [vmem:[%s4077_s5 + $0x100] sm:$0xff] }
  0x37   : > { %602 = vmatpush.msra.mxu3 %v471_v61  ;;  %581 = vmatpush.msra.mxu2 %v474_v5  ;;  %v433_v31 = vld [vmem:[%s4077_s5 + $0x108] sm:$0xff]  ;;  %v435_v32 = vld [vmem:[%s4077_s5 + $0x118] sm:$0xff]  ;;  %v446_v33 = vld [vmem:[%s4077_s5 + $0x170] sm:$0xff] }
  0x38   : > { %543 = vmatpush.msra.mxu0 %v464_v63  ;;  %563 = vmatpush.msra.mxu1 %v465_v0  ;;  %v428_v34 = vld [vmem:[%s4077_s5 + $0xe0] sm:$0xff]  ;;  %v429_v35 = vld [vmem:[%s4077_s5 + $0xe8] sm:$0xff]  ;;  %v431_v36 = vld [vmem:[%s4077_s5 + $0xf8] sm:$0xff] }
  0x39   : > { %603 = vmatpush.msra.mxu3 %v467_v1  ;;  %582 = vmatpush.msra.mxu2 %v470_v9  ;;  %v442_v37 = vld [vmem:[%s4077_s5 + $0x150] sm:$0xff]  ;;  %v424_v38 = vld [vmem:[%s4077_s5 + $0xc0] sm:$0xff]  ;;  %v425_v39 = vld [vmem:[%s4077_s5 + $0xc8] sm:$0xff] }
  0x3a   : > { %608 = vmatpush.msrb.mxu0 %v460_v2  ;;  %628 = vmatpush.msrb.mxu1 %v461_v3  ;;  %v427_v40 = vld [vmem:[%s4077_s5 + $0xd8] sm:$0xff]  ;;  %v438_v41 = vld [vmem:[%s4077_s5 + $0x130] sm:$0xff]  ;;  %v420_v42 = vld [vmem:[%s4077_s5 + $0xa0] sm:$0xff] }
  0x3b   : > { %668 = vmatpush.msrb.mxu3 %v463_v4  ;;  %583 = vmatpush.msra.mxu2 %v466_v13  ;;  %v421_v43 = vld [vmem:[%s4077_s5 + $0xa8] sm:$0xff]  ;;  %v423_v44 = vld [vmem:[%s4077_s5 + $0xb8] sm:$0xff]  ;;  %v434_v45 = vld [vmem:[%s4077_s5 + $0x110] sm:$0xff] }
  0x3c   : > { %609 = vmatpush.msrb.mxu0 %v456_v6  ;;  %629 = vmatpush.msrb.mxu1 %v457_v7  ;;  %v416_v46 = vld [vmem:[%s4077_s5 + $0x80] sm:$0xff]  ;;  %v417_v47 = vld [vmem:[%s4077_s5 + $0x88] sm:$0xff]  ;;  %v419_v48 = vld [vmem:[%s4077_s5 + $0x98] sm:$0xff] }
  0x3d   : > { %669 = vmatpush.msrb.mxu3 %v459_v8  ;;  %648 = vmatpush.msrb.mxu2 %v462_v17  ;;  %v398_v49 = vld [vmem:[#allocation2] sm:$0xff]  ;;  %v430_v50 = vld [vmem:[%s4077_s5 + $0xf0] sm:$0xff]  ;;  %v413_v52 = vld [vmem:[%s4077_s5 + $0x68] sm:$0xff] }
  0x3e   : > { %610 = vmatpush.msrb.mxu0 %v452_v10  ;;  %630 = vmatpush.msrb.mxu1 %v453_v11  ;;  %v412_v51 = vld [vmem:[%s4077_s5 + $0x60] sm:$0xff]  ;;  %v415_v53 = vld [vmem:[%s4077_s5 + $0x78] sm:$0xff]  ;;  %v426_v54 = vld [vmem:[%s4077_s5 + $0xd0] sm:$0xff] }
  0x3f   : > { %670 = vmatpush.msrb.mxu3 %v455_v12  ;;  %649 = vmatpush.msrb.mxu2 %v458_v21  ;;  %v408_v55 = vld [vmem:[%s4077_s5 + $0x40] sm:$0xff]  ;;  %v409_v56 = vld [vmem:[%s4077_s5 + $0x48] sm:$0xff]  ;;  %v411_v57 = vld [vmem:[%s4077_s5 + $0x58] sm:$0xff] }
  0x40   : > { %611 = vmatpush.msrb.mxu0 %v448_v14  ;;  %631 = vmatpush.msrb.mxu1 %v449_v15  ;;  %v422_v58 = vld [vmem:[%s4077_s5 + $0xb0] sm:$0xff]  ;;  %v404_v59 = vld [vmem:[%s4077_s5 + $0x20] sm:$0xff]  ;;  %v405_v60 = vld [vmem:[%s4077_s5 + $0x28] sm:$0xff] }
  0x41   : > { %671 = vmatpush.msrb.mxu3 %v451_v16  ;;  %650 = vmatpush.msrb.mxu2 %v454_v25  ;;  %v395_v61 = vld [vmem:[%s2178_s23] sm:$0xff]  ;;  %v407_v63 = vld [vmem:[%s4077_s5 + $0x38] sm:$0xff]  ;;  %v418_v0 = vld [vmem:[%s4077_s5 + $0x90] sm:$0xff] }
  0x42   : > { %612 = vmatpush.msrb.mxu0 %v444_v18  ;;  %632 = vmatpush.msrb.mxu1 %v445_v19  ;;  %v396_v62 = vld [vmem:[#allocation4] sm:$0xff]  ;;  %v401_v2 = vld [vmem:[%s4077_s5 + $0x8] sm:$0xff]  ;;  %v403_v3 = vld [vmem:[%s4077_s5 + $0x18] sm:$0xff] }
  0x43   : > { %672 = vmatpush.msrb.mxu3 %v447_v20  ;;  %651 = vmatpush.msrb.mxu2 %v450_v29  ;;  %v400_v1 = vld [vmem:[%s4077_s5] sm:$0xff]  ;;  %v397_v4 = vadd.f32 %v396_v62, %v395_v61  ;;  %v414_v5 = vld [vmem:[%s4077_s5 + $0x70] sm:$0xff]  ;;  %v2015_v7 = vld [vmem:[%s4078_s6 + $0x3e8] sm:$0xff] }
  0x44   : > { %613 = vmatpush.msrb.mxu0 %v440_v22  ;;  %633 = vmatpush.msrb.mxu1 %v441_v23  ;;  %v2014_v6 = vld [vmem:[%s4078_s6 + $0x3e0] sm:$0xff]  ;;  %v410_v8 = vld [vmem:[%s4077_s5 + $0x50] sm:$0xff]  ;;  %v2017_v9 = vld [vmem:[%s4078_s6 + $0x3f8] sm:$0xff] }
  0x45   : > { %673 = vmatpush.msrb.mxu3 %v443_v24  ;;  %652 = vmatpush.msrb.mxu2 %v446_v33  ;;  %v2010_v10 = vld [vmem:[%s4078_s6 + $0x3c0] sm:$0xff]  ;;  %v2011_v11 = vld [vmem:[%s4078_s6 + $0x3c8] sm:$0xff]  ;;  %v406_v12 = vld [vmem:[%s4077_s5 + $0x30] sm:$0xff] }
  0x46   : > { %614 = vmatpush.msrb.mxu0 %v436_v26  ;;  %634 = vmatpush.msrb.mxu1 %v437_v27  ;;  %v2013_v13 = vld [vmem:[%s4078_s6 + $0x3d8] sm:$0xff]  ;;  %v2006_v14 = vld [vmem:[%s4078_s6 + $0x3a0] sm:$0xff]  ;;  %v2007_v15 = vld [vmem:[%s4078_s6 + $0x3a8] sm:$0xff] }
  0x47   : > { %674 = vmatpush.msrb.mxu3 %v439_v28  ;;  %653 = vmatpush.msrb.mxu2 %v442_v37  ;;  %v402_v16 = vld [vmem:[%s4077_s5 + $0x10] sm:$0xff]  ;;  %v2009_v17 = vld [vmem:[%s4078_s6 + $0x3b8] sm:$0xff]  ;;  %v2002_v18 = vld [vmem:[%s4078_s6 + $0x380] sm:$0xff] }
  0x48   : > { %615 = vmatpush.msrb.mxu0 %v432_v30  ;;  %635 = vmatpush.msrb.mxu1 %v433_v31  ;;  %v2016_v19 = vld [vmem:[%s4078_s6 + $0x3f0] sm:$0xff]  ;;  %v2003_v20 = vld [vmem:[%s4078_s6 + $0x388] sm:$0xff]  ;;  %v2005_v21 = vld [vmem:[%s4078_s6 + $0x398] sm:$0xff] }
  0x49   : > { %675 = vmatpush.msrb.mxu3 %v435_v32  ;;  %654 = vmatpush.msrb.mxu2 %v438_v41  ;;  %v2012_v22 = vld [vmem:[%s4078_s6 + $0x3d0] sm:$0xff]  ;;  %v1998_v25 = vld [vmem:[%s4078_s6 + $0x360] sm:$0xff]  ;;  %v1999_v26 = vld [vmem:[%s4078_s6 + $0x368] sm:$0xff] }
  0x4a   : > { %616 = vmatpush.msrb.mxu0 %v428_v34  ;;  %636 = vmatpush.msrb.mxu1 %v429_v35  ;;  %v2008_v23 = vld [vmem:[%s4078_s6 + $0x3b0] sm:$0xff]  ;;  %v2001_v28 = vld [vmem:[%s4078_s6 + $0x378] sm:$0xff]  ;;  %v1994_v29 = vld [vmem:[%s4078_s6 + $0x340] sm:$0xff] }
  0x4b   : > { %676 = vmatpush.msrb.mxu3 %v431_v36  ;;  %655 = vmatpush.msrb.mxu2 %v434_v45  ;;  %v2004_v24 = vld [vmem:[%s4078_s6 + $0x390] sm:$0xff]  ;;  %v1995_v30 = vld [vmem:[%s4078_s6 + $0x348] sm:$0xff]  ;;  %v1997_v32 = vld [vmem:[%s4078_s6 + $0x358] sm:$0xff] }
  0x4c   : > { %617 = vmatpush.msrb.mxu0 %v424_v38  ;;  %637 = vmatpush.msrb.mxu1 %v425_v39  ;;  %v2000_v27 = vld [vmem:[%s4078_s6 + $0x370] sm:$0xff]  ;;  %v1990_v33 = vld [vmem:[%s4078_s6 + $0x320] sm:$0xff]  ;;  %v1991_v34 = vld [vmem:[%s4078_s6 + $0x328] sm:$0xff] }
  0x4d   : > { %677 = vmatpush.msrb.mxu3 %v427_v40  ;;  %544 = vmatmul.f32.vlgmr.msra.gmra.mxu0 %v398_v49  ;;  %v1996_v31 = vld [vmem:[%s4078_s6 + $0x350] sm:$0xff]  ;;  %v1993_v36 = vld [vmem:[%s4078_s6 + $0x338] sm:$0xff]  ;;  %v1986_v37 = vld [vmem:[%s4078_s6 + $0x300] sm:$0xff] }
  0x4e   : > { %618 = vmatpush.msrb.mxu0 %v420_v42  ;;  %638 = vmatpush.msrb.mxu1 %v421_v43  ;;  %v1992_v35 = vld [vmem:[%s4078_s6 + $0x330] sm:$0xff]  ;;  %v1987_v38 = vld [vmem:[%s4078_s6 + $0x308] sm:$0xff]  ;;  %v1989_v40 = vld [vmem:[%s4078_s6 + $0x318] sm:$0xff] }
  0x4f   : > { %678 = vmatpush.msrb.mxu3 %v423_v44  ;;  %564 = vmatmul.f32.vlgmr.msra.gmra.mxu1 %v398_v49  ;;  %v1988_v39 = vld [vmem:[%s4078_s6 + $0x310] sm:$0xff]  ;;  %v1982_v41 = vld [vmem:[%s4078_s6 + $0x2e0] sm:$0xff]  ;;  %v1983_v42 = vld [vmem:[%s4078_s6 + $0x2e8] sm:$0xff] }
  0x50   : > { %619 = vmatpush.msrb.mxu0 %v416_v46  ;;  %639 = vmatpush.msrb.mxu1 %v417_v47  ;;  %v1984_v43 = vld [vmem:[%s4078_s6 + $0x2f0] sm:$0xff]  ;;  %v1985_v44 = vld [vmem:[%s4078_s6 + $0x2f8] sm:$0xff]  ;;  %v1978_v45 = vld [vmem:[%s4078_s6 + $0x2c0] sm:$0xff] }
  0x51   : > { %679 = vmatpush.msrb.mxu3 %v419_v48  ;;  %656 = vmatpush.msrb.mxu2 %v430_v50  ;;  %v1979_v46 = vld [vmem:[%s4078_s6 + $0x2c8] sm:$0xff]  ;;  %v1980_v47 = vld [vmem:[%s4078_s6 + $0x2d0] sm:$0xff]  ;;  %v1981_v48 = vld [vmem:[%s4078_s6 + $0x2d8] sm:$0xff] }
  0x52   : > { %604 = vmatmul.f32.vlgmr.msra.gmra.mxu3 %v398_v49  ;;  %620 = vmatpush.msrb.mxu0 %v412_v51  ;;  %v1975_v50 = vld [vmem:[%s4078_s6 + $0x2a8] sm:$0xff]  ;;  %v1976_v51 = vld [vmem:[%s4078_s6 + $0x2b0] sm:$0xff]  ;;  %v1962_v61 = vld [vmem:[%s4078_s6 + $0x240] sm:$0xff] }
  0x53   : > { %640 = vmatpush.msrb.mxu1 %v413_v52  ;;  %680 = vmatpush.msrb.mxu3 %v415_v53  ;;  %v1977_v52 = vld [vmem:[%s4078_s6 + $0x2b8] sm:$0xff]  ;;  %v1970_v53 = vld [vmem:[%s4078_s6 + $0x280] sm:$0xff]  ;;  %v1963_v62 = vld [vmem:[%s4078_s6 + $0x248] sm:$0xff] }
  0x54   : > { %657 = vmatpush.msrb.mxu2 %v426_v54  ;;  %621 = vmatpush.msrb.mxu0 %v408_v55  ;;  %v1971_v54 = vld [vmem:[%s4078_s6 + $0x288] sm:$0xff]  ;;  %v1972_v55 = vld [vmem:[%s4078_s6 + $0x290] sm:$0xff] }
  0x55   : > { %641 = vmatpush.msrb.mxu1 %v409_v56  ;;  %681 = vmatpush.msrb.mxu3 %v411_v57  ;;  %v1973_v56 = vld [vmem:[%s4078_s6 + $0x298] sm:$0xff]  ;;  %v1966_v57 = vld [vmem:[%s4078_s6 + $0x260] sm:$0xff] }
  0x56   : > { %658 = vmatpush.msrb.mxu2 %v422_v58  ;;  %622 = vmatpush.msrb.mxu0 %v404_v59  ;;  %v1967_v58 = vld [vmem:[%s4078_s6 + $0x268] sm:$0xff]  ;;  %v1968_v59 = vld [vmem:[%s4078_s6 + $0x270] sm:$0xff] }
  0x57   : > { %642 = vmatpush.msrb.mxu1 %v405_v60  ;;  %682 = vmatpush.msrb.mxu3 %v407_v63  ;;  %v1969_v60 = vld [vmem:[%s4078_s6 + $0x278] sm:$0xff]  ;;  %v1964_v63 = vld [vmem:[%s4078_s6 + $0x250] sm:$0xff] }
  0x58   : > { %659 = vmatpush.msrb.mxu2 %v418_v0  ;;  %623 = vmatpush.msrb.mxu0 %v400_v1  ;;  %v1965_v0 = vld [vmem:[%s4078_s6 + $0x258] sm:$0xff]  ;;  %v1958_v1 = vld [vmem:[%s4078_s6 + $0x220] sm:$0xff] }
  0x59   : > { %584 = vmatmul.f32.vlgmr.msra.gmra.mxu2 %v398_v49  ;;  %643 = vmatpush.msrb.mxu1 %v401_v2  ;;  %v1974_v49 = vld [vmem:[%s4078_s6 + $0x2a0] sm:$0xff]  ;;  %v1959_v2 = vld [vmem:[%s4078_s6 + $0x228] sm:$0xff] }
  0x5a   : > { %683 = vmatpush.msrb.mxu3 %v403_v3  ;;  %624 = vmatmul.f32.vlgmr.msrb.gmra.mxu0 %v397_v4  ;;  %v1960_v3 = vld [vmem:[%s4078_s6 + $0x230] sm:$0xff] }
  0x5b   : > { %644 = vmatmul.f32.vlgmr.msrb.gmra.mxu1 %v397_v4  ;;  %660 = vmatpush.msrb.mxu2 %v414_v5  ;;  %v1954_v5 = vld [vmem:[%s4078_s6 + $0x200] sm:$0xff] }
  0x5c   : > { %684 = vmatmul.f32.vlgmr.msrb.gmra.mxu3 %v397_v4  ;;  %901 = vmatpush.msra.mxu0 %v2014_v6  ;;  %v1955_v6 = vld [vmem:[%s4078_s6 + $0x208] sm:$0xff] }
  0x5d   : > { %921 = vmatpush.msra.mxu1 %v2015_v7  ;;  %661 = vmatpush.msrb.mxu2 %v410_v8  ;;  %v1956_v7 = vld [vmem:[%s4078_s6 + $0x210] sm:$0xff]  ;;  %v1957_v8 = vld [vmem:[%s4078_s6 + $0x218] sm:$0xff] }
  0x5e   : > { %961 = vmatpush.msra.mxu3 %v2017_v9  ;;  %902 = vmatpush.msra.mxu0 %v2010_v10  ;;  %v1950_v9 = vld [vmem:[%s4077_s5 + $0x3e0] sm:$0xff]  ;;  %v1951_v10 = vld [vmem:[%s4077_s5 + $0x3e8] sm:$0xff] }
  0x5f   : > { %922 = vmatpush.msra.mxu1 %v2011_v11  ;;  %662 = vmatpush.msrb.mxu2 %v406_v12  ;;  %v1952_v11 = vld [vmem:[%s4077_s5 + $0x3f0] sm:$0xff]  ;;  %v1953_v12 = vld [vmem:[%s4077_s5 + $0x3f8] sm:$0xff] }
  0x60   : > { %962 = vmatpush.msra.mxu3 %v2013_v13  ;;  %903 = vmatpush.msra.mxu0 %v2006_v14  ;;  %v1946_v13 = vld [vmem:[%s4077_s5 + $0x3c0] sm:$0xff]  ;;  %v1947_v14 = vld [vmem:[%s4077_s5 + $0x3c8] sm:$0xff] }
  0x61   : > { %923 = vmatpush.msra.mxu1 %v2007_v15  ;;  %663 = vmatpush.msrb.mxu2 %v402_v16  ;;  %v1948_v15 = vld [vmem:[%s4077_s5 + $0x3d0] sm:$0xff]  ;;  %v1949_v16 = vld [vmem:[%s4077_s5 + $0x3d8] sm:$0xff] }
  0x62   : > { %963 = vmatpush.msra.mxu3 %v2009_v17  ;;  %664 = vmatmul.f32.vlgmr.msrb.gmra.mxu2 %v397_v4  ;;  %v1961_v4 = vld [vmem:[%s4078_s6 + $0x238] sm:$0xff]  ;;  %v1942_v17 = vld [vmem:[%s4077_s5 + $0x3a0] sm:$0xff] }
  0x63   : > { %904 = vmatpush.msra.mxu0 %v2002_v18  ;;  %941 = vmatpush.msra.mxu2 %v2016_v19  ;;  %v1943_v18 = vld [vmem:[%s4077_s5 + $0x3a8] sm:$0xff]  ;;  %v1944_v19 = vld [vmem:[%s4077_s5 + $0x3b0] sm:$0xff] }
  0x64   : > { %924 = vmatpush.msra.mxu1 %v2003_v20  ;;  %964 = vmatpush.msra.mxu3 %v2005_v21  ;;  %v1945_v20 = vld [vmem:[%s4077_s5 + $0x3b8] sm:$0xff] }
  0x65   : > { %942 = vmatpush.msra.mxu2 %v2012_v22  ;;  %905 = vmatpush.msra.mxu0 %v1998_v25  ;;  %v1940_v25 = vld [vmem:[%s4077_s5 + $0x390] sm:$0xff] }
  0x66   : > { %925 = vmatpush.msra.mxu1 %v1999_v26  ;;  %965 = vmatpush.msra.mxu3 %v2001_v28  ;;  %v1941_v26 = vld [vmem:[%s4077_s5 + $0x398] sm:$0xff]  ;;  %v1935_v28 = vld [vmem:[%s4077_s5 + $0x368] sm:$0xff] }
  0x67   : > { %943 = vmatpush.msra.mxu2 %v2008_v23  ;;  %906 = vmatpush.msra.mxu0 %v1994_v29  ;;  %v1938_v23 = vld [vmem:[%s4077_s5 + $0x380] sm:$0xff]  ;;  %v1936_v29 = vld [vmem:[%s4077_s5 + $0x370] sm:$0xff] }
  0x68   : > { %926 = vmatpush.msra.mxu1 %v1995_v30  ;;  %966 = vmatpush.msra.mxu3 %v1997_v32  ;;  %v1937_v30 = vld [vmem:[%s4077_s5 + $0x378] sm:$0xff]  ;;  %v1931_v32 = vld [vmem:[%s4077_s5 + $0x348] sm:$0xff] }
  0x69   : > { %944 = vmatpush.msra.mxu2 %v2004_v24  ;;  %907 = vmatpush.msra.mxu0 %v1990_v33  ;;  %v1939_v24 = vld [vmem:[%s4077_s5 + $0x388] sm:$0xff]  ;;  %v1932_v33 = vld [vmem:[%s4077_s5 + $0x350] sm:$0xff] }
  0x6a   : > { %927 = vmatpush.msra.mxu1 %v1991_v34  ;;  %967 = vmatpush.msra.mxu3 %v1993_v36  ;;  %v2846_v34 = vld [vmem:[%s4079_s7] sm:$0xf] }
  0x6b   : > { %945 = vmatpush.msra.mxu2 %v2000_v27  ;;  %908 = vmatpush.msra.mxu0 %v1986_v37  ;;  %v1934_v27 = vld [vmem:[%s4077_s5 + $0x360] sm:$0xff]  ;;  %v1927_v37 = vld [vmem:[%s4077_s5 + $0x328] sm:$0xff] }
  0x6c   : > { %928 = vmatpush.msra.mxu1 %v1987_v38  ;;  %968 = vmatpush.msra.mxu3 %v1989_v40  ;;  %v1926_v36 = vld [vmem:[%s4077_s5 + $0x320] sm:$0xff]  ;;  %v1928_v38 = vld [vmem:[%s4077_s5 + $0x330] sm:$0xff]  ;;  %v1929_v40 = vld [vmem:[%s4077_s5 + $0x338] sm:$0xff] }
  0x6d   : > { %946 = vmatpush.msra.mxu2 %v1996_v31  ;;  %909 = vmatpush.msra.mxu0 %v1982_v41  ;;  %v1930_v31 = vld [vmem:[%s4077_s5 + $0x340] sm:$0xff] }
  0x6e   : > { %929 = vmatpush.msra.mxu1 %v1983_v42  ;;  %969 = vmatpush.msra.mxu3 %v1985_v44  ;;  %v1922_v41 = vld [vmem:[%s4077_s5 + $0x300] sm:$0xff]  ;;  %v1923_v42 = vld [vmem:[%s4077_s5 + $0x308] sm:$0xff]  ;;  %v690_v44 = vperm.slane %v2846_v34, 0 }
  0x6f   : > { %947 = vmatpush.msra.mxu2 %v1992_v35  ;;  %910 = vmatpush.msra.mxu0 %v1978_v45  ;;  %v1933_v35 = vld [vmem:[%s4077_s5 + $0x358] sm:$0xff]  ;;  %v691_v45 = vperm.slane %v2846_v34, 1 }
  0x70   : > { %930 = vmatpush.msra.mxu1 %v1979_v46  ;;  %970 = vmatpush.msra.mxu3 %v1981_v48  ;;  %v1925_v46 = vld [vmem:[%s4077_s5 + $0x318] sm:$0xff] }
  0x71   : > { %948 = vmatpush.msra.mxu2 %v1988_v39  ;;  %911 = vmatpush.msra.mxu0 %v1974_v49  ;;  %v1918_v49 = vld [vmem:[%s4077_s5 + $0x2e0] sm:$0xff] }
  0x72   : > { %931 = vmatpush.msra.mxu1 %v1975_v50  ;;  %971 = vmatpush.msra.mxu3 %v1977_v52  ;;  %v1919_v50 = vld [vmem:[%s4077_s5 + $0x2e8] sm:$0xff] }
  0x73   : > { %949 = vmatpush.msra.mxu2 %v1984_v43  ;;  %912 = vmatpush.msra.mxu0 %v1970_v53  ;;  %v1924_v43 = vld [vmem:[%s4077_s5 + $0x310] sm:$0xff] }
  0x74   : > { %932 = vmatpush.msra.mxu1 %v1971_v54  ;;  %972 = vmatpush.msra.mxu3 %v1973_v56  ;;  %v1921_v54 = vld [vmem:[%s4077_s5 + $0x2f8] sm:$0xff]  ;;  %v1915_v56 = vld [vmem:[%s4077_s5 + $0x2c8] sm:$0xff] }
  0x75   : > { %950 = vmatpush.msra.mxu2 %v1980_v47  ;;  %913 = vmatpush.msra.mxu0 %v1966_v57  ;;  %v1916_v57 = vld [vmem:[%s4077_s5 + $0x2d0] sm:$0xff] }
  0x76   : > { %933 = vmatpush.msra.mxu1 %v1967_v58  ;;  %973 = vmatpush.msra.mxu3 %v1969_v60  ;;  %v1917_v60 = vld [vmem:[%s4077_s5 + $0x2d8] sm:$0xff] }
  0x77   : > { %951 = vmatpush.msra.mxu2 %v1976_v51  ;;  %914 = vmatpush.msra.mxu0 %v1962_v61  ;;  %v1920_v51 = vld [vmem:[%s4077_s5 + $0x2f0] sm:$0xff]  ;;  %v1910_v61 = vld [vmem:[%s4077_s5 + $0x2a0] sm:$0xff] }
  0x78   : > { %934 = vmatpush.msra.mxu1 %v1963_v62  ;;  %974 = vmatpush.msra.mxu3 %v1965_v0  ;;  %v1911_v62 = vld [vmem:[%s4077_s5 + $0x2a8] sm:$0xff] }
  0x79   : > { %952 = vmatpush.msra.mxu2 %v1972_v55  ;;  %915 = vmatpush.msra.mxu0 %v1958_v1  ;;  %v1914_v55 = vld [vmem:[%s4077_s5 + $0x2c0] sm:$0xff] }
  0x7a   : > { %935 = vmatpush.msra.mxu1 %v1959_v2  ;;  %975 = vmatpush.msra.mxu3 %v1961_v4  ;;  %v693_v4 = vperm.slane %v2846_v34, 3 }
  0x7b   : > { %953 = vmatpush.msra.mxu2 %v1968_v59  ;;  %916 = vmatpush.msra.mxu0 %v1954_v5  ;;  %v1906_v5 = vld [vmem:[%s4077_s5 + $0x280] sm:$0xff] }
  0x7c   : > { %936 = vmatpush.msra.mxu1 %v1955_v6  ;;  %976 = vmatpush.msra.mxu3 %v1957_v8  ;;  %v1907_v6 = vld [vmem:[%s4077_s5 + $0x288] sm:$0xff] }
  0x7d   : > { %954 = vmatpush.msra.mxu2 %v1964_v63  ;;  %981 = vmatpush.msrb.mxu0 %v1950_v9  ;;  %v1912_v63 = vld [vmem:[%s4077_s5 + $0x2b0] sm:$0xff]  ;;  %v1909_v9 = vld [vmem:[%s4077_s5 + $0x298] sm:$0xff] }
  0x7e   : > { %1001 = vmatpush.msrb.mxu1 %v1951_v10  ;;  %1041 = vmatpush.msrb.mxu3 %v1953_v12  ;;  %v768_v10 = vld [vmem:[#allocation2 + $0x8] sm:$0xff]  ;;  %v1902_v12 = vld [vmem:[%s4077_s5 + $0x260] sm:$0xff] }
  0x7f   : > { %955 = vmatpush.msra.mxu2 %v1960_v3  ;;  %982 = vmatpush.msrb.mxu0 %v1946_v13  ;;  %v1913_v3 = vld [vmem:[%s4077_s5 + $0x2b8] sm:$0xff]  ;;  %v1903_v13 = vld [vmem:[%s4077_s5 + $0x268] sm:$0xff] }
  0x80   : > { %1002 = vmatpush.msrb.mxu1 %v1947_v14  ;;  %1042 = vmatpush.msrb.mxu3 %v1949_v16  ;;  %v1905_v16 = vld [vmem:[%s4077_s5 + $0x278] sm:$0xff] }
  0x81   : > { %956 = vmatpush.msra.mxu2 %v1956_v7  ;;  %983 = vmatpush.msrb.mxu0 %v1942_v17  ;;  %v1908_v7 = vld [vmem:[%s4077_s5 + $0x290] sm:$0xff]  ;;  %v1898_v17 = vld [vmem:[%s4077_s5 + $0x240] sm:$0xff] }
  0x82   : > { %1003 = vmatpush.msrb.mxu1 %v1943_v18  ;;  %1043 = vmatpush.msrb.mxu3 %v1945_v20  ;;  %v1899_v18 = vld [vmem:[%s4077_s5 + $0x248] sm:$0xff]  ;;  %v1900_v20 = vld [vmem:[%s4077_s5 + $0x250] sm:$0xff] }
  0x83   : > { %1021 = vmatpush.msrb.mxu2 %v1952_v11  ;;  %984 = vmatpush.msrb.mxu0 %v1938_v23  ;;  %v1894_v23 = vld [vmem:[%s4077_s5 + $0x220] sm:$0xff] }
  0x84   : > { %1004 = vmatpush.msrb.mxu1 %v1939_v24  ;;  %1044 = vmatpush.msrb.mxu3 %v1941_v26  ;;  %v1895_v24 = vld [vmem:[%s4077_s5 + $0x228] sm:$0xff] }
  0x85   : > { %1022 = vmatpush.msrb.mxu2 %v1948_v15  ;;  %985 = vmatpush.msrb.mxu0 %v1934_v27  ;;  %v1904_v15 = vld [vmem:[%s4077_s5 + $0x270] sm:$0xff] }
  0x86   : > { %1005 = vmatpush.msrb.mxu1 %v1935_v28  ;;  %1045 = vmatpush.msrb.mxu3 %v1937_v30  ;;  %v1896_v27 = vld [vmem:[%s4077_s5 + $0x230] sm:$0xff]  ;;  %v1897_v28 = vld [vmem:[%s4077_s5 + $0x238] sm:$0xff] }
  0x87   : > { %1023 = vmatpush.msrb.mxu2 %v1944_v19  ;;  %986 = vmatpush.msrb.mxu0 %v1930_v31  ;;  %v1890_v31 = vld [vmem:[%s4077_s5 + $0x200] sm:$0xff] }
  0x88   : > { %1006 = vmatpush.msrb.mxu1 %v1931_v32  ;;  %1046 = vmatpush.msrb.mxu3 %v1933_v35  ;;  %v1891_v32 = vld [vmem:[%s4077_s5 + $0x208] sm:$0xff]  ;;  %v1893_v35 = vld [vmem:[%s4077_s5 + $0x218] sm:$0xff] }
  0x89   : > { %1024 = vmatpush.msrb.mxu2 %v1940_v25  ;;  %987 = vmatpush.msrb.mxu0 %v1926_v36  ;;  %v2985_v36 = vld [vmem:[%s4075_s3 + $0x78] sm:$0xff] }
  0x8a   : > { %1007 = vmatpush.msrb.mxu1 %v1927_v37  ;;  %1047 = vmatpush.msrb.mxu3 %v1929_v40  ;;  %v2990_v37 = vld [vmem:[%s4075_s3 + $0xf8] sm:$0xff] }
  0x8b   : > { %1025 = vmatpush.msrb.mxu2 %v1936_v29  ;;  %988 = vmatpush.msrb.mxu0 %v1922_v41  ;;  %v2997_v40 = vld [vmem:[%s4075_s3 + $0x178] sm:$0xff] }
  0x8c   : > { %1008 = vmatpush.msrb.mxu1 %v1923_v42  ;;  %1048 = vmatpush.msrb.mxu3 %v1925_v46  ;;  %v3002_v41 = vld [vmem:[%s4075_s3 + $0x1f8] sm:$0xff] }
  0x8d   : > { %1026 = vmatpush.msrb.mxu2 %v1932_v33  ;;  %989 = vmatpush.msrb.mxu0 %v1918_v49  ;;  %v1892_v33 = vld [vmem:[%s4077_s5 + $0x210] sm:$0xff] }
  0x8e   : > { %1009 = vmatpush.msrb.mxu1 %v1919_v50  ;;  %1049 = vmatpush.msrb.mxu3 %v1921_v54  ;;  %v3045_v54 = vld [vmem:[%s4075_s3 + $0xe8] sm:$0xff] }
  0x8f   : > { %1027 = vmatpush.msrb.mxu2 %v1928_v38  ;;  %990 = vmatpush.msrb.mxu0 %v1914_v55 }
  0x90   : > { %1010 = vmatpush.msrb.mxu1 %v1915_v56  ;;  %1050 = vmatpush.msrb.mxu3 %v1917_v60 }
  0x91   : > { %1028 = vmatpush.msrb.mxu2 %v1924_v43  ;;  %991 = vmatpush.msrb.mxu0 %v1910_v61  ;;  %v3013_v43 = vld [vmem:[%s4075_s3 + $0x70] sm:$0xff] }
  0x92   : > { %1011 = vmatpush.msrb.mxu1 %v1911_v62  ;;  %1051 = vmatpush.msrb.mxu3 %v1913_v3  ;;  %v3076_v3 = vld [vmem:[%s4075_s3 + $0xe0] sm:$0xff] }
  0x93   : > { %1029 = vmatpush.msrb.mxu2 %v1920_v51  ;;  %992 = vmatpush.msrb.mxu0 %v1906_v5 }
  0x94   : > { %1012 = vmatpush.msrb.mxu1 %v1907_v6  ;;  %1052 = vmatpush.msrb.mxu3 %v1909_v9 }
  0x95   : > { %1030 = vmatpush.msrb.mxu2 %v1916_v57  ;;  %917 = vmatmul.f32.vlgmr.msra.gmra.mxu0 %v768_v10  ;;  %v3051_v57 = vld [vmem:[%s4075_s3 + $0x168] sm:$0xff] }
  0x96   : > { %937 = vmatmul.f32.vlgmr.msra.gmra.mxu1 %v768_v10  ;;  %957 = vmatmul.f32.vlgmr.msra.gmra.mxu2 %v768_v10 }
  0x97   : > { %1031 = vmatpush.msrb.mxu2 %v1912_v63  ;;  %977 = vmatmul.f32.vlgmr.msra.gmra.mxu3 %v768_v10  ;;  %v399_v10 = vld [vmem:[#allocation3 + $0x8] sm:$0xff] }
  0x98   : > { %993 = vmatpush.msrb.mxu0 %v1902_v12  ;;  %1013 = vmatpush.msrb.mxu1 %v1903_v13 }
  0x99   : > { %1032 = vmatpush.msrb.mxu2 %v1908_v7  ;;  %1053 = vmatpush.msrb.mxu3 %v1905_v16  ;;  %v3085_v7 = vld [vmem:[%s4075_s3 + $0x160] sm:$0xff] }
  0x9a   : > { %994 = vmatpush.msrb.mxu0 %v1898_v17  ;;  %1014 = vmatpush.msrb.mxu1 %v1899_v18  ;;  %v3100_v18 = vld [vmem:[%s4075_s3 + $0x58] sm:$0xff] }
  0x9b   : > { %1033 = vmatpush.msrb.mxu2 %v1904_v15 }
  0x9c   : > { %995 = vmatpush.msrb.mxu0 %v1894_v23  ;;  %1015 = vmatpush.msrb.mxu1 %v1895_v24  ;;  %v3116_v23 = vld [vmem:[%s4075_s3 + $0x1d8] sm:$0xff] }
  0x9d   : > { %1034 = vmatpush.msrb.mxu2 %v1900_v20 }
  0x9e   : > { %996 = vmatpush.msrb.mxu0 %v1890_v31  ;;  %1016 = vmatpush.msrb.mxu1 %v1891_v32 }
  0x9f   : > { %1035 = vmatpush.msrb.mxu2 %v1896_v27  ;;  %v3132_v27 = vld [vmem:[%s4075_s3 + $0xd0] sm:$0xff] }
  0xa0   : > { %1292 = vmatpush.xpose.msra.mxu0 %v2985_v36  ;;  %1312 = vmatpush.xpose.msra.mxu1 %v2990_v37 }
  0xa1   : > { %1036 = vmatpush.msrb.mxu2 %v1892_v33  ;;  %v3155_v33 = vld [vmem:[%s4075_s3 + $0x48] sm:$0xff] }
  0xa3   : > { %1332 = vmatpush.xpose.msra.mxu2 %v2997_v40 }
  0xa4   : > { %1293 = vmatpush.xpose.msra.mxu0 %v3013_v43 }
  0xca   : > { %v545_v21 = vpop.f32.mrf.mxu0 }
  0xcc   : > { %v565_v22 = vpop.f32.mrf.mxu1 }
  0xd5   : > { %v605_v39 = vpop.f32.mrf.mxu3 }
  0xd7   : > { %v625_v47 = vpop.f32.mrf.mxu0 }
  0xd8   : > { %v645_v48 = vpop.f32.mrf.mxu1  ;;  %v626_v52 = vadd.f32 %v625_v47, %v545_v21  ;;  %v1901_v21 = vld [vmem:[%s4077_s5 + $0x258] sm:$0xff]  ;;  %v3023_v47 = vld [vmem:[%s4075_s3 + $0x170] sm:$0xff] }
  0xd9   : > { %v646_v53 = vadd.f32 %v645_v48, %v565_v22  ;;  %1054 = vmatpush.msrb.mxu3 %v1901_v21  ;;  %v3028_v48 = vld [vmem:[%s4075_s3 + $0x1f0] sm:$0xff]  ;;  %1333 = vmatpush.xpose.msra.mxu2 %v3023_v47 }
  0xda   : > { %v698_v58 = vadd.f32 %v690_v44, %v626_v52  ;;  %v3018_v44 = vld [vmem:[%s4075_s3 + $0xf0] sm:$0xff] }
  0xdb   : > { %v699_v59 = vadd.f32 %v691_v45, %v646_v53  ;;  %1055 = vmatpush.msrb.mxu3 %v1897_v28  ;;  %1313 = vmatpush.xpose.msra.mxu1 %v3018_v44  ;;  %v3040_v53 = vld [vmem:[%s4075_s3 + $0x68] sm:$0xff] }
  0xdc   : > { %v1887_v0 = vmul.f32 -1.442695, %v698_v58  ;;  %v2910_v2 = vpop.f32.mrf.mxu2  ;;  %v3056_v58 = vld [vmem:[%s4075_s3 + $0x1e8] sm:$0xff]  ;;  %1294 = vmatpush.xpose.msra.mxu0 %v3040_v53 }
  0xdd   : > { %v1888_v1 = vmul.f32 -1.442695, %v699_v59  ;;  %1056 = vmatpush.msrb.mxu3 %v1893_v35  ;;  %1334 = vmatpush.xpose.msra.mxu2 %v3051_v57  ;;  %v3160_v35 = vld [vmem:[%s4075_s3 + $0xc8] sm:$0xff] }
  0xde   : > { %2034 = vpow2.f32 %v1887_v0 }
  0xdf   : > { %v685_v8 = vpop.f32.mrf.mxu3  ;;  %2036 = vpow2.f32 %v1888_v1  ;;  %1352 = vmatpush.xpose.msra.mxu3 %v3002_v41  ;;  %1314 = vmatpush.xpose.msra.mxu1 %v3045_v54 }
  0xe0   : > { %v686_v11 = vadd.f32 %v685_v8, %v605_v39  ;;  %v692_v39 = vperm.slane %v2846_v34, 2  ;;  %v3090_v8 = vld [vmem:[%s4075_s3 + $0x1e0] sm:$0xff] }
  0xe1   : > { %1335 = vmatpush.xpose.msra.mxu2 %v3085_v7 }
  0xe2   : > { %v701_v14 = vadd.f32 %v693_v4, %v686_v11 }
  0xe3   : > { %1353 = vmatpush.xpose.msra.mxu3 %v3028_v48  ;;  %1315 = vmatpush.xpose.msra.mxu1 %v3076_v3 }
  0xe4   : > { %v1889_v19 = vmul.f32 -1.442695, %v701_v14  ;;  %v2035_v22 = vpop.eup %2034 }
  0xe5   : > { %v2037_v25 = vpop.eup %2036  ;;  %v2958_v26 = vadd.f32 1.0, %v2035_v22  ;;  %v665_v30 = vpop.f32.mrf.mxu2  ;;  %v3111_v22 = vld [vmem:[%s4075_s3 + $0x158] sm:$0xff] }
  0xe6   : > { %2038 = vpow2.f32 %v1889_v19  ;;  %v2966_v29 = vadd.f32 1.0, %v2037_v25  ;;  %v666_v38 = vadd.f32 %v665_v30, %v2910_v2  ;;  %v3071_v2 = vld [vmem:[%s4075_s3 + $0x60] sm:$0xff]  ;;  %v3105_v19 = vld [vmem:[%s4075_s3 + $0xd8] sm:$0xff]  ;;  %1336 = vmatpush.xpose.msra.mxu2 %v3111_v22  ;;  %v3143_v30 = vld [vmem:[%s4075_s3 + $0x1d0] sm:$0xff] }
  0xe7   : > { %2040 = vrcp.f32 %v2958_v26  ;;  %v717_v56 = vand.u32 2147483648, %v2958_v26  ;;  %v715_v61 = vand.u32 2147483647, %v2958_v26  ;;  %vm711_vm2 = vweird.f32 %v2958_v26  ;;  %1354 = vmatpush.xpose.msra.mxu3 %v3056_v58  ;;  %1295 = vmatpush.xpose.msra.mxu0 %v3071_v2 }
  0xe8   : > { %2042 = vrcp.f32 %v2966_v29  ;;  %v700_v46 = vadd.f32 %v692_v39, %v666_v38  ;;  %v736_v59 = vand.u32 2147483648, %v2966_v29  ;;  %v734_v63 = vand.u32 2147483647, %v2966_v29  ;;  %1316 = vmatpush.xpose.msra.mxu1 %v3105_v19  ;;  %v3165_v39 = vld [vmem:[%s4075_s3 + $0x148] sm:$0xff] }
  0xe9   : > { %vm730_vm3 = vweird.f32 %v2966_v29  ;;  %v718_v5 = vor.u32 1.1754944e-38, %v717_v56  ;;  %vm716_vm6 = vcmp.eq.f32.partialorder %v715_v61, 8.507059e+37  ;;  %v3208_v56 = vld [vmem:[%s4075_s3 + $0xb8] sm:$0xff]  ;;  %v3227_v61 = vld [vmem:[%s4075_s3 + $0x30] sm:$0xff] }
  0xea   : > { %v737_v9 = vor.u32 1.1754944e-38, %v736_v59  ;;  %vm735_vm7 = vcmp.eq.f32.partialorder %v734_v63, 8.507059e+37  ;;  %v3213_v59 = vld [vmem:[%s4075_s3 + $0x138] sm:$0xff]  ;;  %4174 = vst [vmem:[#allocation5_spill] sm:$0xff] %v3227_v61  ;;  %v3237_v63 = vld [vmem:[%s4075_s3 + $0x130] sm:$0xff] }
  0xeb   : > { %1355 = vmatpush.xpose.msra.mxu3 %v3090_v8  ;;  %1296 = vmatpush.xpose.msra.mxu0 %v3100_v18  ;;  %4175 = vst [vmem:[#allocation6_spill] sm:$0xff] %v3237_v63 }
  0xec   : > { %v2039_v42 = vpop.eup %2038  ;;  %1317 = vmatpush.xpose.msra.mxu1 %v3132_v27 }
  0xed   : > { %v3006_v34 = vadd.f32 1.0, %v2039_v42  ;;  %v2041_v45 = vpop.eup %2040  ;;  %v3170_v42 = vld [vmem:[%s4075_s3 + $0x1c8] sm:$0xff] }
  0xee   : > { %v2043_v49 = vpop.eup %2042  ;;  %v707_v50 = vmul.f32 %v2041_v45, %v2958_v26  ;;  %vm712_vm0 = vweird.f32 %v2041_v45  ;;  %v3127_v26 = vld [vmem:[%s4075_s3 + $0x50] sm:$0xff] }
  0xef   : > { %2044 = vrcp.f32 %v3006_v34  ;;  %v726_v51 = vmul.f32 %v2043_v49, %v2966_v29  ;;  %vm731_vm1 = vweird.f32 %v2043_v49  ;;  %vm713_vm4 = vmor %vm711_vm2, %vm712_vm0  ;;  %1356 = vmatpush.xpose.msra.mxu3 %v3116_v23  ;;  %v756_v28 = vand.u32 2147483648, %v3006_v34  ;;  %v3138_v29 = vld [vmem:[%s4075_s3 + $0x150] sm:$0xff]  ;;  %1297 = vmatpush.xpose.msra.mxu0 %v3127_v26 }
  0xf0   : > { %v708_v52 = vsub.f32 1.0, %v707_v50  ;;  %2046 = vtanh.f32 %v700_v46  ;;  %vm732_vm5 = vmor %vm730_vm3, %vm731_vm1  ;;  %vm750_vm9 = vweird.f32 %v3006_v34  ;;  %v754_v31 = vand.u32 2147483647, %v3006_v34  ;;  %1337 = vmatpush.xpose.msra.mxu2 %v3138_v29  ;;  %1318 = vmatpush.xpose.msra.mxu1 %v3160_v35  ;;  %v3184_v50 = vld [vmem:[%s4075_s3 + $0xc0] sm:$0xff] }
  0xf1   : > { %v727_v55 = vsub.f32 1.0, %v726_v51  ;;  %v757_v38 = vor.u32 1.1754944e-38, %v756_v28  ;;  %v3189_v51 = vld [vmem:[%s4075_s3 + $0x140] sm:$0xff]  ;;  %v3352_v28 = vld [vmem:[%s4075_s3 + $0x88] sm:$0xff] }
  0xf2   : > { %v709_v60 = vmul.f32 %v2041_v45, %v708_v52  ;;  %vm755_vm11 = vcmp.eq.f32.partialorder %v754_v31, 8.507059e+37  ;;  %v3194_v52 = vld [vmem:[%s4075_s3 + $0x1c0] sm:$0xff]  ;;  %4193 = vst [vmem:[#allocation24_spill] sm:$0xff] %v3352_v28  ;;  %v3357_v31 = vld [vmem:[%s4075_s3 + $0x108] sm:$0xff] }
  0xf3   : > { %v728_v62 = vmul.f32 %v2043_v49, %v727_v55  ;;  %1357 = vmatpush.xpose.msra.mxu3 %v3143_v30  ;;  %1298 = vmatpush.xpose.msra.mxu0 %v3155_v33  ;;  %v3203_v55 = vld [vmem:[%s4075_s3 + $0x38] sm:$0xff]  ;;  %4194 = vst [vmem:[#allocation25_spill] sm:$0xff] %v3357_v31 }
  0xf4   : > { %v710_v1 = vadd.f32 %v2041_v45, %v709_v60  ;;  %1338 = vmatpush.xpose.msra.mxu2 %v3165_v39  ;;  %1319 = vmatpush.xpose.msra.mxu1 %v3184_v50  ;;  %v3218_v60 = vld [vmem:[%s4075_s3 + $0x1b8] sm:$0xff] }
  0xf5   : > { %v3063_v0 = vpop.eup %2044  ;;  %v729_v6 = vadd.f32 %v2043_v49, %v728_v62  ;;  %v3232_v62 = vld [vmem:[%s4075_s3 + $0xb0] sm:$0xff] }
  0xf6   : > { %v746_v4 = vmul.f32 %v3063_v0, %v3006_v34  ;;  %v714_v11 = vsel %vm713_vm4, %v2041_v45, %v710_v1  ;;  %v2047_v12 = vpop.eup %2046  ;;  %vm751_vm8 = vweird.f32 %v3063_v0  ;;  %v3251_v1 = vld [vmem:[%s4075_s3 + $0x28] sm:$0xff] }
  0xf7   : > { %v719_v14 = vsel %vm716_vm6, %v718_v5, %v714_v11  ;;  %v733_v15 = vsel %vm732_vm5, %v2043_v49, %v729_v6  ;;  %vm752_vm10 = vmor %vm750_vm9, %vm751_vm8  ;;  %1358 = vmatpush.xpose.msra.mxu3 %v3170_v42  ;;  %v3179_v49 = vld [vmem:[%s4075_s3 + $0x40] sm:$0xff]  ;;  %4177 = vst [vmem:[#allocation8_spill] sm:$0xff] %v3251_v1  ;;  %v3261_v5 = vld [vmem:[%s4075_s3 + $0x128] sm:$0xff]  ;;  %vm1468_vm9 = vcmask 1040384  }
  0xf8   : > { %v747_v13 = vsub.f32 1.0, %v746_v4  ;;  %v738_v16 = vsel %vm735_vm7, %v737_v9, %v733_v15  ;;  %v761_v17 = vmul.f32 %v2047_v12, %v719_v14  ;;  %1299 = vmatpush.xpose.msra.mxu0 %v3179_v49  ;;  %1339 = vmatpush.xpose.msra.mxu2 %v3189_v51  ;;  %v3256_v4 = vld [vmem:[%s4075_s3 + $0xa8] sm:$0xff]  ;;  %4178 = vst [vmem:[#allocation9_spill] sm:$0xff] %v3261_v5  ;;  %v3275_v9 = vld [vmem:[%s4075_s3 + $0x20] sm:$0xff]  ;;  %v3304_v14 = vld [vmem:[%s4075_s3 + $0x98] sm:$0xff] }
  0xf9   : > { %v760_v21 = vmul.f32 %v738_v16, %v399_v10  ;;  %1320 = vmatpush.xpose.msra.mxu1 %v3208_v56  ;;  %v3266_v6 = vld [vmem:[%s4075_s3 + $0x1a8] sm:$0xff]  ;;  %4180 = vst [vmem:[#allocation11_spill] sm:$0xff] %v3275_v9  ;;  %v3280_v10 = vld [vmem:[%s4075_s3 + $0xa0] sm:$0xff]  ;;  %v3309_v15 = vld [vmem:[%s4075_s3 + $0x118] sm:$0xff] }
  0xfa   : > { %v748_v20 = vmul.f32 %v3063_v0, %v747_v13  ;;  %4179 = vst [vmem:[#allocation10_spill] sm:$0xff] %v3266_v6  ;;  %v3285_v11 = vld [vmem:[%s4075_s3 + $0x120] sm:$0xff]  ;;  %v3299_v13 = vld [vmem:[%s4075_s3 + $0x18] sm:$0xff] }
  0xfb   : > { %v762_v24 = vadd.f32 %v761_v17, %v760_v21  ;;  %1359 = vmatpush.xpose.msra.mxu3 %v3194_v52  ;;  %4181 = vst [vmem:[#allocation12_spill] sm:$0xff] %v3280_v10  ;;  %v3290_v12 = vld [vmem:[%s4075_s3 + $0x1a0] sm:$0xff]  ;;  %v3314_v16 = vld [vmem:[%s4075_s3 + $0x198] sm:$0xff]  ;;  %v3323_v17 = vld [vmem:[%s4075_s3 + $0x10] sm:$0xff] }
  0xfc   : > { %v749_v25 = vadd.f32 %v3063_v0, %v748_v20  ;;  %1300 = vmatpush.xpose.msra.mxu0 %v3203_v55  ;;  %1340 = vmatpush.xpose.msra.mxu2 %v3213_v59  ;;  %4182 = vst [vmem:[#allocation13_spill] sm:$0xff] %v3285_v11  ;;  %v3328_v20 = vld [vmem:[%s4075_s3 + $0x90] sm:$0xff] }
  0xfd   : > { %2048 = vtanh.f32 %v762_v24  ;;  %766 = vst [vmem:[#allocation3 + $0x8] sm:$0xff] %v762_v24  ;;  %1321 = vmatpush.xpose.msra.mxu1 %v3232_v62  ;;  %v3333_v21 = vld [vmem:[%s4075_s3 + $0x110] sm:$0xff] }
  0xfe   : > { %v753_v32 = vsel %vm752_vm10, %v3063_v0, %v749_v25  ;;  %v3242_v0 = vld [vmem:[%s4075_s3 + $0x1b0] sm:$0xff]  ;;  %4183 = vst [vmem:[#allocation14_spill] sm:$0xff] %v3290_v12  ;;  %v3347_v25 = vld [vmem:[%s4075_s3 + $0x8] sm:$0xff] }
  0xff   : > { %v758_v45 = vsel %vm755_vm11, %v757_v38, %v753_v32  ;;  %1360 = vmatpush.xpose.msra.mxu3 %v3218_v60  ;;  %4176 = vst [vmem:[#allocation7_spill] sm:$0xff] %v3242_v0  ;;  %v3338_v24 = vld [vmem:[%s4075_s3 + $0x190] sm:$0xff]  ;;  %v3362_v32 = vld [vmem:[%s4075_s3 + $0x188] sm:$0xff]  ;;  %v3371_v38 = vld [vmem:[%s4075_s3] sm:$0xff] }
 0x100   : > { %1301 = vmatpush.xpose.msra.mxu0 %v3227_v61  ;;  %1341 = vmatpush.xpose.msra.mxu2 %v3237_v63  ;;  %4184 = vst [vmem:[#allocation15_spill] sm:$0xff] %v3299_v13 }
 0x101   : > { %1322 = vmatpush.xpose.msra.mxu1 %v3256_v4  ;;  %4185 = vst [vmem:[#allocation16_spill] sm:$0xff] %v3304_v14 }
 0x102   : > { %4186 = vst [vmem:[#allocation17_spill] sm:$0xff] %v3309_v15 }
 0x103   : > { %v2049_v34 = vpop.eup %2048  ;;  %1361 = vmatpush.xpose.msra.mxu3 %v3242_v0  ;;  %4187 = vst [vmem:[#allocation18_spill] sm:$0xff] %v3314_v16 }
 0x104   : > { %v764_v46 = vmul.f32 %v2049_v34, %v758_v45  ;;  %1302 = vmatpush.xpose.msra.mxu0 %v3251_v1  ;;  %1342 = vmatpush.xpose.msra.mxu2 %v3261_v5  ;;  %4188 = vst [vmem:[#allocation19_spill] sm:$0xff] %v3323_v17  ;;  %v3376_v34 = vld [vmem:[%s4075_s3 + $0x278] sm:$0xff]  ;;  %v3383_v45 = vld [vmem:[%s4075_s3 + $0x80] sm:$0xff] }
 0x105   : > { %1323 = vmatpush.xpose.msra.mxu1 %v3280_v10  ;;  %4189 = vst [vmem:[#allocation20_spill] sm:$0xff] %v3328_v20 }
 0x106   : > { %765 = vst [vmem:[#allocation2] sm:$0xff] %v764_v46  ;;  %997 = vmatmul.f32.vlgmr.msrb.gmra.mxu0 %v764_v46  ;;  %1017 = vmatmul.f32.vlgmr.msrb.gmra.mxu1 %v764_v46 }
 0x107   : > { %1037 = vmatmul.f32.vlgmr.msrb.gmra.mxu2 %v764_v46  ;;  %1057 = vmatmul.f32.vlgmr.msrb.gmra.mxu3 %v764_v46  ;;  %4190 = vst [vmem:[#allocation21_spill] sm:$0xff] %v3333_v21  ;;  %v3388_v46 = vld [vmem:[%s4075_s3 + $0x100] sm:$0xff] }
 0x108   : > { %1362 = vmatpush.xpose.msra.mxu3 %v3266_v6  ;;  %1303 = vmatpush.xpose.msra.mxu0 %v3275_v9  ;;  %4191 = vst [vmem:[#allocation22_spill] sm:$0xff] %v3338_v24 }
 0x109   : > { %1343 = vmatpush.xpose.msra.mxu2 %v3285_v11  ;;  %1324 = vmatpush.xpose.msra.mxu1 %v3304_v14  ;;  %4192 = vst [vmem:[#allocation23_spill] sm:$0xff] %v3347_v25 }
 0x10a   : > { %4195 = vst [vmem:[#allocation26_spill] sm:$0xff] %v3362_v32 }
 0x10b   : > { %4196 = vst [vmem:[#allocation27_spill] sm:$0xff] %v3371_v38 }
 0x10c   : > { %1363 = vmatpush.xpose.msra.mxu3 %v3290_v12  ;;  %1304 = vmatpush.xpose.msra.mxu0 %v3299_v13  ;;  %4197 = vst [vmem:[#allocation28_spill] sm:$0xff] %v3376_v34  ;;  %v3648_v12 = vld [vmem:[%s4075_s3 + $0x2a8] sm:$0xff] }
 0x10d   : > { %1344 = vmatpush.xpose.msra.mxu2 %v3309_v15  ;;  %1325 = vmatpush.xpose.msra.mxu1 %v3328_v20  ;;  %4198 = vst [vmem:[#allocation29_spill] sm:$0xff] %v3383_v45 }
 0x10e   : > { %4199 = vst [vmem:[#allocation30_spill] sm:$0xff] %v3388_v46 }
 0x10f   : > { %4241 = vst [vmem:[#allocation72_spill] sm:$0xff] %v3648_v12 }
 0x110   : > { %1364 = vmatpush.xpose.msra.mxu3 %v3314_v16  ;;  %1305 = vmatpush.xpose.msra.mxu0 %v3323_v17 }
 0x111   : > { %1345 = vmatpush.xpose.msra.mxu2 %v3333_v21  ;;  %1326 = vmatpush.xpose.msra.mxu1 %v3352_v28  ;;  %v3642_v28 = vld [vmem:[%s4075_s3 + $0x228] sm:$0xff] }
 0x112   : > { %4240 = vst [vmem:[#allocation71_spill] sm:$0xff] %v3642_v28 }
 0x114   : > { %1365 = vmatpush.xpose.msra.mxu3 %v3338_v24  ;;  %1306 = vmatpush.xpose.msra.mxu0 %v3347_v25  ;;  %v3424_v25 = vld [vmem:[%s4075_s3 + $0x2f0] sm:$0xff]  ;;  %v3569_v24 = vld [vmem:[%s4075_s3 + $0x2c0] sm:$0xff] }
 0x115   : > { %1346 = vmatpush.xpose.msra.mxu2 %v3357_v31  ;;  %1327 = vmatpush.xpose.msra.mxu1 %v3383_v45  ;;  %v3410_v31 = vld [vmem:[%s4075_s3 + $0x3f8] sm:$0xff]  ;;  %4205 = vst [vmem:[#allocation36_spill] sm:$0xff] %v3424_v25 }
 0x116   : > { %4203 = vst [vmem:[#allocation34_spill] sm:$0xff] %v3410_v31 }
 0x117   : > { %4229 = vst [vmem:[#allocation60_spill] sm:$0xff] %v3569_v24 }
 0x118   : > { %1366 = vmatpush.xpose.msra.mxu3 %v3362_v32  ;;  %1307 = vmatpush.xpose.msra.mxu0 %v3371_v38  ;;  %v3393_v32 = vld [vmem:[%s4075_s3 + $0x180] sm:$0xff]  ;;  %v3405_v38 = vld [vmem:[%s4075_s3 + $0x378] sm:$0xff] }
 0x119   : > { %4200 = vst [vmem:[#allocation31_spill] sm:$0xff] %v3393_v32  ;;  %1347 = vmatpush.xpose.msra.mxu2 %v3388_v46  ;;  %v3417_v46 = vld [vmem:[%s4075_s3 + $0x270] sm:$0xff] }
 0x11a   : > { %4202 = vst [vmem:[#allocation33_spill] sm:$0xff] %v3405_v38  ;;  %v978_v45 = vpop.f32.mrf.mxu3 }
 0x11b   : > { %4204 = vst [vmem:[#allocation35_spill] sm:$0xff] %v3417_v46 }
 0x11c   : > { %1372 = vmatpush.xpose.msrb.mxu0 %v3376_v34  ;;  %v3400_v34 = vld [vmem:[%s4075_s3 + $0x2f8] sm:$0xff]  ;;  %1367 = vmatpush.xpose.msra.mxu3 %v3393_v32  ;;  %v3430_v32 = vld [vmem:[%s4075_s3 + $0x370] sm:$0xff] }
 0x11d   : > { %4201 = vst [vmem:[#allocation32_spill] sm:$0xff] %v3400_v34  ;;  %1392 = vmatpush.xpose.msrb.mxu1 %v3400_v34  ;;  %1412 = vmatpush.xpose.msrb.mxu2 %v3405_v38  ;;  %v3435_v34 = vld [vmem:[%s4075_s3 + $0x3f0] sm:$0xff]  ;;  %v3454_v38 = vld [vmem:[%s4075_s3 + $0x368] sm:$0xff] }
 0x11e   : > { %4206 = vst [vmem:[#allocation37_spill] sm:$0xff] %v3430_v32 }
 0x11f   : > { %4207 = vst [vmem:[#allocation38_spill] sm:$0xff] %v3435_v34 }
 0x120   : > { %1432 = vmatpush.xpose.msrb.mxu3 %v3410_v31  ;;  %1373 = vmatpush.xpose.msrb.mxu0 %v3417_v46  ;;  %v3443_v46 = vld [vmem:[%s4075_s3 + $0x268] sm:$0xff]  ;;  %4210 = vst [vmem:[#allocation41_spill] sm:$0xff] %v3454_v38 }
 0x121   : > { %1393 = vmatpush.xpose.msrb.mxu1 %v3424_v25  ;;  %1413 = vmatpush.xpose.msrb.mxu2 %v3430_v32  ;;  %4208 = vst [vmem:[#allocation39_spill] sm:$0xff] %v3443_v46  ;;  %v3449_v31 = vld [vmem:[%s4075_s3 + $0x2e8] sm:$0xff]  ;;  %v3473_v32 = vld [vmem:[%s4075_s3 + $0x2e0] sm:$0xff]  ;;  %v938_v25 = vpop.f32.mrf.mxu1 }
 0x122   : > { %4209 = vst [vmem:[#allocation40_spill] sm:$0xff] %v3449_v31 }
 0x123   : > { %4213 = vst [vmem:[#allocation44_spill] sm:$0xff] %v3473_v32 }
 0x124   : > { %1433 = vmatpush.xpose.msrb.mxu3 %v3435_v34  ;;  %1374 = vmatpush.xpose.msrb.mxu0 %v3443_v46  ;;  %v3461_v34 = vld [vmem:[%s4075_s3 + $0x3e8] sm:$0xff]  ;;  %v3467_v46 = vld [vmem:[%s4075_s3 + $0x260] sm:$0xff] }
 0x125   : > { %1394 = vmatpush.xpose.msrb.mxu1 %v3449_v31  ;;  %1414 = vmatpush.xpose.msrb.mxu2 %v3454_v38  ;;  %4211 = vst [vmem:[#allocation42_spill] sm:$0xff] %v3461_v34  ;;  %v3478_v38 = vld [vmem:[%s4075_s3 + $0x360] sm:$0xff]  ;;  %v3497_v31 = vld [vmem:[%s4075_s3 + $0x2d8] sm:$0xff] }
 0x126   : > { %4212 = vst [vmem:[#allocation43_spill] sm:$0xff] %v3467_v46 }
 0x127   : > { %4214 = vst [vmem:[#allocation45_spill] sm:$0xff] %v3478_v38 }
 0x128   : > { %1434 = vmatpush.xpose.msrb.mxu3 %v3461_v34  ;;  %1375 = vmatpush.xpose.msrb.mxu0 %v3467_v46  ;;  %v3483_v34 = vld [vmem:[%s4075_s3 + $0x3e0] sm:$0xff]  ;;  %v3491_v46 = vld [vmem:[%s4075_s3 + $0x258] sm:$0xff]  ;;  %4217 = vst [vmem:[#allocation48_spill] sm:$0xff] %v3497_v31 }
 0x129   : > { %4215 = vst [vmem:[#allocation46_spill] sm:$0xff] %v3483_v34  ;;  %1395 = vmatpush.xpose.msrb.mxu1 %v3473_v32  ;;  %1415 = vmatpush.xpose.msrb.mxu2 %v3478_v38  ;;  %v3502_v32 = vld [vmem:[%s4075_s3 + $0x358] sm:$0xff]  ;;  %v3521_v38 = vld [vmem:[%s4075_s3 + $0x2d0] sm:$0xff] }
 0x12a   : > { %4216 = vst [vmem:[#allocation47_spill] sm:$0xff] %v3491_v46 }
 0x12b   : > { %4218 = vst [vmem:[#allocation49_spill] sm:$0xff] %v3502_v32 }
 0x12c   : > { %1435 = vmatpush.xpose.msrb.mxu3 %v3483_v34  ;;  %1376 = vmatpush.xpose.msrb.mxu0 %v3491_v46  ;;  %v3507_v34 = vld [vmem:[%s4075_s3 + $0x3d8] sm:$0xff]  ;;  %v3515_v46 = vld [vmem:[%s4075_s3 + $0x250] sm:$0xff]  ;;  %4221 = vst [vmem:[#allocation52_spill] sm:$0xff] %v3521_v38 }
 0x12d   : > { %4219 = vst [vmem:[#allocation50_spill] sm:$0xff] %v3507_v34  ;;  %1396 = vmatpush.xpose.msrb.mxu1 %v3497_v31  ;;  %1416 = vmatpush.xpose.msrb.mxu2 %v3502_v32  ;;  %v3526_v31 = vld [vmem:[%s4075_s3 + $0x350] sm:$0xff]  ;;  %v3545_v32 = vld [vmem:[%s4075_s3 + $0x2c8] sm:$0xff] }
 0x12e   : > { %4220 = vst [vmem:[#allocation51_spill] sm:$0xff] %v3515_v46 }
 0x12f   : > { %4222 = vst [vmem:[#allocation53_spill] sm:$0xff] %v3526_v31 }
 0x130   : > { %1436 = vmatpush.xpose.msrb.mxu3 %v3507_v34  ;;  %1377 = vmatpush.xpose.msrb.mxu0 %v3515_v46  ;;  %v3531_v34 = vld [vmem:[%s4075_s3 + $0x3d0] sm:$0xff]  ;;  %v3539_v46 = vld [vmem:[%s4075_s3 + $0x248] sm:$0xff]  ;;  %4225 = vst [vmem:[#allocation56_spill] sm:$0xff] %v3545_v32 }
 0x131   : > { %4223 = vst [vmem:[#allocation54_spill] sm:$0xff] %v3531_v34  ;;  %1397 = vmatpush.xpose.msrb.mxu1 %v3521_v38  ;;  %1417 = vmatpush.xpose.msrb.mxu2 %v3526_v31  ;;  %v3550_v38 = vld [vmem:[%s4075_s3 + $0x348] sm:$0xff]  ;;  %v918_v31 = vpop.f32.mrf.mxu0 }
 0x132   : > { %4224 = vst [vmem:[#allocation55_spill] sm:$0xff] %v3539_v46 }
 0x133   : > { %4226 = vst [vmem:[#allocation57_spill] sm:$0xff] %v3550_v38 }
 0x134   : > { %1437 = vmatpush.xpose.msrb.mxu3 %v3531_v34  ;;  %1378 = vmatpush.xpose.msrb.mxu0 %v3539_v46  ;;  %v3555_v34 = vld [vmem:[%s4075_s3 + $0x3c8] sm:$0xff]  ;;  %v3563_v46 = vld [vmem:[%s4075_s3 + $0x240] sm:$0xff] }
 0x135   : > { %4227 = vst [vmem:[#allocation58_spill] sm:$0xff] %v3555_v34  ;;  %1398 = vmatpush.xpose.msrb.mxu1 %v3545_v32  ;;  %1418 = vmatpush.xpose.msrb.mxu2 %v3550_v38  ;;  %v3574_v38 = vld [vmem:[%s4075_s3 + $0x340] sm:$0xff]  ;;  %v3593_v32 = vld [vmem:[%s4075_s3 + $0x2b8] sm:$0xff] }
 0x136   : > { %4228 = vst [vmem:[#allocation59_spill] sm:$0xff] %v3563_v46 }
 0x137   : > { %4230 = vst [vmem:[#allocation61_spill] sm:$0xff] %v3574_v38 }
 0x138   : > { %1438 = vmatpush.xpose.msrb.mxu3 %v3555_v34  ;;  %1379 = vmatpush.xpose.msrb.mxu0 %v3563_v46  ;;  %v3579_v34 = vld [vmem:[%s4075_s3 + $0x3c0] sm:$0xff]  ;;  %v3587_v46 = vld [vmem:[%s4075_s3 + $0x238] sm:$0xff]  ;;  %4233 = vst [vmem:[#allocation64_spill] sm:$0xff] %v3593_v32 }
 0x139   : > { %4231 = vst [vmem:[#allocation62_spill] sm:$0xff] %v3579_v34  ;;  %1399 = vmatpush.xpose.msrb.mxu1 %v3569_v24  ;;  %1419 = vmatpush.xpose.msrb.mxu2 %v3574_v38  ;;  %v3598_v24 = vld [vmem:[%s4075_s3 + $0x338] sm:$0xff]  ;;  %v3616_v38 = vld [vmem:[%s4075_s3 + $0x230] sm:$0xff] }
 0x13a   : > { %4232 = vst [vmem:[#allocation63_spill] sm:$0xff] %v3587_v46 }
 0x13b   : > { %4234 = vst [vmem:[#allocation65_spill] sm:$0xff] %v3598_v24 }
 0x13c   : > { %1439 = vmatpush.xpose.msrb.mxu3 %v3579_v34  ;;  %1380 = vmatpush.xpose.msrb.mxu0 %v3587_v46  ;;  %v3603_v34 = vld [vmem:[%s4075_s3 + $0x3b8] sm:$0xff]  ;;  %v3610_v46 = vld [vmem:[%s4079_s7 + $0x4] sm:$0xf]  ;;  %4236 = vst [vmem:[#allocation67_spill] sm:$0xff] %v3616_v38 }
 0x13d   : > { %4235 = vst [vmem:[#allocation66_spill] sm:$0xff] %v3603_v34  ;;  %1400 = vmatpush.xpose.msrb.mxu1 %v3593_v32  ;;  %1420 = vmatpush.xpose.msrb.mxu2 %v3598_v24  ;;  %v3622_v32 = vld [vmem:[%s4075_s3 + $0x2b0] sm:$0xff]  ;;  %v1064_v21 = vperm.slane %v3610_v46, 0  ;;  %v1065_v17 = vperm.slane %v3610_v46, 1  ;;  %v1067_v20 = vperm.slane %v3610_v46, 3 }
 0x13e   : > { %4237 = vst [vmem:[#allocation68_spill] sm:$0xff] %v3622_v32  ;;  %v3627_v24 = vld [vmem:[%s4075_s3 + $0x330] sm:$0xff] }
 0x13f   : > { %4238 = vst [vmem:[#allocation69_spill] sm:$0xff] %v3627_v24 }
 0x140   : > { %1440 = vmatpush.xpose.msrb.mxu3 %v3603_v34  ;;  %1381 = vmatpush.xpose.msrb.mxu0 %v3616_v38  ;;  %v3632_v34 = vld [vmem:[%s4075_s3 + $0x3b0] sm:$0xff] }
 0x141   : > { %4239 = vst [vmem:[#allocation70_spill] sm:$0xff] %v3632_v34  ;;  %1401 = vmatpush.xpose.msrb.mxu1 %v3622_v32  ;;  %1421 = vmatpush.xpose.msrb.mxu2 %v3627_v24  ;;  %v3653_v24 = vld [vmem:[%s4075_s3 + $0x328] sm:$0xff] }
 0x142   : > { %4242 = vst [vmem:[#allocation73_spill] sm:$0xff] %v3653_v24 }
 0x144   : > { %1441 = vmatpush.xpose.msrb.mxu3 %v3632_v34  ;;  %1382 = vmatpush.xpose.msrb.mxu0 %v3642_v28  ;;  %v3658_v34 = vld [vmem:[%s4075_s3 + $0x3a8] sm:$0xff] }
 0x145   : > { %4243 = vst [vmem:[#allocation74_spill] sm:$0xff] %v3658_v34  ;;  %1402 = vmatpush.xpose.msrb.mxu1 %v3648_v12  ;;  %1422 = vmatpush.xpose.msrb.mxu2 %v3653_v24 }
 0x148   : > { %1442 = vmatpush.xpose.msrb.mxu3 %v3658_v34  ;;  %v1066_v34 = vperm.slane %v3610_v46, 2  ;;  %v3763_v46 = vld [vmem:[%s4075_s3 + $0x200] sm:$0xff] }
 0x149   : > { %4260 = vst [vmem:[#allocation91_spill] sm:$0xff] %v3763_v46 }
 0x183   : > { %v998_v38 = vpop.f32.mrf.mxu0  ;;  %v1018_v16 = vpop.f32.mrf.mxu1 }
 0x184   : > { %v999_v15 = vadd.f32 %v998_v38, %v918_v31  ;;  %v1019_v13 = vadd.f32 %v1018_v16, %v938_v25  ;;  %v3666_v16 = vld [vmem:[%s4075_s3 + $0x220] sm:$0xff]  ;;  %v958_v25 = vpop.f32.mrf.mxu2 }
 0x185   : > { %4244 = vst [vmem:[#allocation75_spill] sm:$0xff] %v3666_v16  ;;  %1383 = vmatpush.xpose.msrb.mxu0 %v3666_v16 }
 0x186   : > { %v1072_v32 = vadd.f32 %v1064_v21, %v999_v15  ;;  %v1073_v31 = vadd.f32 %v1065_v17, %v1019_v13  ;;  %v3673_v13 = vld [vmem:[%s4075_s3 + $0x2a0] sm:$0xff] }
 0x187   : > { %4245 = vst [vmem:[#allocation76_spill] sm:$0xff] %v3673_v13  ;;  %v3678_v15 = vld [vmem:[%s4075_s3 + $0x320] sm:$0xff]  ;;  %1403 = vmatpush.xpose.msrb.mxu1 %v3673_v13 }
 0x188   : > { %v2019_v38 = vmul.f32 -1.442695, %v1072_v32  ;;  %v2020_v28 = vmul.f32 -1.442695, %v1073_v31  ;;  %4246 = vst [vmem:[#allocation77_spill] sm:$0xff] %v3678_v15  ;;  %v3683_v17 = vld [vmem:[%s4075_s3 + $0x3a0] sm:$0xff]  ;;  %1423 = vmatpush.xpose.msrb.mxu2 %v3678_v15 }
 0x189   : > { %4247 = vst [vmem:[#allocation78_spill] sm:$0xff] %v3683_v17  ;;  %1443 = vmatpush.xpose.msrb.mxu3 %v3683_v17  ;;  %v3691_v31 = vld [vmem:[%s4075_s3 + $0x218] sm:$0xff]  ;;  %v3721_v15 = vld [vmem:[%s4075_s3 + $0x290] sm:$0xff] }
 0x18a   : > { %2050 = vpow2.f32 %v2019_v38  ;;  %v1058_v21 = vpop.f32.mrf.mxu3  ;;  %4248 = vst [vmem:[#allocation79_spill] sm:$0xff] %v3691_v31  ;;  %1384 = vmatpush.xpose.msrb.mxu0 %v3691_v31  ;;  %v3697_v38 = vld [vmem:[%s4075_s3 + $0x298] sm:$0xff] }
 0x18b   : > { %2052 = vpow2.f32 %v2020_v28  ;;  %v1059_v32 = vadd.f32 %v1058_v21, %v978_v45  ;;  %4249 = vst [vmem:[#allocation80_spill] sm:$0xff] %v3697_v38  ;;  %v3702_v28 = vld [vmem:[%s4075_s3 + $0x318] sm:$0xff]  ;;  %1404 = vmatpush.xpose.msrb.mxu1 %v3697_v38  ;;  %v3715_v21 = vld [vmem:[%s4075_s3 + $0x210] sm:$0xff] }
 0x18c   : > { %4250 = vst [vmem:[#allocation81_spill] sm:$0xff] %v3702_v28  ;;  %v3707_v45 = vld [vmem:[%s4075_s3 + $0x398] sm:$0xff]  ;;  %1424 = vmatpush.xpose.msrb.mxu2 %v3702_v28 }
 0x18d   : > { %v1075_v16 = vadd.f32 %v1067_v20, %v1059_v32  ;;  %4251 = vst [vmem:[#allocation82_spill] sm:$0xff] %v3707_v45  ;;  %1444 = vmatpush.xpose.msrb.mxu3 %v3707_v45  ;;  %v3731_v45 = vld [vmem:[%s4075_s3 + $0x390] sm:$0xff] }
 0x18e   : > { %4252 = vst [vmem:[#allocation83_spill] sm:$0xff] %v3715_v21  ;;  %1385 = vmatpush.xpose.msrb.mxu0 %v3715_v21  ;;  %v1038_v21 = vpop.f32.mrf.mxu2 }
 0x18f   : > { %v2021_v20 = vmul.f32 -1.442695, %v1075_v16  ;;  %4253 = vst [vmem:[#allocation84_spill] sm:$0xff] %v3721_v15  ;;  %v3726_v16 = vld [vmem:[%s4075_s3 + $0x310] sm:$0xff]  ;;  %1405 = vmatpush.xpose.msrb.mxu1 %v3721_v15 }
 0x190   : > { %v2051_v32 = vpop.eup %2050  ;;  %4254 = vst [vmem:[#allocation85_spill] sm:$0xff] %v3726_v16  ;;  %1425 = vmatpush.xpose.msrb.mxu2 %v3726_v16  ;;  %v3751_v16 = vld [vmem:[%s4075_s3 + $0x308] sm:$0xff] }
 0x191   : > { %v2053_v31 = vpop.eup %2052  ;;  %v1079_v17 = vadd.f32 1.0, %v2051_v32  ;;  %2054 = vpow2.f32 %v2021_v20  ;;  %4255 = vst [vmem:[#allocation86_spill] sm:$0xff] %v3731_v45  ;;  %v3738_v20 = vld [vmem:[%s4075_s3 + $0x208] sm:$0xff]  ;;  %1445 = vmatpush.xpose.msrb.mxu3 %v3731_v45  ;;  %v1039_v32 = vadd.f32 %v1038_v21, %v958_v25  ;;  %v3769_v21 = vld [vmem:[%s4075_s3 + $0x280] sm:$0xff] }
 0x192   : > { %v1098_v28 = vadd.f32 1.0, %v2053_v31  ;;  %4256 = vst [vmem:[#allocation87_spill] sm:$0xff] %v3738_v20  ;;  %1386 = vmatpush.xpose.msrb.mxu0 %v3738_v20  ;;  %v3746_v31 = vld [vmem:[%s4075_s3 + $0x288] sm:$0xff]  ;;  %v3774_v20 = vld [vmem:[%s4075_s3 + $0x300] sm:$0xff] }
 0x193   : > { %2056 = vrcp.f32 %v1079_v17  ;;  %4257 = vst [vmem:[#allocation88_spill] sm:$0xff] %v3746_v31  ;;  %v3756_v45 = vld [vmem:[%s4075_s3 + $0x388] sm:$0xff]  ;;  %1406 = vmatpush.xpose.msrb.mxu1 %v3746_v31  ;;  %v1089_v6 = vand.u32 2147483647, %v1079_v17  ;;  %vm1085_vm14 = vweird.f32 %v1079_v17 }
 0x194   : > { %2058 = vrcp.f32 %v1098_v28  ;;  %4258 = vst [vmem:[#allocation89_spill] sm:$0xff] %v3751_v16  ;;  %1426 = vmatpush.xpose.msrb.mxu2 %v3751_v16  ;;  %v3780_v16 = vld [vmem:[%s4075_s3 + $0x380] sm:$0xff]  ;;  %v1110_v11 = vand.u32 2147483648, %v1098_v28  ;;  %vm1104_vm15 = vweird.f32 %v1098_v28 }
 0x195   : > { %4259 = vst [vmem:[#allocation90_spill] sm:$0xff] %v3756_v45  ;;  %1446 = vmatpush.xpose.msrb.mxu3 %v3756_v45  ;;  %v1074_v45 = vadd.f32 %v1066_v34, %v1039_v32  ;;  %v1108_v34 = vand.u32 2147483647, %v1098_v28  ;;  %vm1090_vm2 = vcmp.eq.f32.partialorder %v1089_v6, 8.507059e+37 }
 0x196   : > { %4261 = vst [vmem:[#allocation92_spill] sm:$0xff] %v3769_v21  ;;  %1387 = vmatpush.xpose.msrb.mxu0 %v3763_v46  ;;  %v1091_v46 = vand.u32 2147483648, %v1079_v17 }
 0x197   : > { %v2055_v25 = vpop.eup %2054  ;;  %4262 = vst [vmem:[#allocation93_spill] sm:$0xff] %v3774_v20  ;;  %1407 = vmatpush.xpose.msrb.mxu1 %v3769_v21  ;;  %vm1109_vm3 = vcmp.eq.f32.partialorder %v1108_v34, 8.507059e+37  ;;  %v4304_v34 = vld [vmem:[#allocation52_spill] sm:$0xff] }
 0x198   : > { %v1118_v31 = vadd.f32 1.0, %v2055_v25  ;;  %4263 = vst [vmem:[#allocation94_spill] sm:$0xff] %v3780_v16  ;;  %1427 = vmatpush.xpose.msrb.mxu2 %v3774_v20  ;;  %v1092_v20 = vor.u32 1.1754944e-38, %v1091_v46  ;;  %v4302_v46 = vld [vmem:[#allocation41_spill] sm:$0xff] }
 0x199   : > { %v2057_v15 = vpop.eup %2056  ;;  %1447 = vmatpush.xpose.msrb.mxu3 %v3780_v16 }
 0x19a   : > { %v2059_v24 = vpop.eup %2058  ;;  %v1081_v38 = vmul.f32 %v2057_v15, %v1079_v17  ;;  %2060 = vrcp.f32 %v1118_v31  ;;  %vm1086_vm12 = vweird.f32 %v2057_v15  ;;  %vm1124_vm5 = vweird.f32 %v1118_v31 }
 0x19b   : > { %v1100_v13 = vmul.f32 %v2059_v24, %v1098_v28  ;;  %2062 = vtanh.f32 %v1074_v45  ;;  %vm1105_vm13 = vweird.f32 %v2059_v24  ;;  %vm1087_vm0 = vmor %vm1085_vm14, %vm1086_vm12 }
 0x19c   : > { %v1082_v25 = vsub.f32 1.0, %v1081_v38  ;;  %vm1106_vm1 = vmor %vm1104_vm15, %vm1105_vm13  ;;  %v1111_v38 = vor.u32 1.1754944e-38, %v1110_v11  ;;  %v1128_v11 = vand.u32 2147483647, %v1118_v31 }
 0x19d   : > { %v1101_v12 = vsub.f32 1.0, %v1100_v13  ;;  %v770_v13 = vld [vmem:[#allocation3] sm:$0xff] }
 0x19e   : > { %v1083_v9 = vmul.f32 %v2057_v15, %v1082_v25  ;;  %vm1129_vm7 = vcmp.eq.f32.partialorder %v1128_v11, 8.507059e+37  ;;  %v4315_v11 = vld [vmem:[#allocation54_spill] sm:$0xff] }
 0x19f   : > { %v1102_v14 = vmul.f32 %v2059_v24, %v1101_v12 }
 0x1a0   : > { %v2061_v32 = vpop.eup %2060  ;;  %v1084_v5 = vadd.f32 %v2057_v15, %v1083_v9 }
 0x1a1   : > { %v1103_v21 = vadd.f32 %v2059_v24, %v1102_v14  ;;  %v1120_v1 = vmul.f32 %v2061_v32, %v1118_v31  ;;  %v2063_v45 = vpop.eup %2062  ;;  %vm1125_vm4 = vweird.f32 %v2061_v32  ;;  %v1130_v14 = vand.u32 2147483648, %v1118_v31  ;;  %v4301_v31 = vld [vmem:[#allocation39_spill] sm:$0xff] }
 0x1a2   : > { %v1088_v16 = vsel %vm1087_vm0, %v2057_v15, %v1084_v5  ;;  %vm1126_vm6 = vmor %vm1124_vm5, %vm1125_vm4  ;;  %vm1735_vm4 = vcmask 1044484   ;;  %vm1738_vm5 = vcmask 1045509  }
 0x1a3   : > { %v1093_v25 = vsel %vm1090_vm2, %v1092_v20, %v1088_v16  ;;  %v1107_v0 = vsel %vm1106_vm1, %v2059_v24, %v1103_v21  ;;  %v1121_v12 = vsub.f32 1.0, %v1120_v1  ;;  %v1131_v6 = vor.u32 1.1754944e-38, %v1130_v14  ;;  %v4300_v20 = vld [vmem:[#allocation48_spill] sm:$0xff]  ;;  %v4303_v21 = vld [vmem:[#allocation42_spill] sm:$0xff]  ;;  %v4314_v14 = vld [vmem:[#allocation53_spill] sm:$0xff] }
 0x1a4   : > { %v1112_v10 = vsel %vm1109_vm3, %v1111_v38, %v1107_v0  ;;  %v1135_v63 = vmul.f32 %v2063_v45, %v1093_v25  ;;  %v4306_v38 = vld [vmem:[#allocation45_spill] sm:$0xff]  ;;  %v4308_v45 = vld [vmem:[#allocation56_spill] sm:$0xff]  ;;  %v4309_v25 = vld [vmem:[#allocation47_spill] sm:$0xff]  ;;  %vm1726_vm1 = vcmask 1041409   ;;  %vm1729_vm2 = vcmask 1042434  }
 0x1a5   : > { %v1134_v61 = vmul.f32 %v1112_v10, %v770_v13  ;;  %v1122_v9 = vmul.f32 %v2061_v32, %v1121_v12  ;;  %v4299_v10 = vld [vmem:[#allocation38_spill] sm:$0xff]  ;;  %v4310_v12 = vld [vmem:[#allocation49_spill] sm:$0xff]  ;;  %vm1732_vm3 = vcmask 1043459  }
 0x1a6   : > { %v4307_v13 = vld [vmem:[#allocation46_spill] sm:$0xff] }
 0x1a7   : > { %v1136_v17 = vadd.f32 %v1135_v63, %v1134_v61  ;;  %v1123_v28 = vadd.f32 %v2061_v32, %v1122_v9  ;;  %v4311_v9 = vld [vmem:[#allocation50_spill] sm:$0xff] }
 0x1a9   : > { %2064 = vtanh.f32 %v1136_v17  ;;  %1140 = vst [vmem:[#allocation3] sm:$0xff] %v1136_v17  ;;  %v1127_v5 = vsel %vm1126_vm6, %v2061_v32, %v1123_v28  ;;  %v4305_v32 = vld [vmem:[#allocation43_spill] sm:$0xff]  ;;  %v4312_v17 = vld [vmem:[#allocation60_spill] sm:$0xff]  ;;  %vm1741_vm6 = vcmask 1046534  }
 0x1aa   : > { %v1132_v24 = vsel %vm1129_vm7, %v1131_v6, %v1127_v5  ;;  %v4313_v28 = vld [vmem:[#allocation51_spill] sm:$0xff]  ;;  %v4316_v5 = vld [vmem:[#allocation64_spill] sm:$0xff]  ;;  %vm1744_vm7 = vcmask 1047559  }
 0x1ab   : > { %v4317_v6 = vld [vmem:[#allocation55_spill] sm:$0xff] }
 0x1af   : > { %v2065_v15 = vpop.eup %2064 }
 0x1b0   : > { %v3785_v16 = vmul.f32 %v2065_v15, %v1132_v24  ;;  %v4318_v15 = vld [vmem:[#allocation57_spill] sm:$0xff]  ;;  %v4319_v24 = vld [vmem:[#allocation58_spill] sm:$0xff] }
 0x1b2   : > { %1139 = vst [vmem:[#allocation2 + $0x8] sm:$0xff] %v3785_v16  ;;  %1308 = vmatmul.f32.vlgmr.msra.gmra.mxu0 %v3785_v16  ;;  %v1278_v61 = vrot.slane %v3785_v16, 1  ;;  %v1279_v63 = vrot.slane %v3785_v16, 2  ;;  %v1280_v0 = vrot.slane %v3785_v16, 3  ;;  %v1281_v1 = vrot.slane %v3785_v16, 4 }
 0x1b3   : > { %1557 = vmatpush.msra.mxu0 %v2985_v36  ;;  %v1282_v36 = vrot.slane %v3785_v16, 5 }
 0x1b4   : > { %1328 = vmatmul.f32.vlgmr.msra.gmra.mxu1 %v1278_v61  ;;  %1348 = vmatmul.f32.vlgmr.msra.gmra.mxu2 %v1279_v63  ;;  %v4320_v61 = vld [vmem:[#allocation68_spill] sm:$0xff]  ;;  %v4321_v63 = vld [vmem:[#allocation59_spill] sm:$0xff] }
 0x1b5   : > { %1368 = vmatmul.f32.vlgmr.msra.gmra.mxu3 %v1280_v0  ;;  %1577 = vmatpush.msra.mxu1 %v2990_v37  ;;  %v1283_v37 = vrot.slane %v3785_v16, 6  ;;  %v4322_v0 = vld [vmem:[#allocation61_spill] sm:$0xff] }
 0x1b6   : > { %1597 = vmatpush.msra.mxu2 %v2997_v40  ;;  %1617 = vmatpush.msra.mxu3 %v3002_v41  ;;  %v1284_v40 = vrot.slane %v3785_v16, 7  ;;  %v4264_v41 = vld [vmem:[#allocation5_spill] sm:$0xff] }
 0x1b7   : > { %1578 = vmatpush.msra.mxu1 %v3018_v44  ;;  %1558 = vmatpush.msra.mxu0 %v3013_v43  ;;  %v4265_v43 = vld [vmem:[#allocation6_spill] sm:$0xff]  ;;  %v4266_v44 = vld [vmem:[#allocation12_spill] sm:$0xff] }
 0x1b8   : > { %1598 = vmatpush.msra.mxu2 %v3023_v47  ;;  %1618 = vmatpush.msra.mxu3 %v3028_v48  ;;  %v4267_v47 = vld [vmem:[#allocation7_spill] sm:$0xff]  ;;  %v4268_v48 = vld [vmem:[#allocation8_spill] sm:$0xff] }
 0x1b9   : > { %1579 = vmatpush.msra.mxu1 %v3045_v54  ;;  %1559 = vmatpush.msra.mxu0 %v3040_v53  ;;  %v4269_v53 = vld [vmem:[#allocation9_spill] sm:$0xff]  ;;  %v4270_v54 = vld [vmem:[#allocation16_spill] sm:$0xff] }
 0x1ba   : > { %1388 = vmatmul.f32.vlgmr.msrb.gmra.mxu0 %v1281_v1  ;;  %1599 = vmatpush.msra.mxu2 %v3051_v57  ;;  %v4271_v57 = vld [vmem:[#allocation10_spill] sm:$0xff] }
 0x1bb   : > { %1580 = vmatpush.msra.mxu1 %v3076_v3  ;;  %1619 = vmatpush.msra.mxu3 %v3056_v58  ;;  %v4272_v58 = vld [vmem:[#allocation11_spill] sm:$0xff]  ;;  %v4274_v3 = vld [vmem:[#allocation20_spill] sm:$0xff]  ;;  %v4323_v1 = vld [vmem:[#allocation62_spill] sm:$0xff] }
 0x1bc   : > { %1408 = vmatmul.f32.vlgmr.msrb.gmra.mxu1 %v1282_v36  ;;  %1428 = vmatmul.f32.vlgmr.msrb.gmra.mxu2 %v1283_v37  ;;  %v4324_v36 = vld [vmem:[#allocation72_spill] sm:$0xff]  ;;  %v4325_v37 = vld [vmem:[#allocation63_spill] sm:$0xff] }
 0x1bd   : > { %1448 = vmatmul.f32.vlgmr.msrb.gmra.mxu3 %v1284_v40  ;;  %1581 = vmatpush.msra.mxu1 %v3105_v19  ;;  %v4278_v19 = vld [vmem:[#allocation24_spill] sm:$0xff]  ;;  %v4326_v40 = vld [vmem:[#allocation65_spill] sm:$0xff] }
 0x1be   : > { %1560 = vmatpush.msra.mxu0 %v3071_v2  ;;  %1600 = vmatpush.msra.mxu2 %v3085_v7  ;;  %v4273_v2 = vld [vmem:[#allocation13_spill] sm:$0xff]  ;;  %v4275_v7 = vld [vmem:[#allocation14_spill] sm:$0xff] }
 0x1bf   : > { %1582 = vmatpush.msra.mxu1 %v3132_v27  ;;  %1620 = vmatpush.msra.mxu3 %v3090_v8  ;;  %v4276_v8 = vld [vmem:[#allocation15_spill] sm:$0xff]  ;;  %v4282_v27 = vld [vmem:[#allocation29_spill] sm:$0xff] }
 0x1c0   : > { %1561 = vmatpush.msra.mxu0 %v3100_v18  ;;  %1601 = vmatpush.msra.mxu2 %v3111_v22  ;;  %v4277_v18 = vld [vmem:[#allocation17_spill] sm:$0xff]  ;;  %v4279_v22 = vld [vmem:[#allocation18_spill] sm:$0xff] }
 0x1c1   : > { %1583 = vmatpush.msra.mxu1 %v3160_v35  ;;  %1621 = vmatpush.msra.mxu3 %v3116_v23  ;;  %v4280_v23 = vld [vmem:[#allocation19_spill] sm:$0xff]  ;;  %v4286_v35 = vld [vmem:[#allocation25_spill] sm:$0xff] }
 0x1c2   : > { %1562 = vmatpush.msra.mxu0 %v3127_v26  ;;  %1602 = vmatpush.msra.mxu2 %v3138_v29  ;;  %v4281_v26 = vld [vmem:[#allocation21_spill] sm:$0xff]  ;;  %v4283_v29 = vld [vmem:[#allocation22_spill] sm:$0xff] }
 0x1c3   : > { %1584 = vmatpush.msra.mxu1 %v3184_v50  ;;  %1622 = vmatpush.msra.mxu3 %v3143_v30  ;;  %v4284_v30 = vld [vmem:[#allocation32_spill] sm:$0xff]  ;;  %v4290_v50 = vld [vmem:[#allocation30_spill] sm:$0xff] }
 0x1c4   : > { %1563 = vmatpush.msra.mxu0 %v3155_v33  ;;  %1603 = vmatpush.msra.mxu2 %v3165_v39  ;;  %v4285_v33 = vld [vmem:[#allocation23_spill] sm:$0xff]  ;;  %v4287_v39 = vld [vmem:[#allocation26_spill] sm:$0xff] }
 0x1c5   : > { %1585 = vmatpush.msra.mxu1 %v3208_v56  ;;  %1623 = vmatpush.msra.mxu3 %v3170_v42  ;;  %v4288_v42 = vld [vmem:[#allocation36_spill] sm:$0xff]  ;;  %v4294_v56 = vld [vmem:[#allocation33_spill] sm:$0xff] }
 0x1c6   : > { %1564 = vmatpush.msra.mxu0 %v3179_v49  ;;  %1604 = vmatpush.msra.mxu2 %v3189_v51  ;;  %v4289_v49 = vld [vmem:[#allocation27_spill] sm:$0xff] }
 0x1c7   : > { %1586 = vmatpush.msra.mxu1 %v3232_v62  ;;  %1624 = vmatpush.msra.mxu3 %v3194_v52  ;;  %v4291_v51 = vld [vmem:[#allocation31_spill] sm:$0xff]  ;;  %v4292_v52 = vld [vmem:[#allocation40_spill] sm:$0xff] }
 0x1c8   : > { %1565 = vmatpush.msra.mxu0 %v3203_v55  ;;  %1605 = vmatpush.msra.mxu2 %v3213_v59  ;;  %v4293_v55 = vld [vmem:[#allocation28_spill] sm:$0xff]  ;;  %v4295_v59 = vld [vmem:[#allocation34_spill] sm:$0xff]  ;;  %v4297_v62 = vld [vmem:[#allocation35_spill] sm:$0xff] }
 0x1c9   : > { %1587 = vmatpush.msra.mxu1 %v3256_v4  ;;  %1625 = vmatpush.msra.mxu3 %v3218_v60  ;;  %v4296_v60 = vld [vmem:[#allocation44_spill] sm:$0xff]  ;;  %v4298_v4 = vld [vmem:[#allocation37_spill] sm:$0xff] }
 0x1ca   : > { %1566 = vmatpush.msra.mxu0 %v4264_v41  ;;  %1606 = vmatpush.msra.mxu2 %v4265_v43  ;;  %v4327_v41 = vld [vmem:[#allocation66_spill] sm:$0xff]  ;;  %v4328_v43 = vld [vmem:[#allocation76_spill] sm:$0xff] }
 0x1cb   : > { %1588 = vmatpush.msra.mxu1 %v4266_v44  ;;  %1626 = vmatpush.msra.mxu3 %v4267_v47  ;;  %v4329_v44 = vld [vmem:[#allocation67_spill] sm:$0xff]  ;;  %v4330_v47 = vld [vmem:[#allocation69_spill] sm:$0xff] }
 0x1cc   : > { %1567 = vmatpush.msra.mxu0 %v4268_v48  ;;  %1607 = vmatpush.msra.mxu2 %v4269_v53  ;;  %v4331_v48 = vld [vmem:[#allocation70_spill] sm:$0xff]  ;;  %v4332_v53 = vld [vmem:[#allocation80_spill] sm:$0xff] }
 0x1cd   : > { %1589 = vmatpush.msra.mxu1 %v4270_v54  ;;  %1627 = vmatpush.msra.mxu3 %v4271_v57  ;;  %v4333_v54 = vld [vmem:[#allocation71_spill] sm:$0xff]  ;;  %v4334_v57 = vld [vmem:[#allocation73_spill] sm:$0xff] }
 0x1ce   : > { %1568 = vmatpush.msra.mxu0 %v4272_v58  ;;  %1608 = vmatpush.msra.mxu2 %v4273_v2  ;;  %v4335_v58 = vld [vmem:[#allocation74_spill] sm:$0xff]  ;;  %v4336_v2 = vld [vmem:[#allocation84_spill] sm:$0xff] }
 0x1cf   : > { %1590 = vmatpush.msra.mxu1 %v4274_v3  ;;  %1628 = vmatpush.msra.mxu3 %v4275_v7  ;;  %v4337_v3 = vld [vmem:[#allocation75_spill] sm:$0xff]  ;;  %v4338_v7 = vld [vmem:[#allocation77_spill] sm:$0xff] }
 0x1d0   : > { %1569 = vmatpush.msra.mxu0 %v4276_v8  ;;  %1609 = vmatpush.msra.mxu2 %v4277_v18  ;;  %v4339_v8 = vld [vmem:[#allocation78_spill] sm:$0xff]  ;;  %v4340_v18 = vld [vmem:[#allocation88_spill] sm:$0xff] }
 0x1d1   : > { %1591 = vmatpush.msra.mxu1 %v4278_v19  ;;  %1629 = vmatpush.msra.mxu3 %v4279_v22  ;;  %v4341_v19 = vld [vmem:[#allocation79_spill] sm:$0xff]  ;;  %v4342_v22 = vld [vmem:[#allocation81_spill] sm:$0xff] }
 0x1d2   : > { %1570 = vmatpush.msra.mxu0 %v4280_v23  ;;  %1610 = vmatpush.msra.mxu2 %v4281_v26  ;;  %v4343_v23 = vld [vmem:[#allocation82_spill] sm:$0xff]  ;;  %v4344_v26 = vld [vmem:[#allocation92_spill] sm:$0xff] }
 0x1d3   : > { %1592 = vmatpush.msra.mxu1 %v4282_v27  ;;  %1630 = vmatpush.msra.mxu3 %v4283_v29  ;;  %v4345_v27 = vld [vmem:[#allocation83_spill] sm:$0xff]  ;;  %v4346_v29 = vld [vmem:[#allocation85_spill] sm:$0xff] }
 0x1d4   : > { %1571 = vmatpush.msra.mxu0 %v4285_v33  ;;  %1611 = vmatpush.msra.mxu2 %v4286_v35  ;;  %v4348_v33 = vld [vmem:[#allocation87_spill] sm:$0xff]  ;;  %v4349_v35 = vld [vmem:[#allocation89_spill] sm:$0xff] }
 0x1d5   : > { %1657 = vmatpush.msrb.mxu1 %v4284_v30  ;;  %1631 = vmatpush.msra.mxu3 %v4287_v39  ;;  %v4347_v30 = vld [vmem:[#allocation86_spill] sm:$0xff] }
 0x1d6   : > { %1572 = vmatpush.msra.mxu0 %v4289_v49  ;;  %1612 = vmatpush.msra.mxu2 %v4290_v50  ;;  %v4350_v39 = vld [vmem:[#allocation90_spill] sm:$0xff]  ;;  %v4352_v49 = vld [vmem:[#allocation93_spill] sm:$0xff] }
 0x1d7   : > { %1658 = vmatpush.msrb.mxu1 %v4288_v42  ;;  %1632 = vmatpush.msra.mxu3 %v4291_v51  ;;  %v4351_v42 = vld [vmem:[#allocation91_spill] sm:$0xff]  ;;  %v4353_v50 = vld [vmem:[#allocation94_spill] sm:$0xff]  ;;  %v1269_v51 = vld [vmem:[%s4076_s4] sm:$0x1] }
 0x1d8   : > { %1637 = vmatpush.msrb.mxu0 %v4293_v55  ;;  %1677 = vmatpush.msrb.mxu2 %v4294_v56  ;;  %vm1452_vm8 = vcmp.gt.f32.partialorder %v1269_v51, 0.0  ;;  %v1270_v56 = vld [vmem:[%s4076_s4 + $0x1] sm:$0x1] }
 0x1d9   : > { %1659 = vmatpush.msrb.mxu1 %v4292_v52  ;;  %1697 = vmatpush.msrb.mxu3 %v4295_v59  ;;  %vm1453_vm10 = vcmp.gt.f32.partialorder %v1270_v56, 0.0 }
 0x1da   : > { %1638 = vmatpush.msrb.mxu0 %v4297_v62  ;;  %1678 = vmatpush.msrb.mxu2 %v4298_v4  ;;  %v1271_v62 = vld [vmem:[%s4076_s4 + $0x2] sm:$0x1] }
 0x1db   : > { %1660 = vmatpush.msrb.mxu1 %v4296_v60  ;;  %1698 = vmatpush.msrb.mxu3 %v4299_v10  ;;  %vm1454_vm11 = vcmp.gt.f32.partialorder %v1271_v62, 0.0 }
 0x1dc   : > { %1639 = vmatpush.msrb.mxu0 %v4301_v31  ;;  %1679 = vmatpush.msrb.mxu2 %v4302_v46  ;;  %v1272_v31 = vld [vmem:[%s4076_s4 + $0x3] sm:$0x1] }
 0x1dd   : > { %1661 = vmatpush.msrb.mxu1 %v4300_v20  ;;  %1699 = vmatpush.msrb.mxu3 %v4303_v21  ;;  %v1274_v21 = vld [vmem:[%s4076_s4 + $0x5] sm:$0x1]  ;;  %vm1455_vm12 = vcmp.gt.f32.partialorder %v1272_v31, 0.0 }
 0x1de   : > { %1640 = vmatpush.msrb.mxu0 %v4305_v32  ;;  %1680 = vmatpush.msrb.mxu2 %v4306_v38  ;;  %v1275_v38 = vld [vmem:[%s4076_s4 + $0x6] sm:$0x1]  ;;  %vm1457_vm13 = vcmp.gt.f32.partialorder %v1274_v21, 0.0 }
 0x1df   : > { %1662 = vmatpush.msrb.mxu1 %v4304_v34  ;;  %1700 = vmatpush.msrb.mxu3 %v4307_v13  ;;  %vm1458_vm14 = vcmp.gt.f32.partialorder %v1275_v38, 0.0 }
 0x1e0   : > { %1641 = vmatpush.msrb.mxu0 %v4309_v25  ;;  %1681 = vmatpush.msrb.mxu2 %v4310_v12 }
 0x1e1   : > { %1663 = vmatpush.msrb.mxu1 %v4308_v45  ;;  %1701 = vmatpush.msrb.mxu3 %v4311_v9  ;;  %v1273_v9 = vld [vmem:[%s4076_s4 + $0x4] sm:$0x1] }
 0x1e2   : > { %1642 = vmatpush.msrb.mxu0 %v4313_v28  ;;  %1682 = vmatpush.msrb.mxu2 %v4314_v14  ;;  %v1276_v28 = vld [vmem:[%s4076_s4 + $0x7] sm:$0x1]  ;;  %vm1456_vm15 = vcmp.gt.f32.partialorder %v1273_v9, 0.0 }
 0x1e3   : > { %1664 = vmatpush.msrb.mxu1 %v4312_v17  ;;  %1702 = vmatpush.msrb.mxu3 %v4315_v11  ;;  %vm1459_vm0 = vcmp.gt.f32.partialorder %v1276_v28, 0.0 }
 0x1e4   : > { %1643 = vmatpush.msrb.mxu0 %v4317_v6  ;;  %1683 = vmatpush.msrb.mxu2 %v4318_v15 }
 0x1e5   : > { %1665 = vmatpush.msrb.mxu1 %v4316_v5  ;;  %1703 = vmatpush.msrb.mxu3 %v4319_v24 }
 0x1e6   : > { %1644 = vmatpush.msrb.mxu0 %v4321_v63  ;;  %1684 = vmatpush.msrb.mxu2 %v4322_v0 }
 0x1e7   : > { %1666 = vmatpush.msrb.mxu1 %v4320_v61  ;;  %1704 = vmatpush.msrb.mxu3 %v4323_v1 }
 0x1e8   : > { %1645 = vmatpush.msrb.mxu0 %v4325_v37  ;;  %1685 = vmatpush.msrb.mxu2 %v4326_v40 }
 0x1e9   : > { %1667 = vmatpush.msrb.mxu1 %v4324_v36  ;;  %1705 = vmatpush.msrb.mxu3 %v4327_v41 }
 0x1ea   : > { %1646 = vmatpush.msrb.mxu0 %v4329_v44  ;;  %1686 = vmatpush.msrb.mxu2 %v4330_v47 }
 0x1eb   : > { %1668 = vmatpush.msrb.mxu1 %v4328_v43  ;;  %1706 = vmatpush.msrb.mxu3 %v4331_v48 }
 0x1ec   : > { %1647 = vmatpush.msrb.mxu0 %v4333_v54  ;;  %1687 = vmatpush.msrb.mxu2 %v4334_v57 }
 0x1ed   : > { %1669 = vmatpush.msrb.mxu1 %v4332_v53  ;;  %1707 = vmatpush.msrb.mxu3 %v4335_v58 }
 0x1ee   : > { %1648 = vmatpush.msrb.mxu0 %v4337_v3  ;;  %1688 = vmatpush.msrb.mxu2 %v4338_v7 }
 0x1ef   : > { %1670 = vmatpush.msrb.mxu1 %v4336_v2  ;;  %1708 = vmatpush.msrb.mxu3 %v4339_v8 }
 0x1f0   : > { %1649 = vmatpush.msrb.mxu0 %v4341_v19  ;;  %1689 = vmatpush.msrb.mxu2 %v4342_v22 }
 0x1f1   : > { %1671 = vmatpush.msrb.mxu1 %v4340_v18  ;;  %1709 = vmatpush.msrb.mxu3 %v4343_v23 }
 0x1f2   : > { %1650 = vmatpush.msrb.mxu0 %v4345_v27  ;;  %1690 = vmatpush.msrb.mxu2 %v4346_v29 }
 0x1f3   : > { %1672 = vmatpush.msrb.mxu1 %v4344_v26  ;;  %1710 = vmatpush.msrb.mxu3 %v4347_v30 }
 0x1f4   : > { %1651 = vmatpush.msrb.mxu0 %v4348_v33  ;;  %1691 = vmatpush.msrb.mxu2 %v4349_v35 }
 0x1f5   : > { %1711 = vmatpush.msrb.mxu3 %v4350_v39 }
 0x1f6   : > { %1652 = vmatpush.msrb.mxu0 %v4351_v42  ;;  %1692 = vmatpush.msrb.mxu2 %v4352_v49 }
 0x1f7   : > { %1712 = vmatpush.msrb.mxu3 %v4353_v50 }
 0x22f   : > { %v1309_v52 = vpop.f32.mrf.mxu0 }
 0x230   : > { %v1460_v55 = vsel %vm1452_vm8, %v1309_v52, -1e+30 }
 0x231   : > { %v1469_v59 = vsel %vm1468_vm9, %v1460_v55, -inf  ;;  %v1329_v60 = vpop.f32.mrf.mxu1 }
 0x232   : > { %1470 = vmax.xlane.f32.xlu1 %v1469_v59  ;;  %v1461_v4 = vsel %vm1453_vm10, %v1329_v60, -1e+30 }
 0x233   : > { %v1472_v32 = vsel %vm1468_vm9, %v1461_v4, -inf }
 0x237   : > { %v1349_v10 = vpop.f32.mrf.mxu2  ;;  %v1389_v6 = vpop.f32.mrf.mxu0 }
 0x238   : > { %v1462_v20 = vsel %vm1454_vm11, %v1349_v10, -1e+30  ;;  %v1369_v46 = vpop.f32.mrf.mxu3  ;;  %v1464_v24 = vsel %vm1456_vm15, %v1389_v6, -1e+30  ;;  %v1761_v6 = vld [vmem:[%s4080_s8 + $0x68] sm:$0xff] }
 0x239   : > { %v1475_v34 = vsel %vm1468_vm9, %v1462_v20, -inf  ;;  %v1409_v13 = vpop.f32.mrf.mxu1  ;;  %v1463_v45 = vsel %vm1455_vm12, %v1369_v46, -1e+30  ;;  %v1481_v63 = vsel %vm1468_vm9, %v1464_v24, -inf }
 0x23a   : > { %1476 = vmax.xlane.f32.xlu0 %v1475_v34  ;;  %1473 = vmax.xlane.f32.xlu1 %v1472_v32  ;;  %v3945_v25 = vsel %vm1457_vm13, %v1409_v13, -1e+30  ;;  %v1478_v14 = vsel %vm1468_vm9, %v1463_v45, -inf }
 0x23b   : > { %v1484_v5 = vsel %vm1468_vm9, %v3945_v25, -inf }
 0x23f   : > { %v1429_v12 = vpop.f32.mrf.mxu2 }
 0x240   : > { %v1466_v17 = vsel %vm1458_vm14, %v1429_v12, -1e+30  ;;  %v1449_v15 = vpop.f32.mrf.mxu3 }
 0x241   : > { %v1487_v11 = vsel %vm1468_vm9, %v1466_v17, -inf  ;;  %v1467_v61 = vsel %vm1459_vm0, %v1449_v15, -1e+30 }
 0x242   : > { %1479 = vmax.xlane.f32.xlu0 %v1478_v14  ;;  %1488 = vmax.xlane.f32.xlu2 %v1487_v11  ;;  %v1490_v0 = vsel %vm1468_vm9, %v1467_v61, -inf  ;;  %v1763_v11 = vld [vmem:[%s4080_s8 + $0x78] sm:$0xff] }
 0x243   : > { %1485 = vmax.xlane.f32.xlu1 %v1484_v5  ;;  %v1762_v5 = vld [vmem:[%s4080_s8 + $0x70] sm:$0xff] }
 0x24a   : > { %1482 = vmax.xlane.f32.xlu0 %v1481_v63  ;;  %1491 = vmax.xlane.f32.xlu2 %v1490_v0 }
 0x2a5   : > { %v1471_v1 = vpop.xlane.xlu1 %1470 }
 0x2a6   : > { %v1493_v36 = vsub.f32 %v1460_v55, %v1471_v1 }
 0x2a8   : > { %v1501_v37 = vmul.f32 1.442695, %v1493_v36 }
 0x2aa   : > { %2066 = vpow2.f32 %v1501_v37  ;;  %v1759_v37 = vld [vmem:[%s4080_s8 + $0x58] sm:$0xff] }
 0x2ad   : > { %v1477_v40 = vpop.xlane.xlu0 %1476  ;;  %v1474_v41 = vpop.xlane.xlu1 %1473 }
 0x2ae   : > { %v1495_v43 = vsub.f32 %v1462_v20, %v1477_v40  ;;  %v1494_v48 = vsub.f32 %v1461_v4, %v1474_v41  ;;  %v1758_v41 = vld [vmem:[%s4080_s8 + $0x50] sm:$0xff] }
 0x2b0   : > { %v2067_v44 = vpop.eup %2066  ;;  %v1505_v47 = vmul.f32 1.442695, %v1495_v43  ;;  %v1503_v54 = vmul.f32 1.442695, %v1494_v48  ;;  %v1757_v43 = vld [vmem:[%s4080_s8 + $0x48] sm:$0xff] }
 0x2b1   : > { %v1517_v53 = vsel %vm1468_vm9, %v2067_v44, 0.0 }
 0x2b2   : > { %2068 = vpow2.f32 %v1505_v47  ;;  %1518 = vadd.xlane.f32.xlu1 %v1517_v53  ;;  %v1756_v47 = vld [vmem:[%s4080_s8 + $0x40] sm:$0xff]  ;;  %v1755_v53 = vld [vmem:[%s4080_s8 + $0x38] sm:$0xff] }
 0x2b3   : > { %2070 = vpow2.f32 %v1503_v54  ;;  %v1754_v54 = vld [vmem:[%s4080_s8 + $0x30] sm:$0xff] }
 0x2b5   : > { %v1480_v57 = vpop.xlane.xlu0 %1479  ;;  %v1489_v58 = vpop.xlane.xlu2 %1488 }
 0x2b6   : > { %v1496_v2 = vsub.f32 %v1463_v45, %v1480_v57  ;;  %v1499_v8 = vsub.f32 %v1466_v17, %v1489_v58  ;;  %v1486_v22 = vpop.xlane.xlu1 %1485  ;;  %v1753_v57 = vld [vmem:[%s4080_s8 + $0x28] sm:$0xff]  ;;  %v1752_v58 = vld [vmem:[%s4080_s8 + $0x20] sm:$0xff] }
 0x2b7   : > { %v1498_v35 = vsub.f32 %v3945_v25, %v1486_v22  ;;  %v1777_v22 = vld [vmem:[%s4081_s9 + $0x68] sm:$0xff] }
 0x2b8   : > { %v2069_v3 = vpop.eup %2068  ;;  %v1507_v7 = vmul.f32 1.442695, %v1496_v2  ;;  %v1513_v19 = vmul.f32 1.442695, %v1499_v8  ;;  %v1751_v2 = vld [vmem:[%s4080_s8 + $0x18] sm:$0xff]  ;;  %v1748_v8 = vld [vmem:[%s4080_s8] sm:$0xff] }
 0x2b9   : > { %v1523_v18 = vsel %vm1468_vm9, %v2069_v3, 0.0  ;;  %v2071_v27 = vpop.eup %2070  ;;  %v1511_v51 = vmul.f32 1.442695, %v1498_v35  ;;  %v1769_v35 = vld [vmem:[%s4081_s9 + $0x28] sm:$0xff] }
 0x2ba   : > { %2072 = vpow2.f32 %v1507_v7  ;;  %1524 = vadd.xlane.f32.xlu2 %v1523_v18  ;;  %v1520_v50 = vsel %vm1468_vm9, %v2071_v27, 0.0  ;;  %v1749_v7 = vld [vmem:[%s4080_s8 + $0x8] sm:$0xff]  ;;  %v1779_v18 = vld [vmem:[%s4081_s9 + $0x78] sm:$0xff] }
 0x2bb   : > { %2074 = vpow2.f32 %v1513_v19  ;;  %v1778_v19 = vld [vmem:[%s4081_s9 + $0x70] sm:$0xff] }
 0x2bd   : > { %v1483_v23 = vpop.xlane.xlu0 %1482  ;;  %v1492_v26 = vpop.xlane.xlu2 %1491 }
 0x2be   : > { %v1497_v29 = vsub.f32 %v1464_v24, %v1483_v23  ;;  %v1500_v30 = vsub.f32 %v1467_v61, %v1492_v26  ;;  %v1760_v24 = vld [vmem:[%s4080_s8 + $0x60] sm:$0xff]  ;;  %v1774_v26 = vld [vmem:[%s4081_s9 + $0x50] sm:$0xff] }
 0x2bf   : > { %v1776_v23 = vld [vmem:[%s4081_s9 + $0x60] sm:$0xff] }
 0x2c0   : > { %v2073_v33 = vpop.eup %2072  ;;  %v1509_v39 = vmul.f32 1.442695, %v1497_v29  ;;  %v1515_v42 = vmul.f32 1.442695, %v1500_v30  ;;  %v1772_v29 = vld [vmem:[%s4081_s9 + $0x40] sm:$0xff]  ;;  %v1771_v30 = vld [vmem:[%s4081_s9 + $0x38] sm:$0xff] }
 0x2c1   : > { %v1526_v49 = vsel %vm1468_vm9, %v2073_v33, 0.0  ;;  %v2075_v52 = vpop.eup %2074 }
 0x2c2   : > { %2076 = vpow2.f32 %v1509_v39  ;;  %1527 = vadd.xlane.f32.xlu0 %v1526_v49  ;;  %1521 = vadd.xlane.f32.xlu2 %v1520_v50  ;;  %v1535_v59 = vsel %vm1468_vm9, %v2075_v52, 0.0  ;;  %v1768_v39 = vld [vmem:[%s4081_s9 + $0x20] sm:$0xff]  ;;  %v1766_v49 = vld [vmem:[%s4081_s9 + $0x10] sm:$0xff]  ;;  %v1765_v50 = vld [vmem:[%s4081_s9 + $0x8] sm:$0xff] }
 0x2c3   : > { %2078 = vpow2.f32 %v1515_v42  ;;  %v1767_v42 = vld [vmem:[%s4081_s9 + $0x18] sm:$0xff] }
 0x2c4   : > { %2080 = vpow2.f32 %v1511_v51  ;;  %v1764_v51 = vld [vmem:[%s4081_s9] sm:$0xff] }
 0x2c8   : > { %v2077_v55 = vpop.eup %2076 }
 0x2c9   : > { %v2079_v56 = vpop.eup %2078  ;;  %v1529_v60 = vsel %vm1468_vm9, %v2077_v55, 0.0 }
 0x2ca   : > { %1536 = vadd.xlane.f32.xlu0 %v1535_v59  ;;  %1530 = vadd.xlane.f32.xlu2 %v1529_v60  ;;  %v1538_v62 = vsel %vm1468_vm9, %v2079_v56, 0.0  ;;  %v2081_v4 = vpop.eup %2080 }
 0x2cb   : > { %1539 = vadd.xlane.f32.xlu1 %v1538_v62  ;;  %v1532_v10 = vsel %vm1468_vm9, %v2081_v4, 0.0 }
 0x2d2   : > { %1533 = vadd.xlane.f32.xlu0 %v1532_v10 }
 0x325   : > { %v1519_v20 = vpop.xlane.xlu1 %1518 }
 0x326   : > { %2082 = vrcp.f32 %v1519_v20 }
 0x32c   : > { %v2083_v31 = vpop.eup %2082 }
 0x32d   : > { %v1525_v46 = vpop.xlane.xlu2 %1524  ;;  %v1549_v21 = vmul.f32 %v2083_v31, %v2067_v44 }
 0x32e   : > { %2084 = vrcp.f32 %v1525_v46 }
 0x32f   : > { %1573 = vmatmul.f32.vlgmr.msra.gmra.mxu0 %v1549_v21 }
 0x330   : > { %1780 = vmatpush.msra.mxu0 %v1779_v18 }
 0x332   : > { %1781 = vmatpush.msra.mxu0 %v1778_v19 }
 0x334   : > { %v2085_v34 = vpop.eup %2084  ;;  %1782 = vmatpush.msra.mxu0 %v1777_v22 }
 0x335   : > { %v1528_v32 = vpop.xlane.xlu0 %1527  ;;  %v1522_v38 = vpop.xlane.xlu2 %1521  ;;  %v1551_v13 = vmul.f32 %v2085_v34, %v2069_v3  ;;  %v1750_v3 = vld [vmem:[%s4080_s8 + $0x10] sm:$0xff] }
 0x336   : > { %2086 = vrcp.f32 %v1528_v32  ;;  %1783 = vmatpush.msra.mxu0 %v1776_v23 }
 0x337   : > { %2088 = vrcp.f32 %v1522_v38  ;;  %1613 = vmatmul.f32.vlgmr.msra.gmra.mxu2 %v1551_v13 }
 0x33c   : > { %v2087_v45 = vpop.eup %2086 }
 0x33d   : > { %v2089_v25 = vpop.eup %2088  ;;  %v1537_v12 = vpop.xlane.xlu0 %1536  ;;  %v1552_v17 = vmul.f32 %v2087_v45, %v2073_v33  ;;  %v1770_v33 = vld [vmem:[%s4081_s9 + $0x30] sm:$0xff] }
 0x33e   : > { %v1531_v9 = vpop.xlane.xlu2 %1530  ;;  %2090 = vrcp.f32 %v1537_v12  ;;  %v1540_v28 = vpop.xlane.xlu1 %1539  ;;  %v1550_v14 = vmul.f32 %v2089_v25, %v2071_v27  ;;  %v1773_v27 = vld [vmem:[%s4081_s9 + $0x48] sm:$0xff] }
 0x33f   : > { %2092 = vrcp.f32 %v1531_v9  ;;  %1633 = vmatmul.f32.vlgmr.msra.gmra.mxu3 %v1552_v17 }
 0x340   : > { %2094 = vrcp.f32 %v1540_v28  ;;  %1593 = vmatmul.f32.vlgmr.msra.gmra.mxu1 %v1550_v14  ;;  %v2033_v14 = vld [vmem:[%s4082_s10] ss:$0 sm:$0xff] }
 0x341   : > { %1800 = vmatpush.msra.mxu1 %v1763_v11 }
 0x343   : > { %1801 = vmatpush.msra.mxu1 %v1762_v5 }
 0x344   : > { %v2091_v15 = vpop.eup %2090 }
 0x345   : > { %v2093_v61 = vpop.eup %2092  ;;  %1802 = vmatpush.msra.mxu1 %v1761_v6  ;;  %v1534_v63 = vpop.xlane.xlu0 %1533  ;;  %v1555_v0 = vmul.f32 %v2091_v15, %v2075_v52 }
 0x346   : > { %v2095_v1 = vpop.eup %2094  ;;  %v1553_v36 = vmul.f32 %v2093_v61, %v2077_v55  ;;  %2096 = vrcp.f32 %v1534_v63 }
 0x347   : > { %v1556_v40 = vmul.f32 %v2095_v1, %v2079_v56  ;;  %1803 = vmatpush.msra.mxu1 %v1760_v24  ;;  %1693 = vmatmul.f32.vlgmr.msrb.gmra.mxu2 %v1555_v0 }
 0x348   : > { %1653 = vmatmul.f32.vlgmr.msrb.gmra.mxu0 %v1553_v36 }
 0x349   : > { %1713 = vmatmul.f32.vlgmr.msrb.gmra.mxu3 %v1556_v40  ;;  %1804 = vmatpush.msra.mxu1 %v1759_v37 }
 0x34b   : > { %1805 = vmatpush.msra.mxu1 %v1758_v41 }
 0x34c   : > { %v2097_v44 = vpop.eup %2096 }
 0x34d   : > { %v1554_v48 = vmul.f32 %v2097_v44, %v2081_v4  ;;  %1806 = vmatpush.msra.mxu1 %v1757_v43 }
 0x34f   : > { %1807 = vmatpush.msra.mxu1 %v1756_v47 }
 0x350   : > { %1673 = vmatmul.f32.vlgmr.msrb.gmra.mxu1 %v1554_v48 }
 0x351   : > { %1808 = vmatpush.msra.mxu1 %v1755_v53 }
 0x353   : > { %1809 = vmatpush.msra.mxu1 %v1754_v54 }
 0x355   : > { %1810 = vmatpush.msra.mxu1 %v1753_v57 }
 0x357   : > { %1811 = vmatpush.msra.mxu1 %v1752_v58 }
 0x359   : > { %1812 = vmatpush.msra.mxu1 %v1751_v2 }
 0x35b   : > { %1813 = vmatpush.msra.mxu1 %v1750_v3 }
 0x35d   : > { %1814 = vmatpush.msra.mxu1 %v1749_v7 }
 0x35f   : > { %1815 = vmatpush.msra.mxu1 %v1748_v8 }
 0x360   : > { %1816 = vmatmul.f32.vlgmr.msra.gmra.mxu1 %v3785_v16  ;;  %v1775_v16 = vld [vmem:[%s4081_s9 + $0x58] sm:$0xff] }
 0x361   : > { %1784 = vmatpush.msra.mxu0 %v1775_v16 }
 0x363   : > { %1785 = vmatpush.msra.mxu0 %v1774_v26 }
 0x365   : > { %1786 = vmatpush.msra.mxu0 %v1773_v27 }
 0x367   : > { %1787 = vmatpush.msra.mxu0 %v1772_v29 }
 0x369   : > { %1788 = vmatpush.msra.mxu0 %v1771_v30 }
 0x36b   : > { %1789 = vmatpush.msra.mxu0 %v1770_v33 }
 0x36d   : > { %1790 = vmatpush.msra.mxu0 %v1769_v35 }
 0x36f   : > { %1791 = vmatpush.msra.mxu0 %v1768_v39 }
 0x371   : > { %1792 = vmatpush.msra.mxu0 %v1767_v42 }
 0x373   : > { %1793 = vmatpush.msra.mxu0 %v1766_v49 }
 0x375   : > { %1794 = vmatpush.msra.mxu0 %v1765_v50 }
 0x377   : > { %1795 = vmatpush.msra.mxu0 %v1764_v51 }
 0x3ac   : > { %v1574_v52 = vpop.f32.mrf.mxu0 }
 0x3ba   : > { %v1614_v59 = vpop.f32.mrf.mxu2 }
 0x3bb   : > { %v1728_v20 = vrot.slane %v1614_v59, 6 }
 0x3bd   : > { %v1594_v55 = vpop.f32.mrf.mxu1 }
 0x3be   : > { %v1725_v60 = vrot.slane %v1594_v55, 7 }
 0x3c0   : > { %v1727_v62 = vsel %vm1726_vm1, %v1725_v60, %v1574_v52 }
 0x3c1   : > { %v1730_v31 = vsel %vm1729_vm2, %v1728_v20, %v1727_v62 }
 0x3c2   : > { %v1634_v56 = vpop.f32.mrf.mxu3 }
 0x3c3   : > { %v1731_v4 = vrot.slane %v1634_v56, 5 }
 0x3c5   : > { %v1654_v10 = vpop.f32.mrf.mxu0  ;;  %v1733_v21 = vsel %vm1732_vm3, %v1731_v4, %v1730_v31 }
 0x3c6   : > { %v1734_v46 = vrot.slane %v1654_v10, 4 }
 0x3c8   : > { %v1736_v45 = vsel %vm1735_vm4, %v1734_v46, %v1733_v21 }
 0x3ca   : > { %v1694_v34 = vpop.f32.mrf.mxu2 }
 0x3cb   : > { %v1740_v25 = vrot.slane %v1694_v34, 2 }
 0x3cc   : > { %v1714_v32 = vpop.f32.mrf.mxu3 }
 0x3cd   : > { %v1674_v38 = vpop.f32.mrf.mxu1  ;;  %v1743_v12 = vrot.slane %v1714_v32, 1 }
 0x3ce   : > { %v1737_v13 = vrot.slane %v1674_v38, 3 }
 0x3d0   : > { %v1739_v9 = vsel %vm1738_vm5, %v1737_v13, %v1736_v45 }
 0x3d1   : > { %v1742_v17 = vsel %vm1741_vm6, %v1740_v25, %v1739_v9 }
 0x3d2   : > { %v1745_v28 = vsel %vm1744_vm7, %v1743_v12, %v1742_v17 }
 0x3d3   : > { %1747 = vst [vmem:[#allocation4] sm:$0xff] %v1745_v28  ;;  %1796 = vmatmul.f32.vlgmr.msra.gmra.mxu0 %v1745_v28 }
 0x3dd   : > { %v1817_v11 = vpop.f32.mrf.mxu1 }
 0x450   : > { %v1797_v5 = vpop.f32.mrf.mxu0 }
 0x451   : > { %v1818_v6 = vadd.f32 %v1817_v11, %v1797_v5 }
 0x453   : > { %v1824_v15 = vadd.f32 %v2033_v14, %v1818_v6 }
 0x455   : > { %1825 = vst [vmem:[%s2183_s26] sm:$0xff] %v1824_v15 }
 0x456 PF: > { %s21_s17 = sadd.s32 1, %s2104_s17  }
 0x457   : > { %p18_p5 = scmp.ge.s32.totalorder %s21_s17, 7  }
 0x459   :  { %20 = sbr.rel (!%p18_p5) target bundleno = 1 (0x1), region = 103 }

</bundles_post_ra>
